<compile_context>
chip_gen: v6e
topology: v6e:2x2x1
jax: 0.10.0
libtpu: 0.0.40
codegen_flags: <defaults>
</compile_context>

<pallas_src>
import functools
import math

import jax
import jax.numpy as jnp
from jax import lax
from jax.experimental import pallas as pl
from jax.experimental.pallas import tpu as pltpu

VMEM = pltpu.MemorySpace.VMEM

CFG = dict(vocab_size=100, hidden=32, num_layers=2, num_heads=2,
           intermediate=64, max_pos=16, type_vocab=2)


# ------------------------- fused encoder kernel ----------------------------

def _encoder_kernel(emb_ref, mask_ref, eg_ref, eb_ref,
                    wqkv_ref, bqkv_ref, wo_ref, bo_ref, g1_ref, b1_ref,
                    wi_ref, bi_ref, wo2_ref, bo2_ref, g2_ref, b2_ref,
                    pw_ref, pb_ref,
                    pooled_ref,
                    x_s, qkv_s, ctx_s,
                    *, num_layers, num_heads, seq_len, hidden, ln_eps):
    H = hidden
    S = seq_len
    dh = H // num_heads
    n_seq = emb_ref.shape[0] // S          # 2B sequences batched together
    scale = 1.0 / math.sqrt(dh)
    inv_sqrt2 = 1.0 / math.sqrt(2.0)

    def layer_norm(y, g, b):
        mean = jnp.mean(y, axis=-1, keepdims=True)
        var = jnp.mean(jnp.square(y - mean), axis=-1, keepdims=True)
        return (y - mean) * lax.rsqrt(var + ln_eps) * g + b

    def mm(x, w):
        # bf16 operands into the MXU, f32 accumulation.
        return jnp.dot(x.astype(jnp.bfloat16), w,
                       preferred_element_type=jnp.float32)

    # Embedding LayerNorm (folded in; activations never leave VMEM after this).
    x_s[...] = layer_norm(emb_ref[...], eg_ref[...], eb_ref[...])

    for l in range(num_layers):                       # static unroll (small L)
        x = x_s[...]                                  # (M, H) residual input

        # Fused QKV projection; result stays resident in VMEM scratch.
        qkv_s[...] = mm(x, wqkv_ref[l]) + bqkv_ref[l]

        # Self-attention: per (sequence, head); all slicing via ref windows.
        for b in range(n_seq):
            r0 = b * S
            m = mask_ref[b:b + 1, :]                  # (1, S) additive mask
            for h in range(num_heads):
                c0 = h * dh
                q = qkv_s[r0:r0 + S, c0:c0 + dh].astype(jnp.bfloat16)
                k = qkv_s[r0:r0 + S, H + c0:H + c0 + dh].astype(jnp.bfloat16)
                v = qkv_s[r0:r0 + S, 2 * H + c0:2 * H + c0 + dh].astype(jnp.bfloat16)
                # Contract on Dh of both operands -> no k.T relayout.
                s = lax.dot_general(q, k, (((1,), (1,)), ((), ())),
                                    preferred_element_type=jnp.float32)
                s = s * scale + m
                s = s - jnp.max(s, axis=-1, keepdims=True)
                p = jnp.exp(s)
                p = p * pl.reciprocal(jnp.sum(p, axis=-1, keepdims=True),
                                      approx=True)
                ctx_s[r0:r0 + S, c0:c0 + dh] = jnp.dot(
                    p.astype(jnp.bfloat16), v, preferred_element_type=jnp.float32)

        # Attention output projection + residual + LayerNorm.
        y = mm(ctx_s[...], wo_ref[l]) + bo_ref[l] + x
        x = layer_norm(y, g1_ref[l], b1_ref[l])
        x_s[...] = x

        # Feed-forward (exact erf GELU, as in BERT) + residual + LayerNorm.
        h1 = mm(x, wi_ref[l]) + bi_ref[l]
        h1 = 0.5 * h1 * (1.0 + lax.erf(h1 * inv_sqrt2))
        y = mm(h1, wo2_ref[l]) + bo2_ref[l] + x
        x_s[...] = layer_norm(y, g2_ref[l], b2_ref[l])

    # Pooler: tanh(CLS @ W + b) on the first token of each sequence.
    cls = jnp.concatenate([x_s[b * S:b * S + 1, :] for b in range(n_seq)],
                          axis=0)
    pooled_ref[...] = jnp.tanh(mm(cls, pw_ref[...]) + pb_ref[...])


def bert_encode(params, input_ids, token_type_ids, attention_mask, cfg):
    B2, S = input_ids.shape           # B2 = 2*B (both sentences batched)
    H = cfg["hidden"]
    M = B2 * S

    # Embedding-table gathers stay as plain-JAX glue (data-dependent gather).
    emb = (params["word_emb"][input_ids]
           + params["pos_emb"][jnp.arange(S)][None, :, :]
           + params["type_emb"][token_type_ids])
    emb = emb.reshape(M, H)

    add_mask = (1.0 - attention_mask.astype(jnp.float32)) * -10000.0   # (2B, S)

    vmem_spec = pl.BlockSpec(memory_space=VMEM)
    args = (emb, add_mask,
            params["emb_ln_g"], params["emb_ln_b"],
            params["w_qkv"], params["b_qkv"],
            params["wo"], params["bo"], params["ln1_g"], params["ln1_b"],
            params["wi"], params["bi"], params["wo2"], params["bo2"],
            params["ln2_g"], params["ln2_b"],
            params["pool_w"], params["pool_b"])

    pooled = pl.pallas_call(
        functools.partial(_encoder_kernel,
                          num_layers=cfg["num_layers"],
                          num_heads=cfg["num_heads"],
                          seq_len=S, hidden=H, ln_eps=1e-12),
        out_shape=jax.ShapeDtypeStruct((B2, H), jnp.float32),
        in_specs=[vmem_spec] * len(args),
        out_specs=vmem_spec,
        scratch_shapes=[pltpu.VMEM((M, H), jnp.float32),       # running x
                        pltpu.VMEM((M, 3 * H), jnp.float32),   # fused QKV
                        pltpu.VMEM((M, H), jnp.float32)],      # attn context
    )(*args)
    return pooled


# ----------------------------- cosine kernel --------------------------------

def _cosine_kernel(a_ref, b_ref, o_ref, *, eps):
    a = a_ref[...]
    b = b_ref[...]
    dot = jnp.sum(a * b, axis=-1, keepdims=True)
    na = jnp.sqrt(jnp.sum(a * a, axis=-1, keepdims=True))
    nb = jnp.sqrt(jnp.sum(b * b, axis=-1, keepdims=True))
    # torch.nn.CosineSimilarity clamps each norm separately; exact divide
    # (output-visible value, so no approx reciprocal here).
    o_ref[...] = dot / (jnp.maximum(na, eps) * jnp.maximum(nb, eps))


def cosine_similarity(a, b, eps=1e-8):
    B = a.shape[0]
    out = pl.pallas_call(
        functools.partial(_cosine_kernel, eps=eps),
        out_shape=jax.ShapeDtypeStruct((B, 1), jnp.float32),
        in_specs=[pl.BlockSpec(memory_space=VMEM)] * 2,
        out_specs=pl.BlockSpec(memory_space=VMEM),
    )(a, b)
    return out[:, 0]


# ----------------------------- params / model -------------------------------

def init_params(key, cfg):
    H, I, L = cfg["hidden"], cfg["intermediate"], cfg["num_layers"]
    ks = iter(jax.random.split(key, 16 + 8 * L))
    nrm = lambda shape: 0.02 * jax.random.normal(next(ks), shape, jnp.float32)
    wdt = jnp.bfloat16    # matmul weights stored bf16 (MXU bf16 path)

    params = {
        "word_emb": nrm((cfg["vocab_size"], H)),
        "pos_emb": nrm((cfg["max_pos"], H)),
        "type_emb": nrm((cfg["type_vocab"], H)),
        "emb_ln_g": jnp.ones((1, H), jnp.float32),
        "emb_ln_b": jnp.zeros((1, H), jnp.float32),
        "pool_w": nrm((H, H)).astype(wdt),
        "pool_b": jnp.zeros((1, H), jnp.float32),
    }
    w_qkv, wo, wi, wo2 = [], [], [], []
    for _ in range(L):
        # Q, K, V fused into one (H, 3H) projection per layer.
        w_qkv.append(jnp.concatenate([nrm((H, H)), nrm((H, H)), nrm((H, H))],
                                     axis=1))
        wo.append(nrm((H, H)))
        wi.append(nrm((H, I)))
        wo2.append(nrm((I, H)))
    params.update({
        "w_qkv": jnp.stack(w_qkv).astype(wdt),        # (L, H, 3H)
        "b_qkv": jnp.zeros((L, 1, 3 * H), jnp.float32),
        "wo":    jnp.stack(wo).astype(wdt),            # (L, H, H)
        "bo":    jnp.zeros((L, 1, H), jnp.float32),
        "ln1_g": jnp.ones((L, 1, H), jnp.float32),
        "ln1_b": jnp.zeros((L, 1, H), jnp.float32),
        "wi":    jnp.stack(wi).astype(wdt),            # (L, H, I)
        "bi":    jnp.zeros((L, 1, I), jnp.float32),
        "wo2":   jnp.stack(wo2).astype(wdt),           # (L, I, H)
        "bo2":   jnp.zeros((L, 1, H), jnp.float32),
        "ln2_g": jnp.ones((L, 1, H), jnp.float32),
        "ln2_b": jnp.zeros((L, 1, H), jnp.float32),
    })
    return params


def sbert_forward(params, input_ids1, token_type_ids1, attention_mask1,
                  input_ids2, token_type_ids2, attention_mask2):
    B = input_ids1.shape[0]
    # Batch both sentences through one encoder pass (shared weights, 2B rows).
    ids = jnp.concatenate([input_ids1, input_ids2], axis=0)
    tts = jnp.concatenate([token_type_ids1, token_type_ids2], axis=0)
    ams = jnp.concatenate([attention_mask1, attention_mask2], axis=0)
    pooled = bert_encode(params, ids, tts, ams, CFG)
    return cosine_similarity(pooled[:B], pooled[B:], eps=1e-8)


if __name__ == "__main__":
    B, S = 2, 8
    key = jax.random.PRNGKey(0)
    k_param, k_id1, k_id2, k_tt1, k_tt2 = jax.random.split(key, 5)

    params = init_params(k_param, CFG)

    input_ids1 = jax.random.randint(k_id1, (B, S), 0, CFG["vocab_size"], jnp.int32)
    input_ids2 = jax.random.randint(k_id2, (B, S), 0, CFG["vocab_size"], jnp.int32)
    token_type_ids1 = jax.random.randint(k_tt1, (B, S), 0, CFG["type_vocab"], jnp.int32)
    token_type_ids2 = jax.random.randint(k_tt2, (B, S), 0, CFG["type_vocab"], jnp.int32)
    attention_mask1 = jnp.array([[1, 1, 1, 1, 1, 1, 0, 0],
                                 [1, 1, 1, 1, 1, 1, 1, 1]], jnp.int32)
    attention_mask2 = jnp.array([[1, 1, 1, 1, 1, 1, 1, 0],
                                 [1, 1, 1, 1, 0, 0, 0, 0]], jnp.int32)

    fwd = jax.jit(sbert_forward)
    out = fwd(params, input_ids1, token_type_ids1, attention_mask1,
              input_ids2, token_type_ids2, attention_mask2)
    jax.block_until_ready(out)
    assert out.shape == (B,)
    print("KERNEL_OK")
</pallas_src>

<mosaic_0001>
module attributes {stable_mosaic.version = 11 : i64} {
  func.func @_encoder_kernel(%arg0: memref<32x32xf32, #tpu.memory_space<vmem>>, %arg1: memref<4x8xf32, #tpu.memory_space<vmem>>, %arg2: memref<1x32xf32, #tpu.memory_space<vmem>>, %arg3: memref<1x32xf32, #tpu.memory_space<vmem>>, %arg4: memref<2x32x96xbf16, #tpu.memory_space<vmem>>, %arg5: memref<2x1x96xf32, #tpu.memory_space<vmem>>, %arg6: memref<2x32x32xbf16, #tpu.memory_space<vmem>>, %arg7: memref<2x1x32xf32, #tpu.memory_space<vmem>>, %arg8: memref<2x1x32xf32, #tpu.memory_space<vmem>>, %arg9: memref<2x1x32xf32, #tpu.memory_space<vmem>>, %arg10: memref<2x32x64xbf16, #tpu.memory_space<vmem>>, %arg11: memref<2x1x64xf32, #tpu.memory_space<vmem>>, %arg12: memref<2x64x32xbf16, #tpu.memory_space<vmem>>, %arg13: memref<2x1x32xf32, #tpu.memory_space<vmem>>, %arg14: memref<2x1x32xf32, #tpu.memory_space<vmem>>, %arg15: memref<2x1x32xf32, #tpu.memory_space<vmem>>, %arg16: memref<32x32xbf16, #tpu.memory_space<vmem>>, %arg17: memref<1x32xf32, #tpu.memory_space<vmem>>, %arg18: memref<4x32xf32, #tpu.memory_space<vmem>>, %arg19: memref<32x32xf32, #tpu.memory_space<vmem>>, %arg20: memref<32x96xf32, #tpu.memory_space<vmem>>, %arg21: memref<32x32xf32, #tpu.memory_space<vmem>>) attributes {dimension_semantics = [], scalar_prefetch = 0 : i64, scratch_operands = 3 : i64, tpu.core_type = #tpu.core_type<tc>} {
    %c0 = arith.constant 0 : index
    %c0_0 = arith.constant 0 : index
    %0 = vector.load %arg0[%c0, %c0_0] : memref<32x32xf32, #tpu.memory_space<vmem>>, vector<32x32xf32>
    %c0_1 = arith.constant 0 : index
    %c0_2 = arith.constant 0 : index
    %1 = vector.load %arg2[%c0_1, %c0_2] : memref<1x32xf32, #tpu.memory_space<vmem>>, vector<1x32xf32>
    %c0_3 = arith.constant 0 : index
    %c0_4 = arith.constant 0 : index
    %2 = vector.load %arg3[%c0_3, %c0_4] : memref<1x32xf32, #tpu.memory_space<vmem>>, vector<1x32xf32>
    %cst = arith.constant dense<0.000000e+00> : vector<32xf32>
    %3 = vector.multi_reduction <add>, %0, %cst [1] : vector<32x32xf32> to vector<32xf32>
    %4 = vector.shape_cast %3 : vector<32xf32> to vector<32x1xf32>
    %cst_5 = arith.constant 3.200000e+01 : f32
    %5 = vector.broadcast %cst_5 : f32 to vector<32x1xf32>
    %6 = arith.divf %4, %5 : vector<32x1xf32>
    %7 = vector.broadcast %6 : vector<32x1xf32> to vector<32x32xf32>
    %8 = arith.subf %0, %7 : vector<32x32xf32>
    %9 = arith.mulf %8, %8 : vector<32x32xf32>
    %cst_6 = arith.constant dense<0.000000e+00> : vector<32xf32>
    %10 = vector.multi_reduction <add>, %9, %cst_6 [1] : vector<32x32xf32> to vector<32xf32>
    %11 = vector.shape_cast %10 : vector<32xf32> to vector<32x1xf32>
    %cst_7 = arith.constant 3.200000e+01 : f32
    %12 = vector.broadcast %cst_7 : f32 to vector<32x1xf32>
    %13 = arith.divf %11, %12 : vector<32x1xf32>
    %14 = vector.broadcast %6 : vector<32x1xf32> to vector<32x32xf32>
    %15 = arith.subf %0, %14 : vector<32x32xf32>
    %cst_8 = arith.constant 9.99999996E-13 : f32
    %16 = vector.broadcast %cst_8 : f32 to vector<32x1xf32>
    %17 = arith.addf %13, %16 : vector<32x1xf32>
    %18 = math.rsqrt %17 : vector<32x1xf32>
    %19 = vector.broadcast %18 : vector<32x1xf32> to vector<32x32xf32>
    %20 = arith.mulf %15, %19 : vector<32x32xf32>
    %21 = vector.broadcast %1 : vector<1x32xf32> to vector<32x32xf32>
    %22 = arith.mulf %20, %21 : vector<32x32xf32>
    %23 = vector.broadcast %2 : vector<1x32xf32> to vector<32x32xf32>
    %24 = arith.addf %22, %23 : vector<32x32xf32>
    %c0_9 = arith.constant 0 : index
    %c0_10 = arith.constant 0 : index
    %25 = vector.load %arg19[%c0_9, %c0_10] : memref<32x32xf32, #tpu.memory_space<vmem>>, vector<32x32xf32>
    tpu.vector_store %arg19[%c0_9, %c0_10], %24 {strides = array<i32>} : memref<32x32xf32, #tpu.memory_space<vmem>>, vector<32x32xf32>,
    %c0_11 = arith.constant 0 : index
    %c0_12 = arith.constant 0 : index
    %26 = vector.load %arg19[%c0_11, %c0_12] : memref<32x32xf32, #tpu.memory_space<vmem>>, vector<32x32xf32>
    %c0_13 = arith.constant 0 : index
    %c0_14 = arith.constant 0 : index
    %c0_15 = arith.constant 0 : index
    %27 = vector.load %arg4[%c0_13, %c0_14, %c0_15] : memref<2x32x96xbf16, #tpu.memory_space<vmem>>, vector<1x32x96xbf16>
    %28 = vector.shape_cast %27 : vector<1x32x96xbf16> to vector<32x96xbf16>
    %29 = arith.truncf %26 : vector<32x32xf32> to vector<32x32xbf16>
    %cst_16 = arith.constant dense<0.000000e+00> : vector<32x96xf32>
    %30 = tpu.matmul %29, %28, %cst_16 {dimension_numbers = #tpu.dot_dimension_numbers<[1], [0], [0], [1], [0, 0, 1, 1], [], []>} : vector<32x32xbf16>, vector<32x96xbf16>, vector<32x96xf32> -> vector<32x96xf32>
    %c0_17 = arith.constant 0 : index
    %c0_18 = arith.constant 0 : index
    %c0_19 = arith.constant 0 : index
    %31 = vector.load %arg5[%c0_17, %c0_18, %c0_19] : memref<2x1x96xf32, #tpu.memory_space<vmem>>, vector<1x1x96xf32>
    %32 = vector.shape_cast %31 : vector<1x1x96xf32> to vector<1x96xf32>
    %33 = vector.broadcast %32 : vector<1x96xf32> to vector<32x96xf32>
    %34 = arith.addf %30, %33 : vector<32x96xf32>
    %c0_20 = arith.constant 0 : index
    %c0_21 = arith.constant 0 : index
    %35 = vector.load %arg20[%c0_20, %c0_21] : memref<32x96xf32, #tpu.memory_space<vmem>>, vector<32x96xf32>
    tpu.vector_store %arg20[%c0_20, %c0_21], %34 {strides = array<i32>} : memref<32x96xf32, #tpu.memory_space<vmem>>, vector<32x96xf32>,
    %c0_22 = arith.constant 0 : index
    %c0_23 = arith.constant 0 : index
    %36 = vector.load %arg1[%c0_22, %c0_23] : memref<4x8xf32, #tpu.memory_space<vmem>>, vector<1x8xf32>
    %c0_24 = arith.constant 0 : index
    %c0_25 = arith.constant 0 : index
    %37 = vector.load %arg20[%c0_24, %c0_25] : memref<32x96xf32, #tpu.memory_space<vmem>>, vector<8x16xf32>
    %38 = arith.truncf %37 : vector<8x16xf32> to vector<8x16xbf16>
    %c0_26 = arith.constant 0 : index
    %c32 = arith.constant 32 : index
    %39 = vector.load %arg20[%c0_26, %c32] : memref<32x96xf32, #tpu.memory_space<vmem>>, vector<8x16xf32>
    %40 = arith.truncf %39 : vector<8x16xf32> to vector<8x16xbf16>
    %c0_27 = arith.constant 0 : index
    %c64 = arith.constant 64 : index
    %41 = vector.load %arg20[%c0_27, %c64] : memref<32x96xf32, #tpu.memory_space<vmem>>, vector<8x16xf32>
    %42 = arith.truncf %41 : vector<8x16xf32> to vector<8x16xbf16>
    %cst_28 = arith.constant dense<0.000000e+00> : vector<8x8xf32>
    %43 = tpu.matmul %38, %40, %cst_28 {dimension_numbers = #tpu.dot_dimension_numbers<[1], [1], [0], [0], [0, 0, 1, 0], [], []>} : vector<8x16xbf16>, vector<8x16xbf16>, vector<8x8xf32> -> vector<8x8xf32>
    %cst_29 = arith.constant 2.500000e-01 : f32
    %44 = vector.broadcast %cst_29 : f32 to vector<8x8xf32>
    %45 = arith.mulf %43, %44 : vector<8x8xf32>
    %46 = vector.broadcast %36 : vector<1x8xf32> to vector<8x8xf32>
    %47 = arith.addf %45, %46 : vector<8x8xf32>
    %cst_30 = arith.constant dense<0xFF800000> : vector<8xf32>
    %48 = vector.multi_reduction <maximumf>, %47, %cst_30 [1] : vector<8x8xf32> to vector<8xf32>
    %49 = vector.shape_cast %48 : vector<8xf32> to vector<8x1xf32>
    %50 = vector.broadcast %49 : vector<8x1xf32> to vector<8x8xf32>
    %51 = arith.subf %47, %50 : vector<8x8xf32>
    %52 = math.exp %51 : vector<8x8xf32>
    %cst_31 = arith.constant dense<0.000000e+00> : vector<8xf32>
    %53 = vector.multi_reduction <add>, %52, %cst_31 [1] : vector<8x8xf32> to vector<8xf32>
    %54 = vector.shape_cast %53 : vector<8xf32> to vector<8x1xf32>
    %55 = tpu.reciprocal %54 {approx = true} : vector<8x1xf32> -> vector<8x1xf32>
    %56 = vector.broadcast %55 : vector<8x1xf32> to vector<8x8xf32>
    %57 = arith.mulf %52, %56 : vector<8x8xf32>
    %58 = arith.truncf %57 : vector<8x8xf32> to vector<8x8xbf16>
    %cst_32 = arith.constant dense<0.000000e+00> : vector<8x16xf32>
    %59 = tpu.matmul %58, %42, %cst_32 {dimension_numbers = #tpu.dot_dimension_numbers<[1], [0], [0], [1], [0, 0, 1, 1], [], []>} : vector<8x8xbf16>, vector<8x16xbf16>, vector<8x16xf32> -> vector<8x16xf32>
    %c0_33 = arith.constant 0 : index
    %c0_34 = arith.constant 0 : index
    %60 = vector.load %arg21[%c0_33, %c0_34] : memref<32x32xf32, #tpu.memory_space<vmem>>, vector<8x16xf32>
    tpu.vector_store %arg21[%c0_33, %c0_34], %59 {strides = array<i32>} : memref<32x32xf32, #tpu.memory_space<vmem>>, vector<8x16xf32>,
    %c0_35 = arith.constant 0 : index
    %c16 = arith.constant 16 : index
    %61 = vector.load %arg20[%c0_35, %c16] : memref<32x96xf32, #tpu.memory_space<vmem>>, vector<8x16xf32>
    %62 = arith.truncf %61 : vector<8x16xf32> to vector<8x16xbf16>
    %c0_36 = arith.constant 0 : index
    %c48 = arith.constant 48 : index
    %63 = vector.load %arg20[%c0_36, %c48] : memref<32x96xf32, #tpu.memory_space<vmem>>, vector<8x16xf32>
    %64 = arith.truncf %63 : vector<8x16xf32> to vector<8x16xbf16>
    %c0_37 = arith.constant 0 : index
    %c80 = arith.constant 80 : index
    %65 = vector.load %arg20[%c0_37, %c80] : memref<32x96xf32, #tpu.memory_space<vmem>>, vector<8x16xf32>
    %66 = arith.truncf %65 : vector<8x16xf32> to vector<8x16xbf16>
    %cst_38 = arith.constant dense<0.000000e+00> : vector<8x8xf32>
    %67 = tpu.matmul %62, %64, %cst_38 {dimension_numbers = #tpu.dot_dimension_numbers<[1], [1], [0], [0], [0, 0, 1, 0], [], []>} : vector<8x16xbf16>, vector<8x16xbf16>, vector<8x8xf32> -> vector<8x8xf32>
    %cst_39 = arith.constant 2.500000e-01 : f32
    %68 = vector.broadcast %cst_39 : f32 to vector<8x8xf32>
    %69 = arith.mulf %67, %68 : vector<8x8xf32>
    %70 = vector.broadcast %36 : vector<1x8xf32> to vector<8x8xf32>
    %71 = arith.addf %69, %70 : vector<8x8xf32>
    %cst_40 = arith.constant dense<0xFF800000> : vector<8xf32>
    %72 = vector.multi_reduction <maximumf>, %71, %cst_40 [1] : vector<8x8xf32> to vector<8xf32>
    %73 = vector.shape_cast %72 : vector<8xf32> to vector<8x1xf32>
    %74 = vector.broadcast %73 : vector<8x1xf32> to vector<8x8xf32>
    %75 = arith.subf %71, %74 : vector<8x8xf32>
    %76 = math.exp %75 : vector<8x8xf32>
    %cst_41 = arith.constant dense<0.000000e+00> : vector<8xf32>
    %77 = vector.multi_reduction <add>, %76, %cst_41 [1] : vector<8x8xf32> to vector<8xf32>
    %78 = vector.shape_cast %77 : vector<8xf32> to vector<8x1xf32>
    %79 = tpu.reciprocal %78 {approx = true} : vector<8x1xf32> -> vector<8x1xf32>
    %80 = vector.broadcast %79 : vector<8x1xf32> to vector<8x8xf32>
    %81 = arith.mulf %76, %80 : vector<8x8xf32>
    %82 = arith.truncf %81 : vector<8x8xf32> to vector<8x8xbf16>
    %cst_42 = arith.constant dense<0.000000e+00> : vector<8x16xf32>
    %83 = tpu.matmul %82, %66, %cst_42 {dimension_numbers = #tpu.dot_dimension_numbers<[1], [0], [0], [1], [0, 0, 1, 1], [], []>} : vector<8x8xbf16>, vector<8x16xbf16>, vector<8x16xf32> -> vector<8x16xf32>
    %c0_43 = arith.constant 0 : index
    %c16_44 = arith.constant 16 : index
    %84 = vector.load %arg21[%c0_43, %c16_44] : memref<32x32xf32, #tpu.memory_space<vmem>>, vector<8x16xf32>
    tpu.vector_store %arg21[%c0_43, %c16_44], %83 {strides = array<i32>} : memref<32x32xf32, #tpu.memory_space<vmem>>, vector<8x16xf32>,
    %c1 = arith.constant 1 : index
    %c0_45 = arith.constant 0 : index
    %85 = vector.load %arg1[%c1, %c0_45] : memref<4x8xf32, #tpu.memory_space<vmem>>, vector<1x8xf32>
    %c8 = arith.constant 8 : index
    %c0_46 = arith.constant 0 : index
    %86 = vector.load %arg20[%c8, %c0_46] : memref<32x96xf32, #tpu.memory_space<vmem>>, vector<8x16xf32>
    %87 = arith.truncf %86 : vector<8x16xf32> to vector<8x16xbf16>
    %c8_47 = arith.constant 8 : index
    %c32_48 = arith.constant 32 : index
    %88 = vector.load %arg20[%c8_47, %c32_48] : memref<32x96xf32, #tpu.memory_space<vmem>>, vector<8x16xf32>
    %89 = arith.truncf %88 : vector<8x16xf32> to vector<8x16xbf16>
    %c8_49 = arith.constant 8 : index
    %c64_50 = arith.constant 64 : index
    %90 = vector.load %arg20[%c8_49, %c64_50] : memref<32x96xf32, #tpu.memory_space<vmem>>, vector<8x16xf32>
    %91 = arith.truncf %90 : vector<8x16xf32> to vector<8x16xbf16>
    %cst_51 = arith.constant dense<0.000000e+00> : vector<8x8xf32>
    %92 = tpu.matmul %87, %89, %cst_51 {dimension_numbers = #tpu.dot_dimension_numbers<[1], [1], [0], [0], [0, 0, 1, 0], [], []>} : vector<8x16xbf16>, vector<8x16xbf16>, vector<8x8xf32> -> vector<8x8xf32>
    %cst_52 = arith.constant 2.500000e-01 : f32
    %93 = vector.broadcast %cst_52 : f32 to vector<8x8xf32>
    %94 = arith.mulf %92, %93 : vector<8x8xf32>
    %95 = vector.broadcast %85 : vector<1x8xf32> to vector<8x8xf32>
    %96 = arith.addf %94, %95 : vector<8x8xf32>
    %cst_53 = arith.constant dense<0xFF800000> : vector<8xf32>
    %97 = vector.multi_reduction <maximumf>, %96, %cst_53 [1] : vector<8x8xf32> to vector<8xf32>
    %98 = vector.shape_cast %97 : vector<8xf32> to vector<8x1xf32>
    %99 = vector.broadcast %98 : vector<8x1xf32> to vector<8x8xf32>
    %100 = arith.subf %96, %99 : vector<8x8xf32>
    %101 = math.exp %100 : vector<8x8xf32>
    %cst_54 = arith.constant dense<0.000000e+00> : vector<8xf32>
    %102 = vector.multi_reduction <add>, %101, %cst_54 [1] : vector<8x8xf32> to vector<8xf32>
    %103 = vector.shape_cast %102 : vector<8xf32> to vector<8x1xf32>
    %104 = tpu.reciprocal %103 {approx = true} : vector<8x1xf32> -> vector<8x1xf32>
    %105 = vector.broadcast %104 : vector<8x1xf32> to vector<8x8xf32>
    %106 = arith.mulf %101, %105 : vector<8x8xf32>
    %107 = arith.truncf %106 : vector<8x8xf32> to vector<8x8xbf16>
    %cst_55 = arith.constant dense<0.000000e+00> : vector<8x16xf32>
    %108 = tpu.matmul %107, %91, %cst_55 {dimension_numbers = #tpu.dot_dimension_numbers<[1], [0], [0], [1], [0, 0, 1, 1], [], []>} : vector<8x8xbf16>, vector<8x16xbf16>, vector<8x16xf32> -> vector<8x16xf32>
    %c8_56 = arith.constant 8 : index
    %c0_57 = arith.constant 0 : index
    %109 = vector.load %arg21[%c8_56, %c0_57] : memref<32x32xf32, #tpu.memory_space<vmem>>, vector<8x16xf32>
    tpu.vector_store %arg21[%c8_56, %c0_57], %108 {strides = array<i32>} : memref<32x32xf32, #tpu.memory_space<vmem>>, vector<8x16xf32>,
    %c8_58 = arith.constant 8 : index
    %c16_59 = arith.constant 16 : index
    %110 = vector.load %arg20[%c8_58, %c16_59] : memref<32x96xf32, #tpu.memory_space<vmem>>, vector<8x16xf32>
    %111 = arith.truncf %110 : vector<8x16xf32> to vector<8x16xbf16>
    %c8_60 = arith.constant 8 : index
    %c48_61 = arith.constant 48 : index
    %112 = vector.load %arg20[%c8_60, %c48_61] : memref<32x96xf32, #tpu.memory_space<vmem>>, vector<8x16xf32>
    %113 = arith.truncf %112 : vector<8x16xf32> to vector<8x16xbf16>
    %c8_62 = arith.constant 8 : index
    %c80_63 = arith.constant 80 : index
    %114 = vector.load %arg20[%c8_62, %c80_63] : memref<32x96xf32, #tpu.memory_space<vmem>>, vector<8x16xf32>
    %115 = arith.truncf %114 : vector<8x16xf32> to vector<8x16xbf16>
    %cst_64 = arith.constant dense<0.000000e+00> : vector<8x8xf32>
    %116 = tpu.matmul %111, %113, %cst_64 {dimension_numbers = #tpu.dot_dimension_numbers<[1], [1], [0], [0], [0, 0, 1, 0], [], []>} : vector<8x16xbf16>, vector<8x16xbf16>, vector<8x8xf32> -> vector<8x8xf32>
    %cst_65 = arith.constant 2.500000e-01 : f32
    %117 = vector.broadcast %cst_65 : f32 to vector<8x8xf32>
    %118 = arith.mulf %116, %117 : vector<8x8xf32>
    %119 = vector.broadcast %85 : vector<1x8xf32> to vector<8x8xf32>
    %120 = arith.addf %118, %119 : vector<8x8xf32>
    %cst_66 = arith.constant dense<0xFF800000> : vector<8xf32>
    %121 = vector.multi_reduction <maximumf>, %120, %cst_66 [1] : vector<8x8xf32> to vector<8xf32>
    %122 = vector.shape_cast %121 : vector<8xf32> to vector<8x1xf32>
    %123 = vector.broadcast %122 : vector<8x1xf32> to vector<8x8xf32>
    %124 = arith.subf %120, %123 : vector<8x8xf32>
    %125 = math.exp %124 : vector<8x8xf32>
    %cst_67 = arith.constant dense<0.000000e+00> : vector<8xf32>
    %126 = vector.multi_reduction <add>, %125, %cst_67 [1] : vector<8x8xf32> to vector<8xf32>
    %127 = vector.shape_cast %126 : vector<8xf32> to vector<8x1xf32>
    %128 = tpu.reciprocal %127 {approx = true} : vector<8x1xf32> -> vector<8x1xf32>
    %129 = vector.broadcast %128 : vector<8x1xf32> to vector<8x8xf32>
    %130 = arith.mulf %125, %129 : vector<8x8xf32>
    %131 = arith.truncf %130 : vector<8x8xf32> to vector<8x8xbf16>
    %cst_68 = arith.constant dense<0.000000e+00> : vector<8x16xf32>
    %132 = tpu.matmul %131, %115, %cst_68 {dimension_numbers = #tpu.dot_dimension_numbers<[1], [0], [0], [1], [0, 0, 1, 1], [], []>} : vector<8x8xbf16>, vector<8x16xbf16>, vector<8x16xf32> -> vector<8x16xf32>
    %c8_69 = arith.constant 8 : index
    %c16_70 = arith.constant 16 : index
    %133 = vector.load %arg21[%c8_69, %c16_70] : memref<32x32xf32, #tpu.memory_space<vmem>>, vector<8x16xf32>
    tpu.vector_store %arg21[%c8_69, %c16_70], %132 {strides = array<i32>} : memref<32x32xf32, #tpu.memory_space<vmem>>, vector<8x16xf32>,
    %c2 = arith.constant 2 : index
    %c0_71 = arith.constant 0 : index
    %134 = vector.load %arg1[%c2, %c0_71] : memref<4x8xf32, #tpu.memory_space<vmem>>, vector<1x8xf32>
    %c16_72 = arith.constant 16 : index
    %c0_73 = arith.constant 0 : index
    %135 = vector.load %arg20[%c16_72, %c0_73] : memref<32x96xf32, #tpu.memory_space<vmem>>, vector<8x16xf32>
    %136 = arith.truncf %135 : vector<8x16xf32> to vector<8x16xbf16>
    %c16_74 = arith.constant 16 : index
    %c32_75 = arith.constant 32 : index
    %137 = vector.load %arg20[%c16_74, %c32_75] : memref<32x96xf32, #tpu.memory_space<vmem>>, vector<8x16xf32>
    %138 = arith.truncf %137 : vector<8x16xf32> to vector<8x16xbf16>
    %c16_76 = arith.constant 16 : index
    %c64_77 = arith.constant 64 : index
    %139 = vector.load %arg20[%c16_76, %c64_77] : memref<32x96xf32, #tpu.memory_space<vmem>>, vector<8x16xf32>
    %140 = arith.truncf %139 : vector<8x16xf32> to vector<8x16xbf16>
    %cst_78 = arith.constant dense<0.000000e+00> : vector<8x8xf32>
    %141 = tpu.matmul %136, %138, %cst_78 {dimension_numbers = #tpu.dot_dimension_numbers<[1], [1], [0], [0], [0, 0, 1, 0], [], []>} : vector<8x16xbf16>, vector<8x16xbf16>, vector<8x8xf32> -> vector<8x8xf32>
    %cst_79 = arith.constant 2.500000e-01 : f32
    %142 = vector.broadcast %cst_79 : f32 to vector<8x8xf32>
    %143 = arith.mulf %141, %142 : vector<8x8xf32>
    %144 = vector.broadcast %134 : vector<1x8xf32> to vector<8x8xf32>
    %145 = arith.addf %143, %144 : vector<8x8xf32>
    %cst_80 = arith.constant dense<0xFF800000> : vector<8xf32>
    %146 = vector.multi_reduction <maximumf>, %145, %cst_80 [1] : vector<8x8xf32> to vector<8xf32>
    %147 = vector.shape_cast %146 : vector<8xf32> to vector<8x1xf32>
    %148 = vector.broadcast %147 : vector<8x1xf32> to vector<8x8xf32>
    %149 = arith.subf %145, %148 : vector<8x8xf32>
    %150 = math.exp %149 : vector<8x8xf32>
    %cst_81 = arith.constant dense<0.000000e+00> : vector<8xf32>
    %151 = vector.multi_reduction <add>, %150, %cst_81 [1] : vector<8x8xf32> to vector<8xf32>
    %152 = vector.shape_cast %151 : vector<8xf32> to vector<8x1xf32>
    %153 = tpu.reciprocal %152 {approx = true} : vector<8x1xf32> -> vector<8x1xf32>
    %154 = vector.broadcast %153 : vector<8x1xf32> to vector<8x8xf32>
    %155 = arith.mulf %150, %154 : vector<8x8xf32>
    %156 = arith.truncf %155 : vector<8x8xf32> to vector<8x8xbf16>
    %cst_82 = arith.constant dense<0.000000e+00> : vector<8x16xf32>
    %157 = tpu.matmul %156, %140, %cst_82 {dimension_numbers = #tpu.dot_dimension_numbers<[1], [0], [0], [1], [0, 0, 1, 1], [], []>} : vector<8x8xbf16>, vector<8x16xbf16>, vector<8x16xf32> -> vector<8x16xf32>
    %c16_83 = arith.constant 16 : index
    %c0_84 = arith.constant 0 : index
    %158 = vector.load %arg21[%c16_83, %c0_84] : memref<32x32xf32, #tpu.memory_space<vmem>>, vector<8x16xf32>
    tpu.vector_store %arg21[%c16_83, %c0_84], %157 {strides = array<i32>} : memref<32x32xf32, #tpu.memory_space<vmem>>, vector<8x16xf32>,
    %c16_85 = arith.constant 16 : index
    %c16_86 = arith.constant 16 : index
    %159 = vector.load %arg20[%c16_85, %c16_86] : memref<32x96xf32, #tpu.memory_space<vmem>>, vector<8x16xf32>
    %160 = arith.truncf %159 : vector<8x16xf32> to vector<8x16xbf16>
    %c16_87 = arith.constant 16 : index
    %c48_88 = arith.constant 48 : index
    %161 = vector.load %arg20[%c16_87, %c48_88] : memref<32x96xf32, #tpu.memory_space<vmem>>, vector<8x16xf32>
    %162 = arith.truncf %161 : vector<8x16xf32> to vector<8x16xbf16>
    %c16_89 = arith.constant 16 : index
    %c80_90 = arith.constant 80 : index
    %163 = vector.load %arg20[%c16_89, %c80_90] : memref<32x96xf32, #tpu.memory_space<vmem>>, vector<8x16xf32>
    %164 = arith.truncf %163 : vector<8x16xf32> to vector<8x16xbf16>
    %cst_91 = arith.constant dense<0.000000e+00> : vector<8x8xf32>
    %165 = tpu.matmul %160, %162, %cst_91 {dimension_numbers = #tpu.dot_dimension_numbers<[1], [1], [0], [0], [0, 0, 1, 0], [], []>} : vector<8x16xbf16>, vector<8x16xbf16>, vector<8x8xf32> -> vector<8x8xf32>
    %cst_92 = arith.constant 2.500000e-01 : f32
    %166 = vector.broadcast %cst_92 : f32 to vector<8x8xf32>
    %167 = arith.mulf %165, %166 : vector<8x8xf32>
    %168 = vector.broadcast %134 : vector<1x8xf32> to vector<8x8xf32>
    %169 = arith.addf %167, %168 : vector<8x8xf32>
    %cst_93 = arith.constant dense<0xFF800000> : vector<8xf32>
    %170 = vector.multi_reduction <maximumf>, %169, %cst_93 [1] : vector<8x8xf32> to vector<8xf32>
    %171 = vector.shape_cast %170 : vector<8xf32> to vector<8x1xf32>
    %172 = vector.broadcast %171 : vector<8x1xf32> to vector<8x8xf32>
    %173 = arith.subf %169, %172 : vector<8x8xf32>
    %174 = math.exp %173 : vector<8x8xf32>
    %cst_94 = arith.constant dense<0.000000e+00> : vector<8xf32>
    %175 = vector.multi_reduction <add>, %174, %cst_94 [1] : vector<8x8xf32> to vector<8xf32>
    %176 = vector.shape_cast %175 : vector<8xf32> to vector<8x1xf32>
    %177 = tpu.reciprocal %176 {approx = true} : vector<8x1xf32> -> vector<8x1xf32>
    %178 = vector.broadcast %177 : vector<8x1xf32> to vector<8x8xf32>
    %179 = arith.mulf %174, %178 : vector<8x8xf32>
    %180 = arith.truncf %179 : vector<8x8xf32> to vector<8x8xbf16>
    %cst_95 = arith.constant dense<0.000000e+00> : vector<8x16xf32>
    %181 = tpu.matmul %180, %164, %cst_95 {dimension_numbers = #tpu.dot_dimension_numbers<[1], [0], [0], [1], [0, 0, 1, 1], [], []>} : vector<8x8xbf16>, vector<8x16xbf16>, vector<8x16xf32> -> vector<8x16xf32>
    %c16_96 = arith.constant 16 : index
    %c16_97 = arith.constant 16 : index
    %182 = vector.load %arg21[%c16_96, %c16_97] : memref<32x32xf32, #tpu.memory_space<vmem>>, vector<8x16xf32>
    tpu.vector_store %arg21[%c16_96, %c16_97], %181 {strides = array<i32>} : memref<32x32xf32, #tpu.memory_space<vmem>>, vector<8x16xf32>,
    %c3 = arith.constant 3 : index
    %c0_98 = arith.constant 0 : index
    %183 = vector.load %arg1[%c3, %c0_98] : memref<4x8xf32, #tpu.memory_space<vmem>>, vector<1x8xf32>
    %c24 = arith.constant 24 : index
    %c0_99 = arith.constant 0 : index
    %184 = vector.load %arg20[%c24, %c0_99] : memref<32x96xf32, #tpu.memory_space<vmem>>, vector<8x16xf32>
    %185 = arith.truncf %184 : vector<8x16xf32> to vector<8x16xbf16>
    %c24_100 = arith.constant 24 : index
    %c32_101 = arith.constant 32 : index
    %186 = vector.load %arg20[%c24_100, %c32_101] : memref<32x96xf32, #tpu.memory_space<vmem>>, vector<8x16xf32>
    %187 = arith.truncf %186 : vector<8x16xf32> to vector<8x16xbf16>
    %c24_102 = arith.constant 24 : index
    %c64_103 = arith.constant 64 : index
    %188 = vector.load %arg20[%c24_102, %c64_103] : memref<32x96xf32, #tpu.memory_space<vmem>>, vector<8x16xf32>
    %189 = arith.truncf %188 : vector<8x16xf32> to vector<8x16xbf16>
    %cst_104 = arith.constant dense<0.000000e+00> : vector<8x8xf32>
    %190 = tpu.matmul %185, %187, %cst_104 {dimension_numbers = #tpu.dot_dimension_numbers<[1], [1], [0], [0], [0, 0, 1, 0], [], []>} : vector<8x16xbf16>, vector<8x16xbf16>, vector<8x8xf32> -> vector<8x8xf32>
    %cst_105 = arith.constant 2.500000e-01 : f32
    %191 = vector.broadcast %cst_105 : f32 to vector<8x8xf32>
    %192 = arith.mulf %190, %191 : vector<8x8xf32>
    %193 = vector.broadcast %183 : vector<1x8xf32> to vector<8x8xf32>
    %194 = arith.addf %192, %193 : vector<8x8xf32>
    %cst_106 = arith.constant dense<0xFF800000> : vector<8xf32>
    %195 = vector.multi_reduction <maximumf>, %194, %cst_106 [1] : vector<8x8xf32> to vector<8xf32>
    %196 = vector.shape_cast %195 : vector<8xf32> to vector<8x1xf32>
    %197 = vector.broadcast %196 : vector<8x1xf32> to vector<8x8xf32>
    %198 = arith.subf %194, %197 : vector<8x8xf32>
    %199 = math.exp %198 : vector<8x8xf32>
    %cst_107 = arith.constant dense<0.000000e+00> : vector<8xf32>
    %200 = vector.multi_reduction <add>, %199, %cst_107 [1] : vector<8x8xf32> to vector<8xf32>
    %201 = vector.shape_cast %200 : vector<8xf32> to vector<8x1xf32>
    %202 = tpu.reciprocal %201 {approx = true} : vector<8x1xf32> -> vector<8x1xf32>
    %203 = vector.broadcast %202 : vector<8x1xf32> to vector<8x8xf32>
    %204 = arith.mulf %199, %203 : vector<8x8xf32>
    %205 = arith.truncf %204 : vector<8x8xf32> to vector<8x8xbf16>
    %cst_108 = arith.constant dense<0.000000e+00> : vector<8x16xf32>
    %206 = tpu.matmul %205, %189, %cst_108 {dimension_numbers = #tpu.dot_dimension_numbers<[1], [0], [0], [1], [0, 0, 1, 1], [], []>} : vector<8x8xbf16>, vector<8x16xbf16>, vector<8x16xf32> -> vector<8x16xf32>
    %c24_109 = arith.constant 24 : index
    %c0_110 = arith.constant 0 : index
    %207 = vector.load %arg21[%c24_109, %c0_110] : memref<32x32xf32, #tpu.memory_space<vmem>>, vector<8x16xf32>
    tpu.vector_store %arg21[%c24_109, %c0_110], %206 {strides = array<i32>} : memref<32x32xf32, #tpu.memory_space<vmem>>, vector<8x16xf32>,
    %c24_111 = arith.constant 24 : index
    %c16_112 = arith.constant 16 : index
    %208 = vector.load %arg20[%c24_111, %c16_112] : memref<32x96xf32, #tpu.memory_space<vmem>>, vector<8x16xf32>
    %209 = arith.truncf %208 : vector<8x16xf32> to vector<8x16xbf16>
    %c24_113 = arith.constant 24 : index
    %c48_114 = arith.constant 48 : index
    %210 = vector.load %arg20[%c24_113, %c48_114] : memref<32x96xf32, #tpu.memory_space<vmem>>, vector<8x16xf32>
    %211 = arith.truncf %210 : vector<8x16xf32> to vector<8x16xbf16>
    %c24_115 = arith.constant 24 : index
    %c80_116 = arith.constant 80 : index
    %212 = vector.load %arg20[%c24_115, %c80_116] : memref<32x96xf32, #tpu.memory_space<vmem>>, vector<8x16xf32>
    %213 = arith.truncf %212 : vector<8x16xf32> to vector<8x16xbf16>
    %cst_117 = arith.constant dense<0.000000e+00> : vector<8x8xf32>
    %214 = tpu.matmul %209, %211, %cst_117 {dimension_numbers = #tpu.dot_dimension_numbers<[1], [1], [0], [0], [0, 0, 1, 0], [], []>} : vector<8x16xbf16>, vector<8x16xbf16>, vector<8x8xf32> -> vector<8x8xf32>
    %cst_118 = arith.constant 2.500000e-01 : f32
    %215 = vector.broadcast %cst_118 : f32 to vector<8x8xf32>
    %216 = arith.mulf %214, %215 : vector<8x8xf32>
    %217 = vector.broadcast %183 : vector<1x8xf32> to vector<8x8xf32>
    %218 = arith.addf %216, %217 : vector<8x8xf32>
    %cst_119 = arith.constant dense<0xFF800000> : vector<8xf32>
    %219 = vector.multi_reduction <maximumf>, %218, %cst_119 [1] : vector<8x8xf32> to vector<8xf32>
    %220 = vector.shape_cast %219 : vector<8xf32> to vector<8x1xf32>
    %221 = vector.broadcast %220 : vector<8x1xf32> to vector<8x8xf32>
    %222 = arith.subf %218, %221 : vector<8x8xf32>
    %223 = math.exp %222 : vector<8x8xf32>
    %cst_120 = arith.constant dense<0.000000e+00> : vector<8xf32>
    %224 = vector.multi_reduction <add>, %223, %cst_120 [1] : vector<8x8xf32> to vector<8xf32>
    %225 = vector.shape_cast %224 : vector<8xf32> to vector<8x1xf32>
    %226 = tpu.reciprocal %225 {approx = true} : vector<8x1xf32> -> vector<8x1xf32>
    %227 = vector.broadcast %226 : vector<8x1xf32> to vector<8x8xf32>
    %228 = arith.mulf %223, %227 : vector<8x8xf32>
    %229 = arith.truncf %228 : vector<8x8xf32> to vector<8x8xbf16>
    %cst_121 = arith.constant dense<0.000000e+00> : vector<8x16xf32>
    %230 = tpu.matmul %229, %213, %cst_121 {dimension_numbers = #tpu.dot_dimension_numbers<[1], [0], [0], [1], [0, 0, 1, 1], [], []>} : vector<8x8xbf16>, vector<8x16xbf16>, vector<8x16xf32> -> vector<8x16xf32>
    %c24_122 = arith.constant 24 : index
    %c16_123 = arith.constant 16 : index
    %231 = vector.load %arg21[%c24_122, %c16_123] : memref<32x32xf32, #tpu.memory_space<vmem>>, vector<8x16xf32>
    tpu.vector_store %arg21[%c24_122, %c16_123], %230 {strides = array<i32>} : memref<32x32xf32, #tpu.memory_space<vmem>>, vector<8x16xf32>,
    %c0_124 = arith.constant 0 : index
    %c0_125 = arith.constant 0 : index
    %232 = vector.load %arg21[%c0_124, %c0_125] : memref<32x32xf32, #tpu.memory_space<vmem>>, vector<32x32xf32>
    %c0_126 = arith.constant 0 : index
    %c0_127 = arith.constant 0 : index
    %c0_128 = arith.constant 0 : index
    %233 = vector.load %arg6[%c0_126, %c0_127, %c0_128] : memref<2x32x32xbf16, #tpu.memory_space<vmem>>, vector<1x32x32xbf16>
    %234 = vector.shape_cast %233 : vector<1x32x32xbf16> to vector<32x32xbf16>
    %235 = arith.truncf %232 : vector<32x32xf32> to vector<32x32xbf16>
    %cst_129 = arith.constant dense<0.000000e+00> : vector<32x32xf32>
    %236 = tpu.matmul %235, %234, %cst_129 {dimension_numbers = #tpu.dot_dimension_numbers<[1], [0], [0], [1], [0, 0, 1, 1], [], []>} : vector<32x32xbf16>, vector<32x32xbf16>, vector<32x32xf32> -> vector<32x32xf32>
    %c0_130 = arith.constant 0 : index
    %c0_131 = arith.constant 0 : index
    %c0_132 = arith.constant 0 : index
    %237 = vector.load %arg7[%c0_130, %c0_131, %c0_132] : memref<2x1x32xf32, #tpu.memory_space<vmem>>, vector<1x1x32xf32>
    %238 = vector.shape_cast %237 : vector<1x1x32xf32> to vector<1x32xf32>
    %239 = vector.broadcast %238 : vector<1x32xf32> to vector<32x32xf32>
    %240 = arith.addf %236, %239 : vector<32x32xf32>
    %241 = arith.addf %240, %26 : vector<32x32xf32>
    %c0_133 = arith.constant 0 : index
    %c0_134 = arith.constant 0 : index
    %c0_135 = arith.constant 0 : index
    %242 = vector.load %arg8[%c0_133, %c0_134, %c0_135] : memref<2x1x32xf32, #tpu.memory_space<vmem>>, vector<1x1x32xf32>
    %243 = vector.shape_cast %242 : vector<1x1x32xf32> to vector<1x32xf32>
    %c0_136 = arith.constant 0 : index
    %c0_137 = arith.constant 0 : index
    %c0_138 = arith.constant 0 : index
    %244 = vector.load %arg9[%c0_136, %c0_137, %c0_138] : memref<2x1x32xf32, #tpu.memory_space<vmem>>, vector<1x1x32xf32>
    %245 = vector.shape_cast %244 : vector<1x1x32xf32> to vector<1x32xf32>
    %cst_139 = arith.constant dense<0.000000e+00> : vector<32xf32>
    %246 = vector.multi_reduction <add>, %241, %cst_139 [1] : vector<32x32xf32> to vector<32xf32>
    %247 = vector.shape_cast %246 : vector<32xf32> to vector<32x1xf32>
    %cst_140 = arith.constant 3.200000e+01 : f32
    %248 = vector.broadcast %cst_140 : f32 to vector<32x1xf32>
    %249 = arith.divf %247, %248 : vector<32x1xf32>
    %250 = vector.broadcast %249 : vector<32x1xf32> to vector<32x32xf32>
    %251 = arith.subf %241, %250 : vector<32x32xf32>
    %252 = arith.mulf %251, %251 : vector<32x32xf32>
    %cst_141 = arith.constant dense<0.000000e+00> : vector<32xf32>
    %253 = vector.multi_reduction <add>, %252, %cst_141 [1] : vector<32x32xf32> to vector<32xf32>
    %254 = vector.shape_cast %253 : vector<32xf32> to vector<32x1xf32>
    %cst_142 = arith.constant 3.200000e+01 : f32
    %255 = vector.broadcast %cst_142 : f32 to vector<32x1xf32>
    %256 = arith.divf %254, %255 : vector<32x1xf32>
    %257 = vector.broadcast %249 : vector<32x1xf32> to vector<32x32xf32>
    %258 = arith.subf %241, %257 : vector<32x32xf32>
    %cst_143 = arith.constant 9.99999996E-13 : f32
    %259 = vector.broadcast %cst_143 : f32 to vector<32x1xf32>
    %260 = arith.addf %256, %259 : vector<32x1xf32>
    %261 = math.rsqrt %260 : vector<32x1xf32>
    %262 = vector.broadcast %261 : vector<32x1xf32> to vector<32x32xf32>
    %263 = arith.mulf %258, %262 : vector<32x32xf32>
    %264 = vector.broadcast %243 : vector<1x32xf32> to vector<32x32xf32>
    %265 = arith.mulf %263, %264 : vector<32x32xf32>
    %266 = vector.broadcast %245 : vector<1x32xf32> to vector<32x32xf32>
    %267 = arith.addf %265, %266 : vector<32x32xf32>
    %c0_144 = arith.constant 0 : index
    %c0_145 = arith.constant 0 : index
    %268 = vector.load %arg19[%c0_144, %c0_145] : memref<32x32xf32, #tpu.memory_space<vmem>>, vector<32x32xf32>
    tpu.vector_store %arg19[%c0_144, %c0_145], %267 {strides = array<i32>} : memref<32x32xf32, #tpu.memory_space<vmem>>, vector<32x32xf32>,
    %c0_146 = arith.constant 0 : index
    %c0_147 = arith.constant 0 : index
    %c0_148 = arith.constant 0 : index
    %269 = vector.load %arg10[%c0_146, %c0_147, %c0_148] : memref<2x32x64xbf16, #tpu.memory_space<vmem>>, vector<1x32x64xbf16>
    %270 = vector.shape_cast %269 : vector<1x32x64xbf16> to vector<32x64xbf16>
    %271 = arith.truncf %267 : vector<32x32xf32> to vector<32x32xbf16>
    %cst_149 = arith.constant dense<0.000000e+00> : vector<32x64xf32>
    %272 = tpu.matmul %271, %270, %cst_149 {dimension_numbers = #tpu.dot_dimension_numbers<[1], [0], [0], [1], [0, 0, 1, 1], [], []>} : vector<32x32xbf16>, vector<32x64xbf16>, vector<32x64xf32> -> vector<32x64xf32>
    %c0_150 = arith.constant 0 : index
    %c0_151 = arith.constant 0 : index
    %c0_152 = arith.constant 0 : index
    %273 = vector.load %arg11[%c0_150, %c0_151, %c0_152] : memref<2x1x64xf32, #tpu.memory_space<vmem>>, vector<1x1x64xf32>
    %274 = vector.shape_cast %273 : vector<1x1x64xf32> to vector<1x64xf32>
    %275 = vector.broadcast %274 : vector<1x64xf32> to vector<32x64xf32>
    %276 = arith.addf %272, %275 : vector<32x64xf32>
    %cst_153 = arith.constant 5.000000e-01 : f32
    %277 = vector.broadcast %cst_153 : f32 to vector<32x64xf32>
    %278 = arith.mulf %277, %276 : vector<32x64xf32>
    %cst_154 = arith.constant 0.707106769 : f32
    %279 = vector.broadcast %cst_154 : f32 to vector<32x64xf32>
    %280 = arith.mulf %276, %279 : vector<32x64xf32>
    %281 = math.erf %280 : vector<32x64xf32>
    %cst_155 = arith.constant 1.000000e+00 : f32
    %282 = vector.broadcast %cst_155 : f32 to vector<32x64xf32>
    %283 = arith.addf %282, %281 : vector<32x64xf32>
    %284 = arith.mulf %278, %283 : vector<32x64xf32>
    %c0_156 = arith.constant 0 : index
    %c0_157 = arith.constant 0 : index
    %c0_158 = arith.constant 0 : index
    %285 = vector.load %arg12[%c0_156, %c0_157, %c0_158] : memref<2x64x32xbf16, #tpu.memory_space<vmem>>, vector<1x64x32xbf16>
    %286 = vector.shape_cast %285 : vector<1x64x32xbf16> to vector<64x32xbf16>
    %287 = arith.truncf %284 : vector<32x64xf32> to vector<32x64xbf16>
    %cst_159 = arith.constant dense<0.000000e+00> : vector<32x32xf32>
    %288 = tpu.matmul %287, %286, %cst_159 {dimension_numbers = #tpu.dot_dimension_numbers<[1], [0], [0], [1], [0, 0, 1, 1], [], []>} : vector<32x64xbf16>, vector<64x32xbf16>, vector<32x32xf32> -> vector<32x32xf32>
    %c0_160 = arith.constant 0 : index
    %c0_161 = arith.constant 0 : index
    %c0_162 = arith.constant 0 : index
    %289 = vector.load %arg13[%c0_160, %c0_161, %c0_162] : memref<2x1x32xf32, #tpu.memory_space<vmem>>, vector<1x1x32xf32>
    %290 = vector.shape_cast %289 : vector<1x1x32xf32> to vector<1x32xf32>
    %291 = vector.broadcast %290 : vector<1x32xf32> to vector<32x32xf32>
    %292 = arith.addf %288, %291 : vector<32x32xf32>
    %293 = arith.addf %292, %267 : vector<32x32xf32>
    %c0_163 = arith.constant 0 : index
    %c0_164 = arith.constant 0 : index
    %c0_165 = arith.constant 0 : index
    %294 = vector.load %arg14[%c0_163, %c0_164, %c0_165] : memref<2x1x32xf32, #tpu.memory_space<vmem>>, vector<1x1x32xf32>
    %295 = vector.shape_cast %294 : vector<1x1x32xf32> to vector<1x32xf32>
    %c0_166 = arith.constant 0 : index
    %c0_167 = arith.constant 0 : index
    %c0_168 = arith.constant 0 : index
    %296 = vector.load %arg15[%c0_166, %c0_167, %c0_168] : memref<2x1x32xf32, #tpu.memory_space<vmem>>, vector<1x1x32xf32>
    %297 = vector.shape_cast %296 : vector<1x1x32xf32> to vector<1x32xf32>
    %cst_169 = arith.constant dense<0.000000e+00> : vector<32xf32>
    %298 = vector.multi_reduction <add>, %293, %cst_169 [1] : vector<32x32xf32> to vector<32xf32>
    %299 = vector.shape_cast %298 : vector<32xf32> to vector<32x1xf32>
    %cst_170 = arith.constant 3.200000e+01 : f32
    %300 = vector.broadcast %cst_170 : f32 to vector<32x1xf32>
    %301 = arith.divf %299, %300 : vector<32x1xf32>
    %302 = vector.broadcast %301 : vector<32x1xf32> to vector<32x32xf32>
    %303 = arith.subf %293, %302 : vector<32x32xf32>
    %304 = arith.mulf %303, %303 : vector<32x32xf32>
    %cst_171 = arith.constant dense<0.000000e+00> : vector<32xf32>
    %305 = vector.multi_reduction <add>, %304, %cst_171 [1] : vector<32x32xf32> to vector<32xf32>
    %306 = vector.shape_cast %305 : vector<32xf32> to vector<32x1xf32>
    %cst_172 = arith.constant 3.200000e+01 : f32
    %307 = vector.broadcast %cst_172 : f32 to vector<32x1xf32>
    %308 = arith.divf %306, %307 : vector<32x1xf32>
    %309 = vector.broadcast %301 : vector<32x1xf32> to vector<32x32xf32>
    %310 = arith.subf %293, %309 : vector<32x32xf32>
    %cst_173 = arith.constant 9.99999996E-13 : f32
    %311 = vector.broadcast %cst_173 : f32 to vector<32x1xf32>
    %312 = arith.addf %308, %311 : vector<32x1xf32>
    %313 = math.rsqrt %312 : vector<32x1xf32>
    %314 = vector.broadcast %313 : vector<32x1xf32> to vector<32x32xf32>
    %315 = arith.mulf %310, %314 : vector<32x32xf32>
    %316 = vector.broadcast %295 : vector<1x32xf32> to vector<32x32xf32>
    %317 = arith.mulf %315, %316 : vector<32x32xf32>
    %318 = vector.broadcast %297 : vector<1x32xf32> to vector<32x32xf32>
    %319 = arith.addf %317, %318 : vector<32x32xf32>
    %c0_174 = arith.constant 0 : index
    %c0_175 = arith.constant 0 : index
    %320 = vector.load %arg19[%c0_174, %c0_175] : memref<32x32xf32, #tpu.memory_space<vmem>>, vector<32x32xf32>
    tpu.vector_store %arg19[%c0_174, %c0_175], %319 {strides = array<i32>} : memref<32x32xf32, #tpu.memory_space<vmem>>, vector<32x32xf32>,
    %c0_176 = arith.constant 0 : index
    %c0_177 = arith.constant 0 : index
    %321 = vector.load %arg19[%c0_176, %c0_177] : memref<32x32xf32, #tpu.memory_space<vmem>>, vector<32x32xf32>
    %c1_178 = arith.constant 1 : index
    %c0_179 = arith.constant 0 : index
    %c0_180 = arith.constant 0 : index
    %322 = vector.load %arg4[%c1_178, %c0_179, %c0_180] : memref<2x32x96xbf16, #tpu.memory_space<vmem>>, vector<1x32x96xbf16>
    %323 = vector.shape_cast %322 : vector<1x32x96xbf16> to vector<32x96xbf16>
    %324 = arith.truncf %321 : vector<32x32xf32> to vector<32x32xbf16>
    %cst_181 = arith.constant dense<0.000000e+00> : vector<32x96xf32>
    %325 = tpu.matmul %324, %323, %cst_181 {dimension_numbers = #tpu.dot_dimension_numbers<[1], [0], [0], [1], [0, 0, 1, 1], [], []>} : vector<32x32xbf16>, vector<32x96xbf16>, vector<32x96xf32> -> vector<32x96xf32>
    %c1_182 = arith.constant 1 : index
    %c0_183 = arith.constant 0 : index
    %c0_184 = arith.constant 0 : index
    %326 = vector.load %arg5[%c1_182, %c0_183, %c0_184] : memref<2x1x96xf32, #tpu.memory_space<vmem>>, vector<1x1x96xf32>
    %327 = vector.shape_cast %326 : vector<1x1x96xf32> to vector<1x96xf32>
    %328 = vector.broadcast %327 : vector<1x96xf32> to vector<32x96xf32>
    %329 = arith.addf %325, %328 : vector<32x96xf32>
    %c0_185 = arith.constant 0 : index
    %c0_186 = arith.constant 0 : index
    %330 = vector.load %arg20[%c0_185, %c0_186] : memref<32x96xf32, #tpu.memory_space<vmem>>, vector<32x96xf32>
    tpu.vector_store %arg20[%c0_185, %c0_186], %329 {strides = array<i32>} : memref<32x96xf32, #tpu.memory_space<vmem>>, vector<32x96xf32>,
    %c0_187 = arith.constant 0 : index
    %c0_188 = arith.constant 0 : index
    %331 = vector.load %arg1[%c0_187, %c0_188] : memref<4x8xf32, #tpu.memory_space<vmem>>, vector<1x8xf32>
    %c0_189 = arith.constant 0 : index
    %c0_190 = arith.constant 0 : index
    %332 = vector.load %arg20[%c0_189, %c0_190] : memref<32x96xf32, #tpu.memory_space<vmem>>, vector<8x16xf32>
    %333 = arith.truncf %332 : vector<8x16xf32> to vector<8x16xbf16>
    %c0_191 = arith.constant 0 : index
    %c32_192 = arith.constant 32 : index
    %334 = vector.load %arg20[%c0_191, %c32_192] : memref<32x96xf32, #tpu.memory_space<vmem>>, vector<8x16xf32>
    %335 = arith.truncf %334 : vector<8x16xf32> to vector<8x16xbf16>
    %c0_193 = arith.constant 0 : index
    %c64_194 = arith.constant 64 : index
    %336 = vector.load %arg20[%c0_193, %c64_194] : memref<32x96xf32, #tpu.memory_space<vmem>>, vector<8x16xf32>
    %337 = arith.truncf %336 : vector<8x16xf32> to vector<8x16xbf16>
    %cst_195 = arith.constant dense<0.000000e+00> : vector<8x8xf32>
    %338 = tpu.matmul %333, %335, %cst_195 {dimension_numbers = #tpu.dot_dimension_numbers<[1], [1], [0], [0], [0, 0, 1, 0], [], []>} : vector<8x16xbf16>, vector<8x16xbf16>, vector<8x8xf32> -> vector<8x8xf32>
    %cst_196 = arith.constant 2.500000e-01 : f32
    %339 = vector.broadcast %cst_196 : f32 to vector<8x8xf32>
    %340 = arith.mulf %338, %339 : vector<8x8xf32>
    %341 = vector.broadcast %331 : vector<1x8xf32> to vector<8x8xf32>
    %342 = arith.addf %340, %341 : vector<8x8xf32>
    %cst_197 = arith.constant dense<0xFF800000> : vector<8xf32>
    %343 = vector.multi_reduction <maximumf>, %342, %cst_197 [1] : vector<8x8xf32> to vector<8xf32>
    %344 = vector.shape_cast %343 : vector<8xf32> to vector<8x1xf32>
    %345 = vector.broadcast %344 : vector<8x1xf32> to vector<8x8xf32>
    %346 = arith.subf %342, %345 : vector<8x8xf32>
    %347 = math.exp %346 : vector<8x8xf32>
    %cst_198 = arith.constant dense<0.000000e+00> : vector<8xf32>
    %348 = vector.multi_reduction <add>, %347, %cst_198 [1] : vector<8x8xf32> to vector<8xf32>
    %349 = vector.shape_cast %348 : vector<8xf32> to vector<8x1xf32>
    %350 = tpu.reciprocal %349 {approx = true} : vector<8x1xf32> -> vector<8x1xf32>
    %351 = vector.broadcast %350 : vector<8x1xf32> to vector<8x8xf32>
    %352 = arith.mulf %347, %351 : vector<8x8xf32>
    %353 = arith.truncf %352 : vector<8x8xf32> to vector<8x8xbf16>
    %cst_199 = arith.constant dense<0.000000e+00> : vector<8x16xf32>
    %354 = tpu.matmul %353, %337, %cst_199 {dimension_numbers = #tpu.dot_dimension_numbers<[1], [0], [0], [1], [0, 0, 1, 1], [], []>} : vector<8x8xbf16>, vector<8x16xbf16>, vector<8x16xf32> -> vector<8x16xf32>
    %c0_200 = arith.constant 0 : index
    %c0_201 = arith.constant 0 : index
    %355 = vector.load %arg21[%c0_200, %c0_201] : memref<32x32xf32, #tpu.memory_space<vmem>>, vector<8x16xf32>
    tpu.vector_store %arg21[%c0_200, %c0_201], %354 {strides = array<i32>} : memref<32x32xf32, #tpu.memory_space<vmem>>, vector<8x16xf32>,
    %c0_202 = arith.constant 0 : index
    %c16_203 = arith.constant 16 : index
    %356 = vector.load %arg20[%c0_202, %c16_203] : memref<32x96xf32, #tpu.memory_space<vmem>>, vector<8x16xf32>
    %357 = arith.truncf %356 : vector<8x16xf32> to vector<8x16xbf16>
    %c0_204 = arith.constant 0 : index
    %c48_205 = arith.constant 48 : index
    %358 = vector.load %arg20[%c0_204, %c48_205] : memref<32x96xf32, #tpu.memory_space<vmem>>, vector<8x16xf32>
    %359 = arith.truncf %358 : vector<8x16xf32> to vector<8x16xbf16>
    %c0_206 = arith.constant 0 : index
    %c80_207 = arith.constant 80 : index
    %360 = vector.load %arg20[%c0_206, %c80_207] : memref<32x96xf32, #tpu.memory_space<vmem>>, vector<8x16xf32>
    %361 = arith.truncf %360 : vector<8x16xf32> to vector<8x16xbf16>
    %cst_208 = arith.constant dense<0.000000e+00> : vector<8x8xf32>
    %362 = tpu.matmul %357, %359, %cst_208 {dimension_numbers = #tpu.dot_dimension_numbers<[1], [1], [0], [0], [0, 0, 1, 0], [], []>} : vector<8x16xbf16>, vector<8x16xbf16>, vector<8x8xf32> -> vector<8x8xf32>
    %cst_209 = arith.constant 2.500000e-01 : f32
    %363 = vector.broadcast %cst_209 : f32 to vector<8x8xf32>
    %364 = arith.mulf %362, %363 : vector<8x8xf32>
    %365 = vector.broadcast %331 : vector<1x8xf32> to vector<8x8xf32>
    %366 = arith.addf %364, %365 : vector<8x8xf32>
    %cst_210 = arith.constant dense<0xFF800000> : vector<8xf32>
    %367 = vector.multi_reduction <maximumf>, %366, %cst_210 [1] : vector<8x8xf32> to vector<8xf32>
    %368 = vector.shape_cast %367 : vector<8xf32> to vector<8x1xf32>
    %369 = vector.broadcast %368 : vector<8x1xf32> to vector<8x8xf32>
    %370 = arith.subf %366, %369 : vector<8x8xf32>
    %371 = math.exp %370 : vector<8x8xf32>
    %cst_211 = arith.constant dense<0.000000e+00> : vector<8xf32>
    %372 = vector.multi_reduction <add>, %371, %cst_211 [1] : vector<8x8xf32> to vector<8xf32>
    %373 = vector.shape_cast %372 : vector<8xf32> to vector<8x1xf32>
    %374 = tpu.reciprocal %373 {approx = true} : vector<8x1xf32> -> vector<8x1xf32>
    %375 = vector.broadcast %374 : vector<8x1xf32> to vector<8x8xf32>
    %376 = arith.mulf %371, %375 : vector<8x8xf32>
    %377 = arith.truncf %376 : vector<8x8xf32> to vector<8x8xbf16>
    %cst_212 = arith.constant dense<0.000000e+00> : vector<8x16xf32>
    %378 = tpu.matmul %377, %361, %cst_212 {dimension_numbers = #tpu.dot_dimension_numbers<[1], [0], [0], [1], [0, 0, 1, 1], [], []>} : vector<8x8xbf16>, vector<8x16xbf16>, vector<8x16xf32> -> vector<8x16xf32>
    %c0_213 = arith.constant 0 : index
    %c16_214 = arith.constant 16 : index
    %379 = vector.load %arg21[%c0_213, %c16_214] : memref<32x32xf32, #tpu.memory_space<vmem>>, vector<8x16xf32>
    tpu.vector_store %arg21[%c0_213, %c16_214], %378 {strides = array<i32>} : memref<32x32xf32, #tpu.memory_space<vmem>>, vector<8x16xf32>,
    %c1_215 = arith.constant 1 : index
    %c0_216 = arith.constant 0 : index
    %380 = vector.load %arg1[%c1_215, %c0_216] : memref<4x8xf32, #tpu.memory_space<vmem>>, vector<1x8xf32>
    %c8_217 = arith.constant 8 : index
    %c0_218 = arith.constant 0 : index
    %381 = vector.load %arg20[%c8_217, %c0_218] : memref<32x96xf32, #tpu.memory_space<vmem>>, vector<8x16xf32>
    %382 = arith.truncf %381 : vector<8x16xf32> to vector<8x16xbf16>
    %c8_219 = arith.constant 8 : index
    %c32_220 = arith.constant 32 : index
    %383 = vector.load %arg20[%c8_219, %c32_220] : memref<32x96xf32, #tpu.memory_space<vmem>>, vector<8x16xf32>
    %384 = arith.truncf %383 : vector<8x16xf32> to vector<8x16xbf16>
    %c8_221 = arith.constant 8 : index
    %c64_222 = arith.constant 64 : index
    %385 = vector.load %arg20[%c8_221, %c64_222] : memref<32x96xf32, #tpu.memory_space<vmem>>, vector<8x16xf32>
    %386 = arith.truncf %385 : vector<8x16xf32> to vector<8x16xbf16>
    %cst_223 = arith.constant dense<0.000000e+00> : vector<8x8xf32>
    %387 = tpu.matmul %382, %384, %cst_223 {dimension_numbers = #tpu.dot_dimension_numbers<[1], [1], [0], [0], [0, 0, 1, 0], [], []>} : vector<8x16xbf16>, vector<8x16xbf16>, vector<8x8xf32> -> vector<8x8xf32>
    %cst_224 = arith.constant 2.500000e-01 : f32
    %388 = vector.broadcast %cst_224 : f32 to vector<8x8xf32>
    %389 = arith.mulf %387, %388 : vector<8x8xf32>
    %390 = vector.broadcast %380 : vector<1x8xf32> to vector<8x8xf32>
    %391 = arith.addf %389, %390 : vector<8x8xf32>
    %cst_225 = arith.constant dense<0xFF800000> : vector<8xf32>
    %392 = vector.multi_reduction <maximumf>, %391, %cst_225 [1] : vector<8x8xf32> to vector<8xf32>
    %393 = vector.shape_cast %392 : vector<8xf32> to vector<8x1xf32>
    %394 = vector.broadcast %393 : vector<8x1xf32> to vector<8x8xf32>
    %395 = arith.subf %391, %394 : vector<8x8xf32>
    %396 = math.exp %395 : vector<8x8xf32>
    %cst_226 = arith.constant dense<0.000000e+00> : vector<8xf32>
    %397 = vector.multi_reduction <add>, %396, %cst_226 [1] : vector<8x8xf32> to vector<8xf32>
    %398 = vector.shape_cast %397 : vector<8xf32> to vector<8x1xf32>
    %399 = tpu.reciprocal %398 {approx = true} : vector<8x1xf32> -> vector<8x1xf32>
    %400 = vector.broadcast %399 : vector<8x1xf32> to vector<8x8xf32>
    %401 = arith.mulf %396, %400 : vector<8x8xf32>
    %402 = arith.truncf %401 : vector<8x8xf32> to vector<8x8xbf16>
    %cst_227 = arith.constant dense<0.000000e+00> : vector<8x16xf32>
    %403 = tpu.matmul %402, %386, %cst_227 {dimension_numbers = #tpu.dot_dimension_numbers<[1], [0], [0], [1], [0, 0, 1, 1], [], []>} : vector<8x8xbf16>, vector<8x16xbf16>, vector<8x16xf32> -> vector<8x16xf32>
    %c8_228 = arith.constant 8 : index
    %c0_229 = arith.constant 0 : index
    %404 = vector.load %arg21[%c8_228, %c0_229] : memref<32x32xf32, #tpu.memory_space<vmem>>, vector<8x16xf32>
    tpu.vector_store %arg21[%c8_228, %c0_229], %403 {strides = array<i32>} : memref<32x32xf32, #tpu.memory_space<vmem>>, vector<8x16xf32>,
    %c8_230 = arith.constant 8 : index
    %c16_231 = arith.constant 16 : index
    %405 = vector.load %arg20[%c8_230, %c16_231] : memref<32x96xf32, #tpu.memory_space<vmem>>, vector<8x16xf32>
    %406 = arith.truncf %405 : vector<8x16xf32> to vector<8x16xbf16>
    %c8_232 = arith.constant 8 : index
    %c48_233 = arith.constant 48 : index
    %407 = vector.load %arg20[%c8_232, %c48_233] : memref<32x96xf32, #tpu.memory_space<vmem>>, vector<8x16xf32>
    %408 = arith.truncf %407 : vector<8x16xf32> to vector<8x16xbf16>
    %c8_234 = arith.constant 8 : index
    %c80_235 = arith.constant 80 : index
    %409 = vector.load %arg20[%c8_234, %c80_235] : memref<32x96xf32, #tpu.memory_space<vmem>>, vector<8x16xf32>
    %410 = arith.truncf %409 : vector<8x16xf32> to vector<8x16xbf16>
    %cst_236 = arith.constant dense<0.000000e+00> : vector<8x8xf32>
    %411 = tpu.matmul %406, %408, %cst_236 {dimension_numbers = #tpu.dot_dimension_numbers<[1], [1], [0], [0], [0, 0, 1, 0], [], []>} : vector<8x16xbf16>, vector<8x16xbf16>, vector<8x8xf32> -> vector<8x8xf32>
    %cst_237 = arith.constant 2.500000e-01 : f32
    %412 = vector.broadcast %cst_237 : f32 to vector<8x8xf32>
    %413 = arith.mulf %411, %412 : vector<8x8xf32>
    %414 = vector.broadcast %380 : vector<1x8xf32> to vector<8x8xf32>
    %415 = arith.addf %413, %414 : vector<8x8xf32>
    %cst_238 = arith.constant dense<0xFF800000> : vector<8xf32>
    %416 = vector.multi_reduction <maximumf>, %415, %cst_238 [1] : vector<8x8xf32> to vector<8xf32>
    %417 = vector.shape_cast %416 : vector<8xf32> to vector<8x1xf32>
    %418 = vector.broadcast %417 : vector<8x1xf32> to vector<8x8xf32>
    %419 = arith.subf %415, %418 : vector<8x8xf32>
    %420 = math.exp %419 : vector<8x8xf32>
    %cst_239 = arith.constant dense<0.000000e+00> : vector<8xf32>
    %421 = vector.multi_reduction <add>, %420, %cst_239 [1] : vector<8x8xf32> to vector<8xf32>
    %422 = vector.shape_cast %421 : vector<8xf32> to vector<8x1xf32>
    %423 = tpu.reciprocal %422 {approx = true} : vector<8x1xf32> -> vector<8x1xf32>
    %424 = vector.broadcast %423 : vector<8x1xf32> to vector<8x8xf32>
    %425 = arith.mulf %420, %424 : vector<8x8xf32>
    %426 = arith.truncf %425 : vector<8x8xf32> to vector<8x8xbf16>
    %cst_240 = arith.constant dense<0.000000e+00> : vector<8x16xf32>
    %427 = tpu.matmul %426, %410, %cst_240 {dimension_numbers = #tpu.dot_dimension_numbers<[1], [0], [0], [1], [0, 0, 1, 1], [], []>} : vector<8x8xbf16>, vector<8x16xbf16>, vector<8x16xf32> -> vector<8x16xf32>
    %c8_241 = arith.constant 8 : index
    %c16_242 = arith.constant 16 : index
    %428 = vector.load %arg21[%c8_241, %c16_242] : memref<32x32xf32, #tpu.memory_space<vmem>>, vector<8x16xf32>
    tpu.vector_store %arg21[%c8_241, %c16_242], %427 {strides = array<i32>} : memref<32x32xf32, #tpu.memory_space<vmem>>, vector<8x16xf32>,
    %c2_243 = arith.constant 2 : index
    %c0_244 = arith.constant 0 : index
    %429 = vector.load %arg1[%c2_243, %c0_244] : memref<4x8xf32, #tpu.memory_space<vmem>>, vector<1x8xf32>
    %c16_245 = arith.constant 16 : index
    %c0_246 = arith.constant 0 : index
    %430 = vector.load %arg20[%c16_245, %c0_246] : memref<32x96xf32, #tpu.memory_space<vmem>>, vector<8x16xf32>
    %431 = arith.truncf %430 : vector<8x16xf32> to vector<8x16xbf16>
    %c16_247 = arith.constant 16 : index
    %c32_248 = arith.constant 32 : index
    %432 = vector.load %arg20[%c16_247, %c32_248] : memref<32x96xf32, #tpu.memory_space<vmem>>, vector<8x16xf32>
    %433 = arith.truncf %432 : vector<8x16xf32> to vector<8x16xbf16>
    %c16_249 = arith.constant 16 : index
    %c64_250 = arith.constant 64 : index
    %434 = vector.load %arg20[%c16_249, %c64_250] : memref<32x96xf32, #tpu.memory_space<vmem>>, vector<8x16xf32>
    %435 = arith.truncf %434 : vector<8x16xf32> to vector<8x16xbf16>
    %cst_251 = arith.constant dense<0.000000e+00> : vector<8x8xf32>
    %436 = tpu.matmul %431, %433, %cst_251 {dimension_numbers = #tpu.dot_dimension_numbers<[1], [1], [0], [0], [0, 0, 1, 0], [], []>} : vector<8x16xbf16>, vector<8x16xbf16>, vector<8x8xf32> -> vector<8x8xf32>
    %cst_252 = arith.constant 2.500000e-01 : f32
    %437 = vector.broadcast %cst_252 : f32 to vector<8x8xf32>
    %438 = arith.mulf %436, %437 : vector<8x8xf32>
    %439 = vector.broadcast %429 : vector<1x8xf32> to vector<8x8xf32>
    %440 = arith.addf %438, %439 : vector<8x8xf32>
    %cst_253 = arith.constant dense<0xFF800000> : vector<8xf32>
    %441 = vector.multi_reduction <maximumf>, %440, %cst_253 [1] : vector<8x8xf32> to vector<8xf32>
    %442 = vector.shape_cast %441 : vector<8xf32> to vector<8x1xf32>
    %443 = vector.broadcast %442 : vector<8x1xf32> to vector<8x8xf32>
    %444 = arith.subf %440, %443 : vector<8x8xf32>
    %445 = math.exp %444 : vector<8x8xf32>
    %cst_254 = arith.constant dense<0.000000e+00> : vector<8xf32>
    %446 = vector.multi_reduction <add>, %445, %cst_254 [1] : vector<8x8xf32> to vector<8xf32>
    %447 = vector.shape_cast %446 : vector<8xf32> to vector<8x1xf32>
    %448 = tpu.reciprocal %447 {approx = true} : vector<8x1xf32> -> vector<8x1xf32>
    %449 = vector.broadcast %448 : vector<8x1xf32> to vector<8x8xf32>
    %450 = arith.mulf %445, %449 : vector<8x8xf32>
    %451 = arith.truncf %450 : vector<8x8xf32> to vector<8x8xbf16>
    %cst_255 = arith.constant dense<0.000000e+00> : vector<8x16xf32>
    %452 = tpu.matmul %451, %435, %cst_255 {dimension_numbers = #tpu.dot_dimension_numbers<[1], [0], [0], [1], [0, 0, 1, 1], [], []>} : vector<8x8xbf16>, vector<8x16xbf16>, vector<8x16xf32> -> vector<8x16xf32>
    %c16_256 = arith.constant 16 : index
    %c0_257 = arith.constant 0 : index
    %453 = vector.load %arg21[%c16_256, %c0_257] : memref<32x32xf32, #tpu.memory_space<vmem>>, vector<8x16xf32>
    tpu.vector_store %arg21[%c16_256, %c0_257], %452 {strides = array<i32>} : memref<32x32xf32, #tpu.memory_space<vmem>>, vector<8x16xf32>,
    %c16_258 = arith.constant 16 : index
    %c16_259 = arith.constant 16 : index
    %454 = vector.load %arg20[%c16_258, %c16_259] : memref<32x96xf32, #tpu.memory_space<vmem>>, vector<8x16xf32>
    %455 = arith.truncf %454 : vector<8x16xf32> to vector<8x16xbf16>
    %c16_260 = arith.constant 16 : index
    %c48_261 = arith.constant 48 : index
    %456 = vector.load %arg20[%c16_260, %c48_261] : memref<32x96xf32, #tpu.memory_space<vmem>>, vector<8x16xf32>
    %457 = arith.truncf %456 : vector<8x16xf32> to vector<8x16xbf16>
    %c16_262 = arith.constant 16 : index
    %c80_263 = arith.constant 80 : index
    %458 = vector.load %arg20[%c16_262, %c80_263] : memref<32x96xf32, #tpu.memory_space<vmem>>, vector<8x16xf32>
    %459 = arith.truncf %458 : vector<8x16xf32> to vector<8x16xbf16>
    %cst_264 = arith.constant dense<0.000000e+00> : vector<8x8xf32>
    %460 = tpu.matmul %455, %457, %cst_264 {dimension_numbers = #tpu.dot_dimension_numbers<[1], [1], [0], [0], [0, 0, 1, 0], [], []>} : vector<8x16xbf16>, vector<8x16xbf16>, vector<8x8xf32> -> vector<8x8xf32>
    %cst_265 = arith.constant 2.500000e-01 : f32
    %461 = vector.broadcast %cst_265 : f32 to vector<8x8xf32>
    %462 = arith.mulf %460, %461 : vector<8x8xf32>
    %463 = vector.broadcast %429 : vector<1x8xf32> to vector<8x8xf32>
    %464 = arith.addf %462, %463 : vector<8x8xf32>
    %cst_266 = arith.constant dense<0xFF800000> : vector<8xf32>
    %465 = vector.multi_reduction <maximumf>, %464, %cst_266 [1] : vector<8x8xf32> to vector<8xf32>
    %466 = vector.shape_cast %465 : vector<8xf32> to vector<8x1xf32>
    %467 = vector.broadcast %466 : vector<8x1xf32> to vector<8x8xf32>
    %468 = arith.subf %464, %467 : vector<8x8xf32>
    %469 = math.exp %468 : vector<8x8xf32>
    %cst_267 = arith.constant dense<0.000000e+00> : vector<8xf32>
    %470 = vector.multi_reduction <add>, %469, %cst_267 [1] : vector<8x8xf32> to vector<8xf32>
    %471 = vector.shape_cast %470 : vector<8xf32> to vector<8x1xf32>
    %472 = tpu.reciprocal %471 {approx = true} : vector<8x1xf32> -> vector<8x1xf32>
    %473 = vector.broadcast %472 : vector<8x1xf32> to vector<8x8xf32>
    %474 = arith.mulf %469, %473 : vector<8x8xf32>
    %475 = arith.truncf %474 : vector<8x8xf32> to vector<8x8xbf16>
    %cst_268 = arith.constant dense<0.000000e+00> : vector<8x16xf32>
    %476 = tpu.matmul %475, %459, %cst_268 {dimension_numbers = #tpu.dot_dimension_numbers<[1], [0], [0], [1], [0, 0, 1, 1], [], []>} : vector<8x8xbf16>, vector<8x16xbf16>, vector<8x16xf32> -> vector<8x16xf32>
    %c16_269 = arith.constant 16 : index
    %c16_270 = arith.constant 16 : index
    %477 = vector.load %arg21[%c16_269, %c16_270] : memref<32x32xf32, #tpu.memory_space<vmem>>, vector<8x16xf32>
    tpu.vector_store %arg21[%c16_269, %c16_270], %476 {strides = array<i32>} : memref<32x32xf32, #tpu.memory_space<vmem>>, vector<8x16xf32>,
    %c3_271 = arith.constant 3 : index
    %c0_272 = arith.constant 0 : index
    %478 = vector.load %arg1[%c3_271, %c0_272] : memref<4x8xf32, #tpu.memory_space<vmem>>, vector<1x8xf32>
    %c24_273 = arith.constant 24 : index
    %c0_274 = arith.constant 0 : index
    %479 = vector.load %arg20[%c24_273, %c0_274] : memref<32x96xf32, #tpu.memory_space<vmem>>, vector<8x16xf32>
    %480 = arith.truncf %479 : vector<8x16xf32> to vector<8x16xbf16>
    %c24_275 = arith.constant 24 : index
    %c32_276 = arith.constant 32 : index
    %481 = vector.load %arg20[%c24_275, %c32_276] : memref<32x96xf32, #tpu.memory_space<vmem>>, vector<8x16xf32>
    %482 = arith.truncf %481 : vector<8x16xf32> to vector<8x16xbf16>
    %c24_277 = arith.constant 24 : index
    %c64_278 = arith.constant 64 : index
    %483 = vector.load %arg20[%c24_277, %c64_278] : memref<32x96xf32, #tpu.memory_space<vmem>>, vector<8x16xf32>
    %484 = arith.truncf %483 : vector<8x16xf32> to vector<8x16xbf16>
    %cst_279 = arith.constant dense<0.000000e+00> : vector<8x8xf32>
    %485 = tpu.matmul %480, %482, %cst_279 {dimension_numbers = #tpu.dot_dimension_numbers<[1], [1], [0], [0], [0, 0, 1, 0], [], []>} : vector<8x16xbf16>, vector<8x16xbf16>, vector<8x8xf32> -> vector<8x8xf32>
    %cst_280 = arith.constant 2.500000e-01 : f32
    %486 = vector.broadcast %cst_280 : f32 to vector<8x8xf32>
    %487 = arith.mulf %485, %486 : vector<8x8xf32>
    %488 = vector.broadcast %478 : vector<1x8xf32> to vector<8x8xf32>
    %489 = arith.addf %487, %488 : vector<8x8xf32>
    %cst_281 = arith.constant dense<0xFF800000> : vector<8xf32>
    %490 = vector.multi_reduction <maximumf>, %489, %cst_281 [1] : vector<8x8xf32> to vector<8xf32>
    %491 = vector.shape_cast %490 : vector<8xf32> to vector<8x1xf32>
    %492 = vector.broadcast %491 : vector<8x1xf32> to vector<8x8xf32>
    %493 = arith.subf %489, %492 : vector<8x8xf32>
    %494 = math.exp %493 : vector<8x8xf32>
    %cst_282 = arith.constant dense<0.000000e+00> : vector<8xf32>
    %495 = vector.multi_reduction <add>, %494, %cst_282 [1] : vector<8x8xf32> to vector<8xf32>
    %496 = vector.shape_cast %495 : vector<8xf32> to vector<8x1xf32>
    %497 = tpu.reciprocal %496 {approx = true} : vector<8x1xf32> -> vector<8x1xf32>
    %498 = vector.broadcast %497 : vector<8x1xf32> to vector<8x8xf32>
    %499 = arith.mulf %494, %498 : vector<8x8xf32>
    %500 = arith.truncf %499 : vector<8x8xf32> to vector<8x8xbf16>
    %cst_283 = arith.constant dense<0.000000e+00> : vector<8x16xf32>
    %501 = tpu.matmul %500, %484, %cst_283 {dimension_numbers = #tpu.dot_dimension_numbers<[1], [0], [0], [1], [0, 0, 1, 1], [], []>} : vector<8x8xbf16>, vector<8x16xbf16>, vector<8x16xf32> -> vector<8x16xf32>
    %c24_284 = arith.constant 24 : index
    %c0_285 = arith.constant 0 : index
    %502 = vector.load %arg21[%c24_284, %c0_285] : memref<32x32xf32, #tpu.memory_space<vmem>>, vector<8x16xf32>
    tpu.vector_store %arg21[%c24_284, %c0_285], %501 {strides = array<i32>} : memref<32x32xf32, #tpu.memory_space<vmem>>, vector<8x16xf32>,
    %c24_286 = arith.constant 24 : index
    %c16_287 = arith.constant 16 : index
    %503 = vector.load %arg20[%c24_286, %c16_287] : memref<32x96xf32, #tpu.memory_space<vmem>>, vector<8x16xf32>
    %504 = arith.truncf %503 : vector<8x16xf32> to vector<8x16xbf16>
    %c24_288 = arith.constant 24 : index
    %c48_289 = arith.constant 48 : index
    %505 = vector.load %arg20[%c24_288, %c48_289] : memref<32x96xf32, #tpu.memory_space<vmem>>, vector<8x16xf32>
    %506 = arith.truncf %505 : vector<8x16xf32> to vector<8x16xbf16>
    %c24_290 = arith.constant 24 : index
    %c80_291 = arith.constant 80 : index
    %507 = vector.load %arg20[%c24_290, %c80_291] : memref<32x96xf32, #tpu.memory_space<vmem>>, vector<8x16xf32>
    %508 = arith.truncf %507 : vector<8x16xf32> to vector<8x16xbf16>
    %cst_292 = arith.constant dense<0.000000e+00> : vector<8x8xf32>
    %509 = tpu.matmul %504, %506, %cst_292 {dimension_numbers = #tpu.dot_dimension_numbers<[1], [1], [0], [0], [0, 0, 1, 0], [], []>} : vector<8x16xbf16>, vector<8x16xbf16>, vector<8x8xf32> -> vector<8x8xf32>
    %cst_293 = arith.constant 2.500000e-01 : f32
    %510 = vector.broadcast %cst_293 : f32 to vector<8x8xf32>
    %511 = arith.mulf %509, %510 : vector<8x8xf32>
    %512 = vector.broadcast %478 : vector<1x8xf32> to vector<8x8xf32>
    %513 = arith.addf %511, %512 : vector<8x8xf32>
    %cst_294 = arith.constant dense<0xFF800000> : vector<8xf32>
    %514 = vector.multi_reduction <maximumf>, %513, %cst_294 [1] : vector<8x8xf32> to vector<8xf32>
    %515 = vector.shape_cast %514 : vector<8xf32> to vector<8x1xf32>
    %516 = vector.broadcast %515 : vector<8x1xf32> to vector<8x8xf32>
    %517 = arith.subf %513, %516 : vector<8x8xf32>
    %518 = math.exp %517 : vector<8x8xf32>
    %cst_295 = arith.constant dense<0.000000e+00> : vector<8xf32>
    %519 = vector.multi_reduction <add>, %518, %cst_295 [1] : vector<8x8xf32> to vector<8xf32>
    %520 = vector.shape_cast %519 : vector<8xf32> to vector<8x1xf32>
    %521 = tpu.reciprocal %520 {approx = true} : vector<8x1xf32> -> vector<8x1xf32>
    %522 = vector.broadcast %521 : vector<8x1xf32> to vector<8x8xf32>
    %523 = arith.mulf %518, %522 : vector<8x8xf32>
    %524 = arith.truncf %523 : vector<8x8xf32> to vector<8x8xbf16>
    %cst_296 = arith.constant dense<0.000000e+00> : vector<8x16xf32>
    %525 = tpu.matmul %524, %508, %cst_296 {dimension_numbers = #tpu.dot_dimension_numbers<[1], [0], [0], [1], [0, 0, 1, 1], [], []>} : vector<8x8xbf16>, vector<8x16xbf16>, vector<8x16xf32> -> vector<8x16xf32>
    %c24_297 = arith.constant 24 : index
    %c16_298 = arith.constant 16 : index
    %526 = vector.load %arg21[%c24_297, %c16_298] : memref<32x32xf32, #tpu.memory_space<vmem>>, vector<8x16xf32>
    tpu.vector_store %arg21[%c24_297, %c16_298], %525 {strides = array<i32>} : memref<32x32xf32, #tpu.memory_space<vmem>>, vector<8x16xf32>,
    %c0_299 = arith.constant 0 : index
    %c0_300 = arith.constant 0 : index
    %527 = vector.load %arg21[%c0_299, %c0_300] : memref<32x32xf32, #tpu.memory_space<vmem>>, vector<32x32xf32>
    %c1_301 = arith.constant 1 : index
    %c0_302 = arith.constant 0 : index
    %c0_303 = arith.constant 0 : index
    %528 = vector.load %arg6[%c1_301, %c0_302, %c0_303] : memref<2x32x32xbf16, #tpu.memory_space<vmem>>, vector<1x32x32xbf16>
    %529 = vector.shape_cast %528 : vector<1x32x32xbf16> to vector<32x32xbf16>
    %530 = arith.truncf %527 : vector<32x32xf32> to vector<32x32xbf16>
    %cst_304 = arith.constant dense<0.000000e+00> : vector<32x32xf32>
    %531 = tpu.matmul %530, %529, %cst_304 {dimension_numbers = #tpu.dot_dimension_numbers<[1], [0], [0], [1], [0, 0, 1, 1], [], []>} : vector<32x32xbf16>, vector<32x32xbf16>, vector<32x32xf32> -> vector<32x32xf32>
    %c1_305 = arith.constant 1 : index
    %c0_306 = arith.constant 0 : index
    %c0_307 = arith.constant 0 : index
    %532 = vector.load %arg7[%c1_305, %c0_306, %c0_307] : memref<2x1x32xf32, #tpu.memory_space<vmem>>, vector<1x1x32xf32>
    %533 = vector.shape_cast %532 : vector<1x1x32xf32> to vector<1x32xf32>
    %534 = vector.broadcast %533 : vector<1x32xf32> to vector<32x32xf32>
    %535 = arith.addf %531, %534 : vector<32x32xf32>
    %536 = arith.addf %535, %321 : vector<32x32xf32>
    %c1_308 = arith.constant 1 : index
    %c0_309 = arith.constant 0 : index
    %c0_310 = arith.constant 0 : index
    %537 = vector.load %arg8[%c1_308, %c0_309, %c0_310] : memref<2x1x32xf32, #tpu.memory_space<vmem>>, vector<1x1x32xf32>
    %538 = vector.shape_cast %537 : vector<1x1x32xf32> to vector<1x32xf32>
    %c1_311 = arith.constant 1 : index
    %c0_312 = arith.constant 0 : index
    %c0_313 = arith.constant 0 : index
    %539 = vector.load %arg9[%c1_311, %c0_312, %c0_313] : memref<2x1x32xf32, #tpu.memory_space<vmem>>, vector<1x1x32xf32>
    %540 = vector.shape_cast %539 : vector<1x1x32xf32> to vector<1x32xf32>
    %cst_314 = arith.constant dense<0.000000e+00> : vector<32xf32>
    %541 = vector.multi_reduction <add>, %536, %cst_314 [1] : vector<32x32xf32> to vector<32xf32>
    %542 = vector.shape_cast %541 : vector<32xf32> to vector<32x1xf32>
    %cst_315 = arith.constant 3.200000e+01 : f32
    %543 = vector.broadcast %cst_315 : f32 to vector<32x1xf32>
    %544 = arith.divf %542, %543 : vector<32x1xf32>
    %545 = vector.broadcast %544 : vector<32x1xf32> to vector<32x32xf32>
    %546 = arith.subf %536, %545 : vector<32x32xf32>
    %547 = arith.mulf %546, %546 : vector<32x32xf32>
    %cst_316 = arith.constant dense<0.000000e+00> : vector<32xf32>
    %548 = vector.multi_reduction <add>, %547, %cst_316 [1] : vector<32x32xf32> to vector<32xf32>
    %549 = vector.shape_cast %548 : vector<32xf32> to vector<32x1xf32>
    %cst_317 = arith.constant 3.200000e+01 : f32
    %550 = vector.broadcast %cst_317 : f32 to vector<32x1xf32>
    %551 = arith.divf %549, %550 : vector<32x1xf32>
    %552 = vector.broadcast %544 : vector<32x1xf32> to vector<32x32xf32>
    %553 = arith.subf %536, %552 : vector<32x32xf32>
    %cst_318 = arith.constant 9.99999996E-13 : f32
    %554 = vector.broadcast %cst_318 : f32 to vector<32x1xf32>
    %555 = arith.addf %551, %554 : vector<32x1xf32>
    %556 = math.rsqrt %555 : vector<32x1xf32>
    %557 = vector.broadcast %556 : vector<32x1xf32> to vector<32x32xf32>
    %558 = arith.mulf %553, %557 : vector<32x32xf32>
    %559 = vector.broadcast %538 : vector<1x32xf32> to vector<32x32xf32>
    %560 = arith.mulf %558, %559 : vector<32x32xf32>
    %561 = vector.broadcast %540 : vector<1x32xf32> to vector<32x32xf32>
    %562 = arith.addf %560, %561 : vector<32x32xf32>
    %c0_319 = arith.constant 0 : index
    %c0_320 = arith.constant 0 : index
    %563 = vector.load %arg19[%c0_319, %c0_320] : memref<32x32xf32, #tpu.memory_space<vmem>>, vector<32x32xf32>
    tpu.vector_store %arg19[%c0_319, %c0_320], %562 {strides = array<i32>} : memref<32x32xf32, #tpu.memory_space<vmem>>, vector<32x32xf32>,
    %c1_321 = arith.constant 1 : index
    %c0_322 = arith.constant 0 : index
    %c0_323 = arith.constant 0 : index
    %564 = vector.load %arg10[%c1_321, %c0_322, %c0_323] : memref<2x32x64xbf16, #tpu.memory_space<vmem>>, vector<1x32x64xbf16>
    %565 = vector.shape_cast %564 : vector<1x32x64xbf16> to vector<32x64xbf16>
    %566 = arith.truncf %562 : vector<32x32xf32> to vector<32x32xbf16>
    %cst_324 = arith.constant dense<0.000000e+00> : vector<32x64xf32>
    %567 = tpu.matmul %566, %565, %cst_324 {dimension_numbers = #tpu.dot_dimension_numbers<[1], [0], [0], [1], [0, 0, 1, 1], [], []>} : vector<32x32xbf16>, vector<32x64xbf16>, vector<32x64xf32> -> vector<32x64xf32>
    %c1_325 = arith.constant 1 : index
    %c0_326 = arith.constant 0 : index
    %c0_327 = arith.constant 0 : index
    %568 = vector.load %arg11[%c1_325, %c0_326, %c0_327] : memref<2x1x64xf32, #tpu.memory_space<vmem>>, vector<1x1x64xf32>
    %569 = vector.shape_cast %568 : vector<1x1x64xf32> to vector<1x64xf32>
    %570 = vector.broadcast %569 : vector<1x64xf32> to vector<32x64xf32>
    %571 = arith.addf %567, %570 : vector<32x64xf32>
    %cst_328 = arith.constant 5.000000e-01 : f32
    %572 = vector.broadcast %cst_328 : f32 to vector<32x64xf32>
    %573 = arith.mulf %572, %571 : vector<32x64xf32>
    %cst_329 = arith.constant 0.707106769 : f32
    %574 = vector.broadcast %cst_329 : f32 to vector<32x64xf32>
    %575 = arith.mulf %571, %574 : vector<32x64xf32>
    %576 = math.erf %575 : vector<32x64xf32>
    %cst_330 = arith.constant 1.000000e+00 : f32
    %577 = vector.broadcast %cst_330 : f32 to vector<32x64xf32>
    %578 = arith.addf %577, %576 : vector<32x64xf32>
    %579 = arith.mulf %573, %578 : vector<32x64xf32>
    %c1_331 = arith.constant 1 : index
    %c0_332 = arith.constant 0 : index
    %c0_333 = arith.constant 0 : index
    %580 = vector.load %arg12[%c1_331, %c0_332, %c0_333] : memref<2x64x32xbf16, #tpu.memory_space<vmem>>, vector<1x64x32xbf16>
    %581 = vector.shape_cast %580 : vector<1x64x32xbf16> to vector<64x32xbf16>
    %582 = arith.truncf %579 : vector<32x64xf32> to vector<32x64xbf16>
    %cst_334 = arith.constant dense<0.000000e+00> : vector<32x32xf32>
    %583 = tpu.matmul %582, %581, %cst_334 {dimension_numbers = #tpu.dot_dimension_numbers<[1], [0], [0], [1], [0, 0, 1, 1], [], []>} : vector<32x64xbf16>, vector<64x32xbf16>, vector<32x32xf32> -> vector<32x32xf32>
    %c1_335 = arith.constant 1 : index
    %c0_336 = arith.constant 0 : index
    %c0_337 = arith.constant 0 : index
    %584 = vector.load %arg13[%c1_335, %c0_336, %c0_337] : memref<2x1x32xf32, #tpu.memory_space<vmem>>, vector<1x1x32xf32>
    %585 = vector.shape_cast %584 : vector<1x1x32xf32> to vector<1x32xf32>
    %586 = vector.broadcast %585 : vector<1x32xf32> to vector<32x32xf32>
    %587 = arith.addf %583, %586 : vector<32x32xf32>
    %588 = arith.addf %587, %562 : vector<32x32xf32>
    %c1_338 = arith.constant 1 : index
    %c0_339 = arith.constant 0 : index
    %c0_340 = arith.constant 0 : index
    %589 = vector.load %arg14[%c1_338, %c0_339, %c0_340] : memref<2x1x32xf32, #tpu.memory_space<vmem>>, vector<1x1x32xf32>
    %590 = vector.shape_cast %589 : vector<1x1x32xf32> to vector<1x32xf32>
    %c1_341 = arith.constant 1 : index
    %c0_342 = arith.constant 0 : index
    %c0_343 = arith.constant 0 : index
    %591 = vector.load %arg15[%c1_341, %c0_342, %c0_343] : memref<2x1x32xf32, #tpu.memory_space<vmem>>, vector<1x1x32xf32>
    %592 = vector.shape_cast %591 : vector<1x1x32xf32> to vector<1x32xf32>
    %cst_344 = arith.constant dense<0.000000e+00> : vector<32xf32>
    %593 = vector.multi_reduction <add>, %588, %cst_344 [1] : vector<32x32xf32> to vector<32xf32>
    %594 = vector.shape_cast %593 : vector<32xf32> to vector<32x1xf32>
    %cst_345 = arith.constant 3.200000e+01 : f32
    %595 = vector.broadcast %cst_345 : f32 to vector<32x1xf32>
    %596 = arith.divf %594, %595 : vector<32x1xf32>
    %597 = vector.broadcast %596 : vector<32x1xf32> to vector<32x32xf32>
    %598 = arith.subf %588, %597 : vector<32x32xf32>
    %599 = arith.mulf %598, %598 : vector<32x32xf32>
    %cst_346 = arith.constant dense<0.000000e+00> : vector<32xf32>
    %600 = vector.multi_reduction <add>, %599, %cst_346 [1] : vector<32x32xf32> to vector<32xf32>
    %601 = vector.shape_cast %600 : vector<32xf32> to vector<32x1xf32>
    %cst_347 = arith.constant 3.200000e+01 : f32
    %602 = vector.broadcast %cst_347 : f32 to vector<32x1xf32>
    %603 = arith.divf %601, %602 : vector<32x1xf32>
    %604 = vector.broadcast %596 : vector<32x1xf32> to vector<32x32xf32>
    %605 = arith.subf %588, %604 : vector<32x32xf32>
    %cst_348 = arith.constant 9.99999996E-13 : f32
    %606 = vector.broadcast %cst_348 : f32 to vector<32x1xf32>
    %607 = arith.addf %603, %606 : vector<32x1xf32>
    %608 = math.rsqrt %607 : vector<32x1xf32>
    %609 = vector.broadcast %608 : vector<32x1xf32> to vector<32x32xf32>
    %610 = arith.mulf %605, %609 : vector<32x32xf32>
    %611 = vector.broadcast %590 : vector<1x32xf32> to vector<32x32xf32>
    %612 = arith.mulf %610, %611 : vector<32x32xf32>
    %613 = vector.broadcast %592 : vector<1x32xf32> to vector<32x32xf32>
    %614 = arith.addf %612, %613 : vector<32x32xf32>
    %c0_349 = arith.constant 0 : index
    %c0_350 = arith.constant 0 : index
    %615 = vector.load %arg19[%c0_349, %c0_350] : memref<32x32xf32, #tpu.memory_space<vmem>>, vector<32x32xf32>
    tpu.vector_store %arg19[%c0_349, %c0_350], %614 {strides = array<i32>} : memref<32x32xf32, #tpu.memory_space<vmem>>, vector<32x32xf32>,
    %c0_351 = arith.constant 0 : index
    %c0_352 = arith.constant 0 : index
    %616 = vector.load %arg19[%c0_351, %c0_352] : memref<32x32xf32, #tpu.memory_space<vmem>>, vector<1x32xf32>
    %c8_353 = arith.constant 8 : index
    %c0_354 = arith.constant 0 : index
    %617 = vector.load %arg19[%c8_353, %c0_354] : memref<32x32xf32, #tpu.memory_space<vmem>>, vector<1x32xf32>
    %c16_355 = arith.constant 16 : index
    %c0_356 = arith.constant 0 : index
    %618 = vector.load %arg19[%c16_355, %c0_356] : memref<32x32xf32, #tpu.memory_space<vmem>>, vector<1x32xf32>
    %c24_357 = arith.constant 24 : index
    %c0_358 = arith.constant 0 : index
    %619 = vector.load %arg19[%c24_357, %c0_358] : memref<32x32xf32, #tpu.memory_space<vmem>>, vector<1x32xf32>
    %620 = tpu.concatenate %616, %617, %618, %619 in 0 : vector<1x32xf32>, vector<1x32xf32>, vector<1x32xf32>, vector<1x32xf32> -> vector<4x32xf32>
    %c0_359 = arith.constant 0 : index
    %c0_360 = arith.constant 0 : index
    %621 = vector.load %arg16[%c0_359, %c0_360] : memref<32x32xbf16, #tpu.memory_space<vmem>>, vector<32x32xbf16>
    %622 = arith.truncf %620 : vector<4x32xf32> to vector<4x32xbf16>
    %cst_361 = arith.constant dense<0.000000e+00> : vector<4x32xf32>
    %623 = tpu.matmul %622, %621, %cst_361 {dimension_numbers = #tpu.dot_dimension_numbers<[1], [0], [0], [1], [0, 0, 1, 1], [], []>} : vector<4x32xbf16>, vector<32x32xbf16>, vector<4x32xf32> -> vector<4x32xf32>
    %c0_362 = arith.constant 0 : index
    %c0_363 = arith.constant 0 : index
    %624 = vector.load %arg17[%c0_362, %c0_363] : memref<1x32xf32, #tpu.memory_space<vmem>>, vector<1x32xf32>
    %625 = vector.broadcast %624 : vector<1x32xf32> to vector<4x32xf32>
    %626 = arith.addf %623, %625 : vector<4x32xf32>
    %627 = math.tanh %626 : vector<4x32xf32>
    %c0_364 = arith.constant 0 : index
    %c0_365 = arith.constant 0 : index
    %628 = vector.load %arg18[%c0_364, %c0_365] : memref<4x32xf32, #tpu.memory_space<vmem>>, vector<4x32xf32>
    tpu.vector_store %arg18[%c0_364, %c0_365], %627 {strides = array<i32>} : memref<4x32xf32, #tpu.memory_space<vmem>>, vector<4x32xf32>,
    return
  }
}

module attributes {stable_mosaic.version = 11 : i64} {
  func.func @_cosine_kernel(%arg0: memref<2x32xf32, #tpu.memory_space<vmem>>, %arg1: memref<2x32xf32, #tpu.memory_space<vmem>>, %arg2: memref<2x1xf32, #tpu.memory_space<vmem>>) attributes {dimension_semantics = [], scalar_prefetch = 0 : i64, scratch_operands = 0 : i64, tpu.core_type = #tpu.core_type<tc>} {
    %c0 = arith.constant 0 : index
    %c0_0 = arith.constant 0 : index
    %0 = vector.load %arg0[%c0, %c0_0] : memref<2x32xf32, #tpu.memory_space<vmem>>, vector<2x32xf32>
    %c0_1 = arith.constant 0 : index
    %c0_2 = arith.constant 0 : index
    %1 = vector.load %arg1[%c0_1, %c0_2] : memref<2x32xf32, #tpu.memory_space<vmem>>, vector<2x32xf32>
    %2 = arith.mulf %0, %1 : vector<2x32xf32>
    %cst = arith.constant dense<0.000000e+00> : vector<2xf32>
    %3 = vector.multi_reduction <add>, %2, %cst [1] : vector<2x32xf32> to vector<2xf32>
    %4 = vector.shape_cast %3 : vector<2xf32> to vector<2x1xf32>
    %5 = arith.mulf %0, %0 : vector<2x32xf32>
    %cst_3 = arith.constant dense<0.000000e+00> : vector<2xf32>
    %6 = vector.multi_reduction <add>, %5, %cst_3 [1] : vector<2x32xf32> to vector<2xf32>
    %7 = vector.shape_cast %6 : vector<2xf32> to vector<2x1xf32>
    %8 = math.sqrt %7 : vector<2x1xf32>
    %9 = arith.mulf %1, %1 : vector<2x32xf32>
    %cst_4 = arith.constant dense<0.000000e+00> : vector<2xf32>
    %10 = vector.multi_reduction <add>, %9, %cst_4 [1] : vector<2x32xf32> to vector<2xf32>
    %11 = vector.shape_cast %10 : vector<2xf32> to vector<2x1xf32>
    %12 = math.sqrt %11 : vector<2x1xf32>
    %cst_5 = arith.constant 9.99999993E-9 : f32
    %13 = vector.broadcast %cst_5 : f32 to vector<2x1xf32>
    %14 = arith.maximumf %8, %13 : vector<2x1xf32>
    %cst_6 = arith.constant 9.99999993E-9 : f32
    %15 = vector.broadcast %cst_6 : f32 to vector<2x1xf32>
    %16 = arith.maximumf %12, %15 : vector<2x1xf32>
    %17 = arith.mulf %14, %16 : vector<2x1xf32>
    %18 = arith.divf %4, %17 : vector<2x1xf32>
    %c0_7 = arith.constant 0 : index
    %c0_8 = arith.constant 0 : index
    %19 = vector.load %arg2[%c0_7, %c0_8] : memref<2x1xf32, #tpu.memory_space<vmem>>, vector<2x1xf32>
    tpu.vector_store %arg2[%c0_7, %c0_8], %18 {strides = array<i32>} : memref<2x1xf32, #tpu.memory_space<vmem>>, vector<2x1xf32>,
    return
  }
}

</mosaic_0001>

<bundles_post_ra>
// kernel: sbert_forward.3
= control target key start
LH: loop header
LB: loop body
LE: loop exit
PB: predicated region body
PF: predicated region fallthrough
CT: control target
= control target key end

     0   :  { %vm14_vm0 = vcmask 254976   ;;  %vm45_vm5 = vcmask 1024   ;;  %s81_s0 = inlined_call_operand.vmem [shape: f32[2,32], index: 0, kind: input, shape index: {}]   ;;  %s82_s1 = inlined_call_operand.vmem [shape: f32[2,32], index: 1, kind: input, shape index: {}]   ;;  %s83_s2 = inlined_call_operand.vmem [shape: f32[2,1], index: 2, kind: output, shape index: {}]  }
   0x1   :  { %v11_v0 = vld [vmem:[%s81_s0] sm:$0x3] }
   0x2   :  { %v12_v1 = vld [vmem:[%s82_s1] sm:$0x3]  ;;  %v18_v2 = vmul.f32 %v11_v0, %v11_v0 }
   0x3   :  { %v29_v3 = vmul.f32 %v12_v1, %v12_v1  ;;  %v13_v4 = vmul.f32 %v12_v1, %v11_v0 }
   0x4   :  { %v19_v5 = vsel %vm14_vm0, %v18_v2, 0.0 }
   0x5   :  { %v15_v6 = vsel %vm14_vm0, %v13_v4, 0.0  ;;  %20 = vadd.xlane.f32.xlu0 %v19_v5  ;;  %v30_v7 = vsel %vm14_vm0, %v29_v3, 0.0 }
   0x6   :  { %16 = vadd.xlane.f32.xlu1 %v15_v6 }
   0x9   :  { %31 = vadd.xlane.f32.xlu0 %v30_v7 }
  0x8e   :  { %v21_v8 = vpop.xlane.xlu0 %20 }
  0x8f   :  { %51 = vrsqrt.f32 %v21_v8  ;;  %vm24_vm1 = vcmp.eq.f32.partialorder %v21_v8, inf  ;;  %v27_v14 = vand.u32 2147483648, %v21_v8  ;;  %vm26_vm2 = vcmp.eq.f32.partialorder %v21_v8, 0.0  ;;  %v17_v23 = vpop.xlane.xlu1 %16 }
  0x92   :  { %v32_v9 = vpop.xlane.xlu0 %31 }
  0x93   :  { %53 = vrsqrt.f32 %v32_v9  ;;  %vm35_vm3 = vcmp.eq.f32.partialorder %v32_v9, inf  ;;  %v38_v17 = vand.u32 2147483648, %v32_v9  ;;  %vm37_vm4 = vcmp.eq.f32.partialorder %v32_v9, 0.0 }
  0x9c   :  { %v52_v10 = vpop.eup %51 }
  0x9d   :  { %v23_v11 = vmul.f32 %v52_v10, %v21_v8 }
  0x9f   :  { %v25_v12 = vsel %vm24_vm1, %v21_v8, %v23_v11 }
  0xa0   :  { %v54_v13 = vpop.eup %53  ;;  %v28_v16 = vsel %vm26_vm2, %v27_v14, %v25_v12 }
  0xa1   :  { %v34_v15 = vmul.f32 %v54_v13, %v32_v9  ;;  %v40_v20 = vmax.f32 %v28_v16, 1e-08 }
  0xa3   :  { %v36_v18 = vsel %vm35_vm3, %v32_v9, %v34_v15 }
  0xa4   :  { %v39_v19 = vsel %vm37_vm4, %v38_v17, %v36_v18 }
  0xa5   :  { %v41_v21 = vmax.f32 %v39_v19, 1e-08 }
  0xa7   :  { %v42_v22 = vmul.f32 %v41_v21, %v40_v20 }
  0xa9   :  { %55 = vrcp.f32 %v42_v22 }
  0xb6   :  { %v56_v24 = vpop.eup %55 }
  0xb7   :  { %v44_v25 = vmul.f32 %v56_v24, %v17_v23 }
  0xb9   :  { %46 = vst.msk [vmem:[%s83_s2] sm:$0x3] %vm45_vm5, %v44_v25 }

// kernel: sbert_forward.2
= control target key start
LH: loop header
LB: loop body
LE: loop exit
PB: predicated region body
PF: predicated region fallthrough
CT: control target
= control target key end

     0   :  { %vm66_vm0 = vcmask 261120   ;;  %vm228_vm1 = vcmask 785408   ;;  %vm3885_vm2 = vmmov 0   ;;  %s3886_s19 = smov 80   ;;  %s3888_s20 = smov 112   ;;  %vm239_vm3 = vcmask 130048   ;;  %s4702_s0 = inlined_call_operand.vmem [shape: f32[32,32], index: 0, kind: input, shape index: {}]   ;;  %s4703_s4 = inlined_call_operand.vmem [shape: bf16[2,32,96], index: 4, kind: input, shape index: {}]   ;;  %s4704_s2 = inlined_call_operand.vmem [shape: f32[1,32], index: 2, kind: input, shape index: {}]   ;;  %s4705_s3 = inlined_call_operand.vmem [shape: f32[1,32], index: 3, kind: input, shape index: {}]   ;;  %s4706_s5 = inlined_call_operand.vmem [shape: f32[2,1,96], index: 5, kind: input, shape index: {}]   ;;  %s4707_s1 = inlined_call_operand.vmem [shape: f32[4,8], index: 1, kind: input, shape index: {}]   ;;  %s4708_s6 = inlined_call_operand.vmem [shape: bf16[2,32,32], index: 6, kind: input, shape index: {}]   ;;  %s4709_s7 = inlined_call_operand.vmem [shape: f32[2,1,32], index: 7, kind: input, shape index: {}]   ;;  %s4710_s10 = inlined_call_operand.vmem [shape: bf16[2,32,64], index: 10, kind: input, shape index: {}]   ;;  %s4711_s8 = inlined_call_operand.vmem [shape: f32[2,1,32], index: 8, kind: input, shape index: {}]   ;;  %s4712_s9 = inlined_call_operand.vmem [shape: f32[2,1,32], index: 9, kind: input, shape index: {}]   ;;  %s4713_s12 = inlined_call_operand.vmem [shape: bf16[2,64,32], index: 12, kind: input, shape index: {}]   ;;  %s4714_s11 = inlined_call_operand.vmem [shape: f32[2,1,64], index: 11, kind: input, shape index: {}]   ;;  %s4715_s13 = inlined_call_operand.vmem [shape: f32[2,1,32], index: 13, kind: input, shape index: {}]   ;;  %s4716_s14 = inlined_call_operand.vmem [shape: f32[2,1,32], index: 14, kind: input, shape index: {}]   ;;  %s4717_s15 = inlined_call_operand.vmem [shape: f32[2,1,32], index: 15, kind: input, shape index: {}]   ;;  %s4718_s16 = inlined_call_operand.vmem [shape: bf16[32,32], index: 16, kind: input, shape index: {}]   ;;  %s4719_s17 = inlined_call_operand.vmem [shape: f32[1,32], index: 17, kind: input, shape index: {}]   ;;  %s4720_s18 = inlined_call_operand.vmem [shape: f32[4,32], index: 18, kind: output, shape index: {}]  }
   0x1   :  { %4723 = sst [smem:[#allocation5_spill]] %s4702_s0  ;;  %v3232_v45 = vld [vmem:[%s4705_s3] ss:$0 sm:$0xff]  ;;  %vm292_vm4 = vcmask 64512   ;;  %s3890_s24 = smov 48   ;;  %vm310_vm5 = vcmask 1043456  }
   0x2   :  { %4724 = sst [smem:[#allocation6_spill]] %s4703_s4  ;;  %s3887_s4 = smov 96   ;;  %vm474_vm6 = vcmask 261248   ;;  %vm1500_vm7 = vcmask 523264   ;;  %vm3151_vm8 = vcmask 1040384   ;;  %vm3153_vm9 = vcmask 1041408  }
   0x3   :  { %4725 = sst [smem:[#allocation7_spill]] %s4704_s2  ;;  %s3889_s2 = smov 64   ;;  %vm3155_vm10 = vcmask 1042432   ;;  %vm3225_vm11 = vcmask 257024  }
   0x4   :  { %s4726_s29 = sld [smem:[#allocation5_spill]]  ;;  %s3891_s3 = smov 16  }
   0x5   :  { %s4727_s23 = sld [smem:[#allocation6_spill]] }
   0x6   :  { %s4728_s28 = sld [smem:[#allocation7_spill]] }
   0xa   :  { %v60_v0 = vld [vmem:[%s4726_s29] sm:$0xff]  ;;  %v62_v1 = vld [vmem:[%s4726_s29 + $0x10] sm:$0xff]  ;;  %v61_v2 = vld [vmem:[%s4726_s29 + $0x8] sm:$0xff] }
   0xb   :  { %v67_v3 = vsel %vm66_vm0, %v60_v0, 0.0  ;;  %v73_v4 = vsel %vm66_vm0, %v62_v1, 0.0  ;;  %v63_v5 = vld [vmem:[%s4726_s29 + $0x18] sm:$0xff]  ;;  %v70_v6 = vsel %vm66_vm0, %v61_v2, 0.0  ;;  %v3740_v28 = vld [vmem:[%s4727_s23 + $0x8] sm:$0xff]   ;;  %v3741_v29 = vld [vmem:[%s4727_s23] sm:$0xff]  }
   0xc   :  { %68 = vadd.xlane.f32.xlu0 %v67_v3  ;;  %74 = vadd.xlane.f32.xlu1 %v73_v4  ;;  %v76_v7 = vsel %vm66_vm0, %v63_v5, 0.0  ;;  %v3231_v43 = vld [vmem:[%s4728_s28] ss:$0 sm:$0xff] }
   0xd   :  { %3460 = vmatprep.subr.bf16.mxu0 %v3740_v28 }
   0xe   :  { %3461 = vmatpush3.bf16.msra.mxu0 %v3740_v28 }
   0xf   :  { %3462 = vmatprep.subr.bf16.mxu0 %v3741_v29 }
  0x10   :  { %71 = vadd.xlane.f32.xlu0 %v70_v6  ;;  %77 = vadd.xlane.f32.xlu1 %v76_v7  ;;  %v3884_v7 = vmov 0.0  }
  0x11   :  { %3468 = vmatprep.subr.bf16.mxu1 %v3884_v7  ;;  %3470 = vmatprep.mubr.msk.bf16.mxu1 %vm3885_vm2, %v3884_v7 }
  0x12   :  { %3463 = vmatpush3.bf16.msra.mxu0 %v3741_v29 }
  0x13   :  { %3474 = vmatprep.subr.bf16.mxu0 %v3884_v7 }
  0x95   :  { %v69_v8 = vpop.xlane.xlu0 %68  ;;  %v75_v9 = vpop.xlane.xlu1 %74 }
  0x96   :  { %v80_v10 = vmul.f32 0.03125, %v69_v8  ;;  %v82_v11 = vmul.f32 0.03125, %v75_v9 }
  0x98   :  { %v84_v12 = vsub.f32 %v60_v0, %v80_v10  ;;  %v86_v13 = vsub.f32 %v62_v1, %v82_v11 }
  0x99   :  { %v72_v14 = vpop.xlane.xlu0 %71  ;;  %v78_v15 = vpop.xlane.xlu1 %77 }
  0x9a   :  { %v81_v16 = vmul.f32 0.03125, %v72_v14  ;;  %v83_v17 = vmul.f32 0.03125, %v78_v15  ;;  %v88_v18 = vmul.f32 %v84_v12, %v84_v12  ;;  %v90_v19 = vmul.f32 %v86_v13, %v86_v13 }
  0x9c   :  { %v85_v20 = vsub.f32 %v61_v2, %v81_v16  ;;  %v87_v21 = vsub.f32 %v63_v5, %v83_v17  ;;  %v92_v22 = vsel %vm66_vm0, %v88_v18, 0.0  ;;  %v98_v23 = vsel %vm66_vm0, %v90_v19, 0.0  ;;  %v3233_v2 = vld [vmem:[%s4706_s5] ss:$0 sm:$0xff] }
  0x9d   :  { %93 = vadd.xlane.f32.xlu0 %v92_v22 }
  0x9e   :  { %v89_v24 = vmul.f32 %v85_v20, %v85_v20  ;;  %v91_v25 = vmul.f32 %v87_v21, %v87_v21 }
  0xa0   :  { %v95_v26 = vsel %vm66_vm0, %v89_v24, 0.0  ;;  %v101_v27 = vsel %vm66_vm0, %v91_v25, 0.0 }
  0xa1   :  { %99 = vadd.xlane.f32.xlu0 %v98_v23  ;;  %96 = vadd.xlane.f32.xlu1 %v95_v26 }
  0xa5   :  { %102 = vadd.xlane.f32.xlu1 %v101_v27 }
 0x126   :  { %v94_v30 = vpop.xlane.xlu0 %93 }
 0x127   :  { %v104_v31 = vmul.f32 0.03125, %v94_v30 }
 0x129   :  { %v108_v32 = vadd.f32 1e-12, %v104_v31 }
 0x12a   :  { %v97_v33 = vpop.xlane.xlu1 %96  ;;  %v100_v34 = vpop.xlane.xlu0 %99 }
 0x12b   :  { %3762 = vrsqrt.f32 %v108_v32  ;;  %v105_v35 = vmul.f32 0.03125, %v97_v33  ;;  %v106_v36 = vmul.f32 0.03125, %v100_v34 }
 0x12d   :  { %v109_v37 = vadd.f32 1e-12, %v105_v35  ;;  %v110_v38 = vadd.f32 1e-12, %v106_v36 }
 0x12e   :  { %v103_v39 = vpop.xlane.xlu1 %102 }
 0x12f   :  { %3764 = vrsqrt.f32 %v109_v37  ;;  %v107_v40 = vmul.f32 0.03125, %v103_v39 }
 0x130   :  { %3766 = vrsqrt.f32 %v110_v38 }
 0x131   :  { %v111_v41 = vadd.f32 1e-12, %v107_v40 }
 0x133   :  { %3768 = vrsqrt.f32 %v111_v41  ;;  %v3239_v41 = vld [vmem:[%s4707_s1] ss:$0 sm:$0xff] }
 0x138   :  { %v3763_v42 = vpop.eup %3762 }
 0x139   :  { %v116_v44 = vmul.f32 %v3763_v42, %v84_v12 }
 0x13b   :  { %v126_v46 = vmul.f32 %v3231_v43, %v116_v44 }
 0x13c   :  { %v3765_v47 = vpop.eup %3764 }
 0x13d   :  { %v3767_v48 = vpop.eup %3766  ;;  %v136_v49 = vadd.f32 %v3232_v45, %v126_v46  ;;  %v117_v50 = vmul.f32 %v3765_v47, %v85_v20 }
 0x13e   :  { %v118_v51 = vmul.f32 %v3767_v48, %v86_v13 }
 0x13f   :  { %140 = vst.msk [vmem:[#allocation2] sm:$0xff] %vm66_vm0, %v136_v49  ;;  %v127_v52 = vmul.f32 %v3231_v43, %v117_v50 }
 0x140   :  { %v3769_v53 = vpop.eup %3768  ;;  %v128_v54 = vmul.f32 %v3231_v43, %v118_v51 }
 0x141   :  { %v137_v55 = vadd.f32 %v3232_v45, %v127_v52  ;;  %v119_v56 = vmul.f32 %v3769_v53, %v87_v21 }
 0x142   :  { %v138_v57 = vadd.f32 %v3232_v45, %v128_v54 }
 0x143   :  { %141 = vst.msk [vmem:[#allocation2 + $0x8] sm:$0xff] %vm66_vm0, %v137_v55  ;;  %v129_v58 = vmul.f32 %v3231_v43, %v119_v56 }
 0x144   :  { %142 = vst.msk [vmem:[#allocation2 + $0x10] sm:$0xff] %vm66_vm0, %v138_v57 }
 0x145   :  { %v139_v59 = vadd.f32 %v3232_v45, %v129_v58 }
 0x146   :  { %v4023_v60 = vld [vmem:[#allocation2] sm:$0xff] }
 0x147   :  { %143 = vst.msk [vmem:[#allocation2 + $0x18] sm:$0xff] %vm66_vm0, %v139_v59 }
 0x14a   :  { %v4025_v61 = vld [vmem:[#allocation2 + $0x8] sm:$0xff] }
 0x14b   :  { %v152_v62 = vpack.c.bf16 %v4025_v61, %v4023_v60  ;;  %v4030_v63 = vld [vmem:[#allocation2 + $0x10] sm:$0xff] }
 0x14d   :  { %3464 = vmatprep.mubr.msk.bf16.mxu0 %vm66_vm0, %v152_v62 }
 0x14e   :  { %v4032_v0 = vld [vmem:[#allocation2 + $0x18] sm:$0xff] }
 0x14f   :  { %v153_v1 = vpack.c.bf16 %v4032_v0, %v4030_v63 }
 0x151   :  { %3465 = vmatmul.mubr.msk.bf16.vlgmr.msra.gmra.mxu0 %vm66_vm0, %v153_v1 }
 0x152   :  { %3476 = vmatprep.mubr.msk.bf16.mxu0 %vm3885_vm2, %v3884_v7 }
 0x211   :  { %v3466_v3 = vpop.f32.mrf.mxu0 }
 0x212   :  { %v222_v4 = vadd.f32 %v3466_v3, %v3233_v2 }
 0x213   :  { %v213_v5 = vpop.f32.mrf.mxu0 }
 0x214   :  { %231 = vst.msk [vmem:[#allocation3 + $0x10] sm:$0xff] %vm228_vm1, %v222_v4  ;;  %v214_v6 = vadd.f32 %v3233_v2, %v213_v5 }
 0x215   :  { %v3467_v8 = vpop.f32.mrf.mxu0 }
 0x216   :  { %229 = vst.msk [vmem:[#allocation3] sm:$0xff] %vm228_vm1, %v214_v6  ;;  %v225_v9 = vadd.f32 %v3467_v8, %v3233_v2 }
 0x217   :  { %v216_v10 = vpop.f32.mrf.mxu0 }
 0x218   :  { %232 = vst.msk [vmem:[#allocation3 + $0x18] sm:$0xff] %vm228_vm1, %v225_v9  ;;  %v217_v11 = vadd.f32 %v3233_v2, %v216_v10 }
 0x21a   :  { %230 = vst.msk [vmem:[#allocation3 + $0x8] sm:$0xff] %vm228_vm1, %v217_v11 }
 0x21b   :  { %v716_v16 = vld [vmem:[#allocation3 + $0x10] sm:$0xff] }
 0x21c   :  { %v4062_v17 = vpack.c.bf16 %v716_v16, %v716_v16 }
 0x21d   :  { %v355_v12 = vld [vmem:[#allocation3] sm:$0xff] }
 0x21e   :  { %v4050_v13 = vpack.c.bf16 %v355_v12, %v355_v12 }
 0x21f   :  { %v1073_v18 = vld [vmem:[#allocation3 + $0x18] sm:$0xff] }
 0x220   :  { %360 = vrot.lane.b32.xlu1 %v4050_v13, %s3886_s19  ;;  %237 = vrot.lane.b32.xlu0 %v4050_v13, %s3887_s4  ;;  %v4072_v19 = vpack.c.bf16 %v1073_v18, %v1073_v18  ;;  %v3244_v18 = vld [vmem:[%s4707_s1 + $0x1] ss:$0 sm:$0xff] }
 0x221   :  { %v595_v14 = vld [vmem:[#allocation3 + $0x8] sm:$0xff] }
 0x222   :  { %v4056_v15 = vpack.c.bf16 %v595_v14, %v595_v14 }
 0x224   :  { %358 = vrot.lane.b32.xlu1 %v4050_v13, %s3888_s20  ;;  %600 = vrot.lane.b32.xlu0 %v4056_v15, %s3886_s19 }
 0x228   :  { %480 = vrot.lane.b32.xlu1 %v4056_v15, %s3887_s4  ;;  %719 = vrot.lane.b32.xlu0 %v4062_v17, %s3887_s4 }
 0x22c   :  { %598 = vrot.lane.b32.xlu1 %v4056_v15, %s3888_s20  ;;  %837 = vrot.lane.b32.xlu0 %v4062_v17, %s3888_s20 }
 0x230   :  { %839 = vrot.lane.b32.xlu1 %v4062_v17, %s3886_s19  ;;  %1078 = vrot.lane.b32.xlu0 %v4072_v19, %s3886_s19 }
 0x234   :  { %958 = vrot.lane.b32.xlu1 %v4072_v19, %s3887_s4 }
 0x238   :  { %1076 = vrot.lane.b32.xlu1 %v4072_v19, %s3888_s20 }
 0x292   :  { %v238_v20 = vpop.permute.xlu0 %237  ;;  %v361_v22 = vpop.permute.xlu1 %360 }
 0x293   :  { %v244_v21 = vsel %vm239_vm3, %v238_v20, 0  ;;  %v366_v24 = vsel %vm239_vm3, %v361_v22, 0 }
 0x294   :  { %3469 = vmatpush3.bf16.xpose.msra.mxu1 %v244_v21 }
 0x295   :  { %3480 = vmatprep.subr.bf16.mxu1 %v3884_v7 }
 0x296   :  { %v359_v23 = vpop.permute.xlu1 %358  ;;  %v601_v27 = vpop.permute.xlu0 %600 }
 0x297   :  { %v606_v28 = vsel %vm239_vm3, %v601_v27, 0 }
 0x29a   :  { %v481_v25 = vpop.permute.xlu1 %480  ;;  %v720_v29 = vpop.permute.xlu0 %719 }
 0x29b   :  { %3471 = vmatmul.mubr.msk.bf16.vlgmr.msra.gmra.mxu1 %vm239_vm3, %v4050_v13  ;;  %v486_v26 = vsel %vm239_vm3, %v481_v25, 0  ;;  %v725_v31 = vsel %vm239_vm3, %v720_v29, 0  ;;  %v3249_v29 = vld [vmem:[%s4707_s1 + $0x2] ss:$0 sm:$0xff] }
 0x29c   :  { %3481 = vmatpush3.bf16.xpose.msra.mxu1 %v366_v24  ;;  %3482 = vmatprep.mubr.msk.bf16.mxu1 %vm3885_vm2, %v3884_v7 }
 0x29d   :  { %3492 = vmatprep.subr.bf16.mxu1 %v3884_v7 }
 0x29e   :  { %v599_v30 = vpop.permute.xlu1 %598  ;;  %v838_v35 = vpop.permute.xlu0 %837 }
 0x2a2   :  { %v840_v32 = vpop.permute.xlu1 %839  ;;  %v1079_v37 = vpop.permute.xlu0 %1078 }
 0x2a3   :  { %3483 = vmatmul.mubr.msk.bf16.vlgmr.msra.gmra.mxu1 %vm239_vm3, %v359_v23  ;;  %v845_v33 = vsel %vm239_vm3, %v840_v32, 0  ;;  %v1084_v38 = vsel %vm239_vm3, %v1079_v37, 0  ;;  %v3254_v37 = vld [vmem:[%s4707_s1 + $0x3] ss:$0 sm:$0xff] }
 0x2a4   :  { %3493 = vmatpush3.bf16.xpose.msra.mxu1 %v486_v26  ;;  %3494 = vmatprep.mubr.msk.bf16.mxu1 %vm3885_vm2, %v3884_v7 }
 0x2a5   :  { %3504 = vmatprep.subr.bf16.mxu1 %v3884_v7 }
 0x2a6   :  { %v959_v34 = vpop.permute.xlu1 %958 }
 0x2a7   :  { %v964_v36 = vsel %vm239_vm3, %v959_v34, 0 }
 0x2aa   :  { %v1077_v39 = vpop.permute.xlu1 %1076 }
 0x2ab   :  { %3495 = vmatmul.mubr.msk.bf16.vlgmr.msra.gmra.mxu1 %vm239_vm3, %v4056_v15 }
 0x2ac   :  { %3505 = vmatpush3.bf16.xpose.msra.mxu1 %v606_v28  ;;  %3506 = vmatprep.mubr.msk.bf16.mxu1 %vm3885_vm2, %v3884_v7 }
 0x2ad   :  { %3516 = vmatprep.subr.bf16.mxu1 %v3884_v7 }
 0x2b3   :  { %3507 = vmatmul.mubr.msk.bf16.vlgmr.msra.gmra.mxu1 %vm239_vm3, %v599_v30 }
 0x2b4   :  { %3517 = vmatpush3.bf16.xpose.msra.mxu1 %v725_v31  ;;  %3518 = vmatprep.mubr.msk.bf16.mxu1 %vm3885_vm2, %v3884_v7 }
 0x2b5   :  { %3528 = vmatprep.subr.bf16.mxu1 %v3884_v7 }
 0x2bb   :  { %3519 = vmatmul.mubr.msk.bf16.vlgmr.msra.gmra.mxu1 %vm239_vm3, %v4062_v17 }
 0x2bc   :  { %3529 = vmatpush3.bf16.xpose.msra.mxu1 %v845_v33  ;;  %3530 = vmatprep.mubr.msk.bf16.mxu1 %vm3885_vm2, %v3884_v7 }
 0x2bd   :  { %3540 = vmatprep.subr.bf16.mxu1 %v3884_v7 }
 0x2c3   :  { %3531 = vmatmul.mubr.msk.bf16.vlgmr.msra.gmra.mxu1 %vm239_vm3, %v838_v35 }
 0x2c4   :  { %3541 = vmatpush3.bf16.xpose.msra.mxu1 %v964_v36  ;;  %3542 = vmatprep.mubr.msk.bf16.mxu1 %vm3885_vm2, %v3884_v7 }
 0x2c5   :  { %3552 = vmatprep.subr.bf16.mxu1 %v3884_v7 }
 0x2cb   :  { %3543 = vmatmul.mubr.msk.bf16.vlgmr.msra.gmra.mxu1 %vm239_vm3, %v4072_v19 }
 0x2cc   :  { %3553 = vmatpush3.bf16.xpose.msra.mxu1 %v1084_v38  ;;  %3554 = vmatprep.mubr.msk.bf16.mxu1 %vm3885_vm2, %v3884_v7 }
 0x2d3   :  { %3555 = vmatmul.mubr.msk.bf16.vlgmr.msra.gmra.mxu1 %vm239_vm3, %v1077_v39 }
 0x35b   :  { %v280_v40 = vpop.f32.mrf.mxu1 }
 0x35c   :  { %v286_v42 = vmul.f32 0.25, %v280_v40 }
 0x35d   :  { %v3472_v43 = vpop.f32.mrf.mxu1 }
 0x35e   :  { %v4126_v44 = vadd.f32 %v3239_v41, %v286_v42 }
 0x35f   :  { %v283_v45 = vpop.f32.mrf.mxu1 }
 0x360   :  { %v293_v46 = vsel %vm292_vm4, %v4126_v44, -inf }
 0x361   :  { %294 = vmax.xlane.f32.xlu0 %v293_v46  ;;  %v3473_v47 = vpop.f32.mrf.mxu1 }
 0x363   :  { %v402_v48 = vpop.f32.mrf.mxu1 }
 0x364   :  { %v408_v49 = vmul.f32 0.25, %v402_v48 }
 0x365   :  { %v3484_v50 = vpop.f32.mrf.mxu1 }
 0x366   :  { %v4130_v51 = vadd.f32 %v3239_v41, %v408_v49 }
 0x367   :  { %v405_v52 = vpop.f32.mrf.mxu1 }
 0x368   :  { %v410_v53 = vsel %vm292_vm4, %v4130_v51, -inf }
 0x369   :  { %411 = vmax.xlane.f32.xlu1 %v410_v53  ;;  %v3485_v54 = vpop.f32.mrf.mxu1 }
 0x36b   :  { %v522_v55 = vpop.f32.mrf.mxu1 }
 0x36c   :  { %v528_v14 = vmul.f32 0.25, %v522_v55 }
 0x36d   :  { %v3496_v56 = vpop.f32.mrf.mxu1 }
 0x36e   :  { %v533_v23 = vadd.f32 %v3244_v18, %v528_v14 }
 0x36f   :  { %v525_v57 = vpop.f32.mrf.mxu1 }
 0x370   :  { %v534_v28 = vsel %vm292_vm4, %v533_v23, -inf }
 0x371   :  { %v3497_v58 = vpop.f32.mrf.mxu1 }
 0x373   :  { %v642_v59 = vpop.f32.mrf.mxu1 }
 0x374   :  { %v648_v21 = vmul.f32 0.25, %v642_v59 }
 0x375   :  { %v3508_v62 = vpop.f32.mrf.mxu1 }
 0x376   :  { %v649_v24 = vadd.f32 %v3244_v18, %v648_v21 }
 0x377   :  { %305 = vrot.lane.b32.xlu0 %v4050_v13, %s3889_s2  ;;  %v645_v1 = vpop.f32.mrf.mxu1 }
 0x378   :  { %v650_v31 = vsel %vm292_vm4, %v649_v24, -inf }
 0x379   :  { %v3509_v2 = vpop.f32.mrf.mxu1 }
 0x37a   :  { %422 = vrot.lane.b32.xlu1 %v4050_v13, %s3890_s24 }
 0x37b   :  { %v761_v3 = vpop.f32.mrf.mxu1 }
 0x37c   :  { %v767_v25 = vmul.f32 0.25, %v761_v3 }
 0x37d   :  { %v3520_v4 = vpop.f32.mrf.mxu1 }
 0x37e   :  { %v772_v35 = vadd.f32 %v3249_v29, %v767_v25 }
 0x37f   :  { %v764_v5 = vpop.f32.mrf.mxu1 }
 0x380   :  { %v773_v38 = vsel %vm292_vm4, %v772_v35, -inf }
 0x381   :  { %v3521_v6 = vpop.f32.mrf.mxu1 }
 0x383   :  { %v881_v8 = vpop.f32.mrf.mxu1 }
 0x384   :  { %v887_v26 = vmul.f32 0.25, %v881_v8 }
 0x385   :  { %v3532_v9 = vpop.f32.mrf.mxu1 }
 0x386   :  { %v888_v36 = vadd.f32 %v3249_v29, %v887_v26 }
 0x387   :  { %v884_v10 = vpop.f32.mrf.mxu1 }
 0x388   :  { %v889_v39 = vsel %vm292_vm4, %v888_v36, -inf }
 0x389   :  { %v3533_v11 = vpop.f32.mrf.mxu1 }
 0x38b   :  { %v1000_v12 = vpop.f32.mrf.mxu1 }
 0x38c   :  { %v1006_v32 = vmul.f32 0.25, %v1000_v12 }
 0x38d   :  { %v3544_v16 = vpop.f32.mrf.mxu1 }
 0x38e   :  { %v1011_v40 = vadd.f32 %v3254_v37, %v1006_v32 }
 0x38f   :  { %v1003_v20 = vpop.f32.mrf.mxu1 }
 0x390   :  { %v1012_v42 = vsel %vm292_vm4, %v1011_v40, -inf }
 0x391   :  { %v3545_v22 = vpop.f32.mrf.mxu1 }
 0x393   :  { %v1120_v13 = vpop.f32.mrf.mxu1 }
 0x394   :  { %v1126_v33 = vmul.f32 0.25, %v1120_v13 }
 0x395   :  { %v3556_v27 = vpop.f32.mrf.mxu1 }
 0x396   :  { %535 = vmax.xlane.f32.xlu0 %v534_v28  ;;  %v4151_v41 = vadd.f32 %v3254_v37, %v1126_v33 }
 0x397   :  { %v1123_v30 = vpop.f32.mrf.mxu1 }
 0x398   :  { %v1128_v43 = vsel %vm292_vm4, %v4151_v41, -inf }
 0x399   :  { %v3557_v34 = vpop.f32.mrf.mxu1 }
 0x39a   :  { %651 = vmax.xlane.f32.xlu0 %v650_v31 }
 0x39e   :  { %774 = vmax.xlane.f32.xlu0 %v773_v38  ;;  %890 = vmax.xlane.f32.xlu1 %v889_v39 }
 0x3a2   :  { %1013 = vmax.xlane.f32.xlu0 %v1012_v42  ;;  %1129 = vmax.xlane.f32.xlu1 %v1128_v43 }
 0x3b8   :  { %546 = vrot.lane.b32.xlu0 %v4056_v15, %s3889_s2 }
 0x3ea   :  { %v295_v45 = vpop.xlane.xlu0 %294 }
 0x3eb   :  { %v296_v46 = vsub.f32 %v4126_v44, %v295_v45 }
 0x3ed   :  { %v297_v47 = vmul.f32 1.442695, %v296_v46 }
 0x3ee   :  { %v306_v48 = vpop.permute.xlu0 %305 }
 0x3ef   :  { %3770 = vpow2.f32 %v297_v47  ;;  %v312_v49 = vsel %vm310_vm5, %v306_v48, 0 }
 0x3f0   :  { %3475 = vmatpush3.bf16.msra.mxu0 %v312_v49 }
 0x3f1   :  { %3486 = vmatprep.subr.bf16.mxu0 %v3884_v7 }
 0x3f2   :  { %v412_v50 = vpop.xlane.xlu1 %411 }
 0x3f3   :  { %v413_v52 = vsub.f32 %v4130_v51, %v412_v50 }
 0x3f5   :  { %v414_v53 = vmul.f32 1.442695, %v413_v52 }
 0x3f6   :  { %v423_v62 = vpop.permute.xlu1 %422 }
 0x3f7   :  { %3772 = vpow2.f32 %v414_v53 }
 0x3fc   :  { %v3771_v54 = vpop.eup %3770 }
 0x3fd   :  { %v299_v55 = vsel %vm292_vm4, %v3771_v54, 0.0 }
 0x3fe   :  { %300 = vadd.xlane.f32.xlu0 %v299_v55 }
 0x404   :  { %v4163_v56 = vpop.eup %3772 }
 0x405   :  { %v416_v44 = vsel %vm292_vm4, %v4163_v56, 0.0 }
 0x406   :  { %417 = vadd.xlane.f32.xlu1 %v416_v44 }
 0x417   :  { %785 = vrot.lane.b32.xlu1 %v4062_v17, %s3889_s2 }
 0x41f   :  { %v536_v57 = vpop.xlane.xlu0 %535 }
 0x420   :  { %v537_v58 = vsub.f32 %v533_v23, %v536_v57 }
 0x422   :  { %v538_v59 = vmul.f32 1.442695, %v537_v58 }
 0x423   :  { %v652_v51 = vpop.xlane.xlu0 %651 }
 0x424   :  { %3774 = vpow2.f32 %v538_v59  ;;  %v653_v1 = vsub.f32 %v649_v24, %v652_v51 }
 0x426   :  { %v654_v2 = vmul.f32 1.442695, %v653_v1 }
 0x427   :  { %v891_v3 = vpop.xlane.xlu1 %890  ;;  %v775_v4 = vpop.xlane.xlu0 %774 }
 0x428   :  { %v776_v5 = vsub.f32 %v772_v35, %v775_v4  ;;  %3776 = vpow2.f32 %v654_v2  ;;  %v892_v6 = vsub.f32 %v888_v36, %v891_v3  ;;  %v428_v35 = vsel %vm310_vm5, %v423_v62, 0 }
 0x42a   :  { %v777_v8 = vmul.f32 1.442695, %v776_v5  ;;  %v893_v9 = vmul.f32 1.442695, %v892_v6 }
 0x42b   :  { %v1014_v22 = vpop.xlane.xlu0 %1013  ;;  %v1130_v24 = vpop.xlane.xlu1 %1129 }
 0x42c   :  { %3778 = vpow2.f32 %v777_v8  ;;  %v1015_v23 = vsub.f32 %v1011_v40, %v1014_v22  ;;  %v1131_v25 = vsub.f32 %v4151_v41, %v1130_v24 }
 0x42d   :  { %3780 = vpow2.f32 %v893_v9 }
 0x42e   :  { %v1016_v13 = vmul.f32 1.442695, %v1015_v23  ;;  %v1132_v26 = vmul.f32 1.442695, %v1131_v25 }
 0x430   :  { %3782 = vpow2.f32 %v1016_v13 }
 0x431   :  { %v3775_v10 = vpop.eup %3774  ;;  %3784 = vpow2.f32 %v1132_v26 }
 0x432   :  { %v540_v11 = vsel %vm292_vm4, %v3775_v10, 0.0 }
 0x433   :  { %541 = vadd.xlane.f32.xlu0 %v540_v11 }
 0x435   :  { %v4170_v12 = vpop.eup %3776 }
 0x436   :  { %v656_v14 = vsel %vm292_vm4, %v4170_v12, 0.0 }
 0x439   :  { %v4174_v16 = vpop.eup %3778 }
 0x43a   :  { %v779_v18 = vsel %vm292_vm4, %v4174_v16, 0.0  ;;  %v4178_v20 = vpop.eup %3780 }
 0x43b   :  { %657 = vadd.xlane.f32.xlu1 %v656_v14  ;;  %v895_v21 = vsel %vm292_vm4, %v4178_v20, 0.0 }
 0x43d   :  { %v4187_v27 = vpop.eup %3782 }
 0x43e   :  { %v1018_v28 = vsel %vm292_vm4, %v4187_v27, 0.0  ;;  %v4191_v29 = vpop.eup %3784 }
 0x43f   :  { %780 = vadd.xlane.f32.xlu1 %v779_v18 }
 0x443   :  { %896 = vadd.xlane.f32.xlu1 %v895_v21 }
 0x449   :  { %662 = vrot.lane.b32.xlu0 %v4056_v15, %s3890_s24  ;;  %v1134_v15 = vsel %vm292_vm4, %v4191_v29, 0.0 }
 0x454   :  { %901 = vrot.lane.b32.xlu1 %v4062_v17, %s3890_s24  ;;  %v547_v17 = vpop.permute.xlu0 %546 }
 0x468   :  { %1019 = vadd.xlane.f32.xlu0 %v1018_v28 }
 0x478   :  { %1135 = vadd.xlane.f32.xlu1 %v1134_v15 }
 0x47e   :  { %1024 = vrot.lane.b32.xlu0 %v4072_v19, %s3889_s2 }
 0x487   :  { %v301_v30 = vpop.xlane.xlu0 %300 }
 0x488   :  { %3786 = vrcp.f32 %v301_v30 }
 0x489   :  { %1140 = vrot.lane.b32.xlu1 %v4072_v19, %s3890_s24  ;;  %v552_v19 = vsel %vm310_vm5, %v547_v17, 0 }
 0x48f   :  { %v418_v31 = vpop.xlane.xlu1 %417 }
 0x490   :  { %3788 = vrcp.f32 %v418_v31 }
 0x493   :  { %v786_v40 = vpop.permute.xlu1 %785 }
 0x494   :  { %v791_v55 = vsel %vm310_vm5, %v786_v40, 0 }
 0x495   :  { %v3787_v32 = vpop.eup %3786 }
 0x496   :  { %v303_v33 = vmul.f32 %v3787_v32, %v3771_v54 }
 0x498   :  { %v304_v34 = vpack.c.bf16 %v303_v33, %v303_v33 }
 0x49a   :  { %3477 = vmatmul.mubr.msk.bf16.vlgmr.msra.gmra.mxu0 %vm292_vm4, %v304_v34 }
 0x49b   :  { %3487 = vmatpush3.bf16.msra.mxu0 %v428_v35  ;;  %3488 = vmatprep.mubr.msk.bf16.mxu0 %vm3885_vm2, %v3884_v7 }
 0x49c   :  { %3498 = vmatprep.subr.bf16.mxu0 %v3884_v7 }
 0x49d   :  { %v3789_v36 = vpop.eup %3788 }
 0x49e   :  { %v420_v37 = vmul.f32 %v3789_v36, %v4163_v56 }
 0x4a0   :  { %v421_v38 = vpack.c.bf16 %v420_v37, %v420_v37 }
 0x4a2   :  { %3489 = vmatmul.mubr.msk.bf16.vlgmr.msra.gmra.mxu0 %vm292_vm4, %v421_v38 }
 0x4a3   :  { %3499 = vmatpush3.bf16.msra.mxu0 %v552_v19  ;;  %3500 = vmatprep.mubr.msk.bf16.mxu0 %vm3885_vm2, %v3884_v7 }
 0x4a4   :  { %3510 = vmatprep.subr.bf16.mxu0 %v3884_v7 }
 0x4bc   :  { %v542_v39 = vpop.xlane.xlu0 %541 }
 0x4bd   :  { %3790 = vrcp.f32 %v542_v39 }
 0x4c0   :  { %v663_v46 = vpop.permute.xlu0 %662 }
 0x4c1   :  { %v668_v49 = vsel %vm310_vm5, %v663_v46, 0 }
 0x4c4   :  { %v658_v41 = vpop.xlane.xlu1 %657 }
 0x4c5   :  { %3792 = vrcp.f32 %v658_v41  ;;  %v3742_v41 = vld [vmem:[%s4708_s6 + $0x8] sm:$0xff]  }
 0x4c6   :  { %3564 = vmatprep.subr.bf16.mxu1 %v3742_v41 }
 0x4c7   :  { %3565 = vmatpush3.bf16.msra.mxu1 %v3742_v41 }
 0x4c8   :  { %v781_v42 = vpop.xlane.xlu1 %780 }
 0x4c9   :  { %3794 = vrcp.f32 %v781_v42 }
 0x4ca   :  { %v3791_v43 = vpop.eup %3790 }
 0x4cb   :  { %v544_v45 = vmul.f32 %v3791_v43, %v3775_v10  ;;  %v3743_v43 = vld [vmem:[%s4708_s6] sm:$0xff]  }
 0x4cc   :  { %v897_v48 = vpop.xlane.xlu1 %896  ;;  %3566 = vmatprep.subr.bf16.mxu1 %v3743_v43 }
 0x4cd   :  { %v545_v47 = vpack.c.bf16 %v544_v45, %v544_v45  ;;  %3796 = vrcp.f32 %v897_v48  ;;  %3567 = vmatpush3.bf16.msra.mxu1 %v3743_v43 }
 0x4cf   :  { %3501 = vmatmul.mubr.msk.bf16.vlgmr.msra.gmra.mxu0 %vm292_vm4, %v545_v47 }
 0x4d0   :  { %3511 = vmatpush3.bf16.msra.mxu0 %v668_v49  ;;  %3512 = vmatprep.mubr.msk.bf16.mxu0 %vm3885_vm2, %v3884_v7  ;;  %v902_v44 = vpop.permute.xlu1 %901 }
 0x4d1   :  { %3522 = vmatprep.subr.bf16.mxu0 %v3884_v7  ;;  %v907_v59 = vsel %vm310_vm5, %v902_v44, 0 }
 0x4d2   :  { %v3793_v50 = vpop.eup %3792 }
 0x4d3   :  { %v660_v52 = vmul.f32 %v3793_v50, %v4170_v12 }
 0x4d5   :  { %v661_v53 = vpack.c.bf16 %v660_v52, %v660_v52 }
 0x4d6   :  { %v3795_v54 = vpop.eup %3794 }
 0x4d7   :  { %3513 = vmatmul.mubr.msk.bf16.vlgmr.msra.gmra.mxu0 %vm292_vm4, %v661_v53  ;;  %v783_v56 = vmul.f32 %v3795_v54, %v4174_v16 }
 0x4d8   :  { %3523 = vmatpush3.bf16.msra.mxu0 %v791_v55  ;;  %3524 = vmatprep.mubr.msk.bf16.mxu0 %vm3885_vm2, %v3884_v7 }
 0x4d9   :  { %3534 = vmatprep.subr.bf16.mxu0 %v3884_v7  ;;  %v784_v57 = vpack.c.bf16 %v783_v56, %v783_v56 }
 0x4da   :  { %v3797_v58 = vpop.eup %3796 }
 0x4db   :  { %v899_v62 = vmul.f32 %v3797_v58, %v4178_v20 }
 0x4dd   :  { %v900_v51 = vpack.c.bf16 %v899_v62, %v899_v62  ;;  %v3258_v62 = vld [vmem:[%s4709_s7] ss:$0 sm:$0xff] }
 0x4df   :  { %3525 = vmatmul.mubr.msk.bf16.vlgmr.msra.gmra.mxu0 %vm292_vm4, %v784_v57 }
 0x4e0   :  { %3535 = vmatpush3.bf16.msra.mxu0 %v907_v59  ;;  %3536 = vmatprep.mubr.msk.bf16.mxu0 %vm3885_vm2, %v3884_v7 }
 0x4e1   :  { %3546 = vmatprep.subr.bf16.mxu0 %v3884_v7 }
 0x4e7   :  { %3537 = vmatmul.mubr.msk.bf16.vlgmr.msra.gmra.mxu0 %vm292_vm4, %v900_v51 }
 0x4e8   :  { %3548 = vmatprep.mubr.msk.bf16.mxu0 %vm3885_vm2, %v3884_v7 }
 0x4f1   :  { %v1020_v1 = vpop.xlane.xlu0 %1019 }
 0x4f2   :  { %3798 = vrcp.f32 %v1020_v1 }
 0x4f5   :  { %v1025_v2 = vpop.permute.xlu0 %1024 }
 0x4f6   :  { %v1030_v3 = vsel %vm310_vm5, %v1025_v2, 0 }
 0x4f7   :  { %3547 = vmatpush3.bf16.msra.mxu0 %v1030_v3 }
 0x4f8   :  { %3558 = vmatprep.subr.bf16.mxu0 %v3884_v7 }
 0x4ff   :  { %v3799_v4 = vpop.eup %3798 }
 0x500   :  { %v1022_v5 = vmul.f32 %v3799_v4, %v4187_v27 }
 0x501   :  { %v1136_v6 = vpop.xlane.xlu1 %1135 }
 0x502   :  { %3800 = vrcp.f32 %v1136_v6  ;;  %v1023_v8 = vpack.c.bf16 %v1022_v5, %v1022_v5 }
 0x504   :  { %3549 = vmatmul.mubr.msk.bf16.vlgmr.msra.gmra.mxu0 %vm292_vm4, %v1023_v8 }
 0x505   :  { %v1141_v9 = vpop.permute.xlu1 %1140  ;;  %3560 = vmatprep.mubr.msk.bf16.mxu0 %vm3885_vm2, %v3884_v7 }
 0x506   :  { %v1146_v10 = vsel %vm310_vm5, %v1141_v9, 0 }
 0x507   :  { %3559 = vmatpush3.bf16.msra.mxu0 %v1146_v10 }
 0x50f   :  { %v3801_v11 = vpop.eup %3800 }
 0x510   :  { %v1138_v12 = vmul.f32 %v3801_v11, %v4191_v29 }
 0x512   :  { %v1139_v14 = vpack.c.bf16 %v1138_v12, %v1138_v12 }
 0x514   :  { %3561 = vmatmul.mubr.msk.bf16.vlgmr.msra.gmra.mxu0 %vm292_vm4, %v1139_v14 }
 0x55a   :  { %v348_v16 = vpop.f32.mrf.mxu0 }
 0x55b   :  { %354 = vst.msk [vmem:[#allocation4] sm:$0xff] %vm239_vm3, %v348_v16 }
 0x55c   :  { %v3478_v18 = vpop.f32.mrf.mxu0 }
 0x55e   :  { %v351_v20 = vpop.f32.mrf.mxu0 }
 0x560   :  { %v3479_v21 = vpop.f32.mrf.mxu0 }
 0x562   :  { %v464_v22 = vpop.f32.mrf.mxu0 }
 0x563   :  { %471 = vrot.lane.b32.xlu0 %v464_v22, %s3891_s3 }
 0x564   :  { %v3490_v23 = vpop.f32.mrf.mxu0 }
 0x566   :  { %v467_v13 = vpop.f32.mrf.mxu0 }
 0x568   :  { %v3491_v24 = vpop.f32.mrf.mxu0 }
 0x58f   :  { %v588_v25 = vpop.f32.mrf.mxu0 }
 0x590   :  { %594 = vst.msk [vmem:[#allocation4 + $0x8] sm:$0xff] %vm239_vm3, %v588_v25 }
 0x591   :  { %v3502_v26 = vpop.f32.mrf.mxu0 }
 0x593   :  { %v591_v27 = vpop.f32.mrf.mxu0 }
 0x595   :  { %v3503_v28 = vpop.f32.mrf.mxu0 }
 0x597   :  { %v704_v29 = vpop.f32.mrf.mxu0 }
 0x598   :  { %711 = vrot.lane.b32.xlu1 %v704_v29, %s3891_s3 }
 0x599   :  { %v3514_v15 = vpop.f32.mrf.mxu0 }
 0x59b   :  { %v707_v17 = vpop.f32.mrf.mxu0 }
 0x59d   :  { %v3515_v30 = vpop.f32.mrf.mxu0 }
 0x59f   :  { %v827_v31 = vpop.f32.mrf.mxu0 }
 0x5a0   :  { %833 = vst.msk [vmem:[#allocation4 + $0x10] sm:$0xff] %vm239_vm3, %v827_v31 }
 0x5a1   :  { %v3526_v32 = vpop.f32.mrf.mxu0 }
 0x5a3   :  { %v830_v33 = vpop.f32.mrf.mxu0 }
 0x5a4   :  { %v3744_v33 = vld [vmem:[%s4710_s10 + $0x8] sm:$0xff]  }
 0x5a5   :  { %v3527_v34 = vpop.f32.mrf.mxu0  ;;  %3572 = vmatprep.subr.bf16.mxu0 %v3744_v33 }
 0x5a6   :  { %3573 = vmatpush3.bf16.msra.mxu0 %v3744_v33  ;;  %v3745_v34 = vld [vmem:[%s4710_s10] sm:$0xff]  }
 0x5a7   :  { %v943_v35 = vpop.f32.mrf.mxu0  ;;  %3574 = vmatprep.subr.bf16.mxu0 %v3745_v34 }
 0x5a8   :  { %950 = vrot.lane.b32.xlu0 %v943_v35, %s3891_s3 }
 0x5a9   :  { %v3538_v36 = vpop.f32.mrf.mxu0 }
 0x5aa   :  { %3575 = vmatpush3.bf16.msra.mxu0 %v3745_v34 }
 0x5ab   :  { %v946_v37 = vpop.f32.mrf.mxu0 }
 0x5ad   :  { %v3539_v38 = vpop.f32.mrf.mxu0 }
 0x5c4   :  { %v1066_v19 = vpop.f32.mrf.mxu0 }
 0x5c5   :  { %1072 = vst.msk [vmem:[#allocation4 + $0x18] sm:$0xff] %vm239_vm3, %v1066_v19 }
 0x5c6   :  { %v3550_v39 = vpop.f32.mrf.mxu0 }
 0x5c8   :  { %v1069_v40 = vpop.f32.mrf.mxu0 }
 0x5ca   :  { %v3551_v42 = vpop.f32.mrf.mxu0 }
 0x5d4   :  { %v1182_v45 = vpop.f32.mrf.mxu0 }
 0x5d5   :  { %1189 = vrot.lane.b32.xlu1 %v1182_v45, %s3891_s3  ;;  %v472_v46 = vpop.permute.xlu0 %471 }
 0x5d6   :  { %475 = vst.msk [vmem:[#allocation4] sm:$0xff] %vm474_vm6, %v472_v46  ;;  %v3562_v47 = vpop.f32.mrf.mxu0 }
 0x5d8   :  { %v1185_v48 = vpop.f32.mrf.mxu0 }
 0x5d9   :  { %v3263_v48 = vld [vmem:[%s4711_s8] ss:$0 sm:$0xff] }
 0x5da   :  { %v3563_v49 = vpop.f32.mrf.mxu0 }
 0x5dd   :  { %v1193_v52 = vld [vmem:[#allocation4] sm:$0xff] }
 0x60a   :  { %v712_v50 = vpop.permute.xlu1 %711 }
 0x60b   :  { %714 = vst.msk [vmem:[#allocation4 + $0x8] sm:$0xff] %vm474_vm6, %v712_v50  ;;  %v3264_v50 = vld [vmem:[%s4712_s9] ss:$0 sm:$0xff] }
 0x612   :  { %v1194_v53 = vld [vmem:[#allocation4 + $0x8] sm:$0xff] }
 0x613   :  { %v1201_v54 = vpack.c.bf16 %v1194_v53, %v1193_v52 }
 0x615   :  { %3568 = vmatprep.mubr.msk.bf16.mxu1 %vm66_vm0, %v1201_v54 }
 0x61a   :  { %v951_v55 = vpop.permute.xlu0 %950 }
 0x61b   :  { %953 = vst.msk [vmem:[#allocation4 + $0x10] sm:$0xff] %vm474_vm6, %v951_v55 }
 0x622   :  { %v1195_v44 = vld [vmem:[#allocation4 + $0x10] sm:$0xff] }
 0x647   :  { %v1190_v56 = vpop.permute.xlu1 %1189 }
 0x648   :  { %1192 = vst.msk [vmem:[#allocation4 + $0x18] sm:$0xff] %vm474_vm6, %v1190_v56 }
 0x64f   :  { %v1196_v57 = vld [vmem:[#allocation4 + $0x18] sm:$0xff] }
 0x650   :  { %v1202_v58 = vpack.c.bf16 %v1196_v57, %v1195_v44 }
 0x652   :  { %3569 = vmatmul.mubr.msk.bf16.vlgmr.msra.gmra.mxu1 %vm66_vm0, %v1202_v58 }
 0x712   :  { %v3570_v59 = vpop.f32.mrf.mxu1 }
 0x713   :  { %v1271_v1 = vadd.f32 %v3570_v59, %v3258_v62 }
 0x714   :  { %v1262_v51 = vpop.f32.mrf.mxu1 }
 0x715   :  { %v1263_v2 = vadd.f32 %v3258_v62, %v1262_v51  ;;  %v1279_v10 = vadd.f32 %v1271_v1, %v4030_v63 }
 0x716   :  { %v3571_v3 = vpop.f32.mrf.mxu1 }
 0x717   :  { %v1277_v4 = vadd.f32 %v1263_v2, %v4023_v60  ;;  %v1274_v6 = vadd.f32 %v3571_v3, %v3258_v62  ;;  %v1289_v14 = vsel %vm66_vm0, %v1279_v10, 0.0 }
 0x718   :  { %v1265_v5 = vpop.f32.mrf.mxu1 }
 0x719   :  { %v1266_v8 = vadd.f32 %v3258_v62, %v1265_v5  ;;  %v1283_v9 = vsel %vm66_vm0, %v1277_v4, 0.0  ;;  %v1280_v16 = vadd.f32 %v1274_v6, %v4032_v0  ;;  %v3746_v6 = vld [vmem:[%s4713_s12 + $0x18] sm:$0xff]  }
 0x71a   :  { %1284 = vadd.xlane.f32.xlu0 %v1283_v9  ;;  %3580 = vmatprep.subr.bf16.mxu1 %v3746_v6  ;;  %v3748_v9 = vld [vmem:[%s4713_s12 + $0x8] sm:$0xff]  }
 0x71b   :  { %v1278_v11 = vadd.f32 %v1266_v8, %v4025_v61  ;;  %v1292_v60 = vsel %vm66_vm0, %v1280_v16, 0.0  ;;  %3581 = vmatpush3.bf16.msra.mxu1 %v3746_v6  ;;  %v3747_v8 = vld [vmem:[%s4713_s12 + $0x10] sm:$0xff]  }
 0x71c   :  { %3582 = vmatprep.subr.bf16.mxu1 %v3747_v8 }
 0x71d   :  { %v1286_v12 = vsel %vm66_vm0, %v1278_v11, 0.0 }
 0x71e   :  { %1287 = vadd.xlane.f32.xlu1 %v1286_v12  ;;  %1290 = vadd.xlane.f32.xlu0 %v1289_v14 }
 0x71f   :  { %3583 = vmatpush3.bf16.msra.mxu1 %v3747_v8 }
 0x720   :  { %3584 = vmatprep.subr.bf16.mxu1 %v3748_v9 }
 0x722   :  { %1293 = vadd.xlane.f32.xlu0 %v1292_v60 }
 0x723   :  { %3585 = vmatpush3.bf16.msra.mxu1 %v3748_v9 }
 0x7a3   :  { %v1285_v18 = vpop.xlane.xlu0 %1284 }
 0x7a4   :  { %v1295_v20 = vmul.f32 0.03125, %v1285_v18 }
 0x7a6   :  { %v1299_v21 = vsub.f32 %v1277_v4, %v1295_v20 }
 0x7a7   :  { %v1288_v22 = vpop.xlane.xlu1 %1287  ;;  %v1291_v23 = vpop.xlane.xlu0 %1290 }
 0x7a8   :  { %v1296_v63 = vmul.f32 0.03125, %v1288_v22  ;;  %v1297_v13 = vmul.f32 0.03125, %v1291_v23  ;;  %v1303_v24 = vmul.f32 %v1299_v21, %v1299_v21 }
 0x7aa   :  { %v1300_v61 = vsub.f32 %v1278_v11, %v1296_v63  ;;  %v1301_v25 = vsub.f32 %v1279_v10, %v1297_v13  ;;  %v1307_v26 = vsel %vm66_vm0, %v1303_v24, 0.0  ;;  %v3749_v10 = vld [vmem:[%s4713_s12] sm:$0xff]  }
 0x7ab   :  { %1308 = vadd.xlane.f32.xlu0 %v1307_v26  ;;  %v1294_v27 = vpop.xlane.xlu0 %1293  ;;  %3586 = vmatprep.subr.bf16.mxu1 %v3749_v10  ;;  %v3265_v11 = vld [vmem:[%s4714_s11] ss:$0 sm:$0xff] }
 0x7ac   :  { %v1298_v0 = vmul.f32 0.03125, %v1294_v27  ;;  %v1304_v28 = vmul.f32 %v1300_v61, %v1300_v61  ;;  %v1305_v29 = vmul.f32 %v1301_v25, %v1301_v25  ;;  %3587 = vmatpush3.bf16.msra.mxu1 %v3749_v10 }
 0x7ad   :  { %3606 = vmatprep.subr.bf16.mxu1 %v3884_v7 }
 0x7ae   :  { %v1302_v15 = vsub.f32 %v1280_v16, %v1298_v0  ;;  %v1310_v17 = vsel %vm66_vm0, %v1304_v28, 0.0  ;;  %v1313_v30 = vsel %vm66_vm0, %v1305_v29, 0.0 }
 0x7af   :  { %1311 = vadd.xlane.f32.xlu1 %v1310_v17  ;;  %1314 = vadd.xlane.f32.xlu0 %v1313_v30 }
 0x7b0   :  { %v1306_v31 = vmul.f32 %v1302_v15, %v1302_v15 }
 0x7b2   :  { %v1316_v32 = vsel %vm66_vm0, %v1306_v31, 0.0 }
 0x7b3   :  { %1317 = vadd.xlane.f32.xlu1 %v1316_v32 }
 0x834   :  { %v1309_v35 = vpop.xlane.xlu0 %1308 }
 0x835   :  { %v1319_v36 = vmul.f32 0.03125, %v1309_v35 }
 0x837   :  { %v1323_v37 = vadd.f32 1e-12, %v1319_v36 }
 0x838   :  { %v1312_v38 = vpop.xlane.xlu1 %1311  ;;  %v1315_v19 = vpop.xlane.xlu0 %1314 }
 0x839   :  { %3802 = vrsqrt.f32 %v1323_v37  ;;  %v1320_v39 = vmul.f32 0.03125, %v1312_v38  ;;  %v1321_v40 = vmul.f32 0.03125, %v1315_v19 }
 0x83b   :  { %v1324_v41 = vadd.f32 1e-12, %v1320_v39  ;;  %v1325_v42 = vadd.f32 1e-12, %v1321_v40  ;;  %v3270_v39 = vld [vmem:[%s4715_s13] ss:$0 sm:$0xff] }
 0x83c   :  { %v1318_v43 = vpop.xlane.xlu1 %1317 }
 0x83d   :  { %3804 = vrsqrt.f32 %v1324_v41  ;;  %v1322_v45 = vmul.f32 0.03125, %v1318_v43 }
 0x83e   :  { %3806 = vrsqrt.f32 %v1325_v42 }
 0x83f   :  { %v1326_v46 = vadd.f32 1e-12, %v1322_v45 }
 0x841   :  { %3808 = vrsqrt.f32 %v1326_v46 }
 0x846   :  { %v3803_v47 = vpop.eup %3802 }
 0x847   :  { %v1331_v49 = vmul.f32 %v3803_v47, %v1299_v21 }
 0x849   :  { %v1341_v52 = vmul.f32 %v3263_v48, %v1331_v49 }
 0x84a   :  { %v3805_v53 = vpop.eup %3804 }
 0x84b   :  { %v3807_v54 = vpop.eup %3806  ;;  %v1332_v55 = vmul.f32 %v3805_v53, %v1300_v61  ;;  %v4287_v56 = vadd.f32 %v3264_v50, %v1341_v52 }
 0x84c   :  { %v1333_v44 = vmul.f32 %v3807_v54, %v1301_v25 }
 0x84d   :  { %v1342_v57 = vmul.f32 %v3263_v48, %v1332_v55  ;;  %1355 = vst.msk [vmem:[#allocation2] sm:$0xff] %vm66_vm0, %v4287_v56 }
 0x84e   :  { %v3809_v58 = vpop.eup %3808  ;;  %v1343_v59 = vmul.f32 %v3263_v48, %v1333_v44 }
 0x84f   :  { %v1334_v62 = vmul.f32 %v3809_v58, %v1302_v15  ;;  %v4291_v51 = vadd.f32 %v3264_v50, %v1342_v57 }
 0x850   :  { %v4293_v1 = vadd.f32 %v3264_v50, %v1343_v59 }
 0x851   :  { %v1344_v2 = vmul.f32 %v3263_v48, %v1334_v62  ;;  %1356 = vst.msk [vmem:[#allocation2 + $0x8] sm:$0xff] %vm66_vm0, %v4291_v51  ;;  %v1363_v3 = vpack.c.bf16 %v4291_v51, %v4287_v56 }
 0x852   :  { %1357 = vst.msk [vmem:[#allocation2 + $0x10] sm:$0xff] %vm66_vm0, %v4293_v1 }
 0x853   :  { %3576 = vmatprep.mubr.msk.bf16.mxu0 %vm66_vm0, %v1363_v3  ;;  %v4302_v4 = vadd.f32 %v3264_v50, %v1344_v2 }
 0x855   :  { %1358 = vst.msk [vmem:[#allocation2 + $0x18] sm:$0xff] %vm66_vm0, %v4302_v4  ;;  %v1364_v5 = vpack.c.bf16 %v4302_v4, %v4293_v1 }
 0x857   :  { %3577 = vmatmul.mubr.msk.bf16.vlgmr.msra.gmra.mxu0 %vm66_vm0, %v1364_v5 }
 0x917   :  { %v3578_v12 = vpop.f32.mrf.mxu0 }
 0x918   :  { %v1433_v14 = vadd.f32 %v3578_v12, %v3265_v11 }
 0x919   :  { %v1424_v16 = vpop.f32.mrf.mxu0 }
 0x91a   :  { %v1425_v60 = vadd.f32 %v3265_v11, %v1424_v16  ;;  %v1445_v18 = vmul.f32 0.70710677, %v1433_v14  ;;  %v1441_v32 = vmul.f32 0.5, %v1433_v14 }
 0x91b   :  { %v3579_v20 = vpop.f32.mrf.mxu0 }
 0x91c   :  { %v1443_v21 = vmul.f32 0.70710677, %v1425_v60  ;;  %v1436_v22 = vadd.f32 %v3579_v20, %v3265_v11  ;;  %v1439_v17 = vmul.f32 0.5, %v1425_v60  ;;  %v3751_v20 = vld [vmem:[%s4727_s23 + $0x10] sm:$0xff]  }
 0x91d   :  { %v1427_v23 = vpop.f32.mrf.mxu0 }
 0x91e   :  { %3810 = verf.f32 %v1443_v21  ;;  %v1446_v63 = vmul.f32 0.70710677, %v1436_v22  ;;  %v1428_v13 = vadd.f32 %v3265_v11, %v1427_v23  ;;  %v1442_v15 = vmul.f32 0.5, %v1436_v22 }
 0x91f   :  { %3812 = verf.f32 %v1445_v18  ;;  %v3750_v18 = vld [vmem:[%s4727_s23 + $0x18] sm:$0xff]  }
 0x920   :  { %3814 = verf.f32 %v1446_v63  ;;  %v1444_v24 = vmul.f32 0.70710677, %v1428_v13  ;;  %v1440_v30 = vmul.f32 0.5, %v1428_v13  ;;  %3592 = vmatprep.subr.bf16.mxu0 %v3750_v18 }
 0x921   :  { %3593 = vmatpush3.bf16.msra.mxu0 %v3750_v18 }
 0x922   :  { %3816 = verf.f32 %v1444_v24  ;;  %3594 = vmatprep.subr.bf16.mxu0 %v3751_v20 }
 0x925   :  { %3595 = vmatpush3.bf16.msra.mxu0 %v3751_v20 }
 0x926   :  { %3600 = vmatprep.subr.bf16.mxu0 %v3884_v7 }
 0x92b   :  { %v3811_v61 = vpop.eup %3810 }
 0x92c   :  { %v3813_v25 = vpop.eup %3812  ;;  %v1451_v27 = vadd.f32 1.0, %v3811_v61 }
 0x92d   :  { %v3815_v26 = vpop.eup %3814  ;;  %v1453_v29 = vadd.f32 1.0, %v3813_v25 }
 0x92e   :  { %v1454_v0 = vadd.f32 1.0, %v3815_v26  ;;  %v1455_v34 = vmul.f32 %v1451_v27, %v1439_v17 }
 0x92f   :  { %v3817_v28 = vpop.eup %3816  ;;  %v1457_v36 = vmul.f32 %v1453_v29, %v1441_v32 }
 0x930   :  { %v1452_v31 = vadd.f32 1.0, %v3817_v28  ;;  %v1458_v33 = vmul.f32 %v1454_v0, %v1442_v15  ;;  %v3277_v15 = vld [vmem:[%s4716_s14] ss:$0 sm:$0xff] }
 0x932   :  { %v1456_v35 = vmul.f32 %v1452_v31, %v1440_v30  ;;  %v1468_v38 = vpack.c.bf16 %v1458_v33, %v1457_v36  ;;  %v3278_v30 = vld [vmem:[%s4717_s15] ss:$0 sm:$0xff] }
 0x934   :  { %v1467_v37 = vpack.c.bf16 %v1456_v35, %v1455_v34 }
 0x936   :  { %3588 = vmatprep.mubr.msk.bf16.mxu1 %vm1500_vm7, %v1467_v37 }
 0x937   :  { %3589 = vmatmul.mubr.msk.bf16.vlgmr.msra.gmra.mxu1 %vm1500_vm7, %v1468_v38 }
 0x938   :  { %3608 = vmatprep.mubr.msk.bf16.mxu1 %vm3885_vm2, %v3884_v7 }
 0x9f7   :  { %v3590_v19 = vpop.f32.mrf.mxu1 }
 0x9f8   :  { %v1550_v41 = vadd.f32 %v3590_v19, %v3270_v39 }
 0x9f9   :  { %v1541_v40 = vpop.f32.mrf.mxu1 }
 0x9fa   :  { %v1542_v42 = vadd.f32 %v3270_v39, %v1541_v40  ;;  %v1558_v50 = vadd.f32 %v1550_v41, %v4293_v1 }
 0x9fb   :  { %v3591_v43 = vpop.f32.mrf.mxu1 }
 0x9fc   :  { %v1556_v45 = vadd.f32 %v1542_v42, %v4287_v56  ;;  %v1553_v47 = vadd.f32 %v3591_v43, %v3270_v39  ;;  %v1568_v54 = vsel %vm66_vm0, %v1558_v50, 0.0 }
 0x9fd   :  { %v1544_v46 = vpop.f32.mrf.mxu1 }
 0x9fe   :  { %v1545_v48 = vadd.f32 %v3270_v39, %v1544_v46  ;;  %v1562_v49 = vsel %vm66_vm0, %v1556_v45, 0.0  ;;  %v1559_v55 = vadd.f32 %v1553_v47, %v4302_v4 }
 0x9ff   :  { %1563 = vadd.xlane.f32.xlu0 %v1562_v49 }
 0xa00   :  { %v1557_v52 = vadd.f32 %v1545_v48, %v4291_v51  ;;  %v1571_v56 = vsel %vm66_vm0, %v1559_v55, 0.0 }
 0xa02   :  { %v1565_v53 = vsel %vm66_vm0, %v1557_v52, 0.0 }
 0xa03   :  { %1566 = vadd.xlane.f32.xlu1 %v1565_v53  ;;  %1569 = vadd.xlane.f32.xlu0 %v1568_v54 }
 0xa07   :  { %1572 = vadd.xlane.f32.xlu1 %v1571_v56 }
 0xa88   :  { %v1564_v44 = vpop.xlane.xlu0 %1563 }
 0xa89   :  { %v1574_v57 = vmul.f32 0.03125, %v1564_v44 }
 0xa8b   :  { %v1578_v58 = vsub.f32 %v1556_v45, %v1574_v57 }
 0xa8c   :  { %v1567_v59 = vpop.xlane.xlu1 %1566  ;;  %v1570_v62 = vpop.xlane.xlu0 %1569 }
 0xa8d   :  { %v1575_v1 = vmul.f32 0.03125, %v1567_v59  ;;  %v1576_v2 = vmul.f32 0.03125, %v1570_v62  ;;  %v1582_v3 = vmul.f32 %v1578_v58, %v1578_v58 }
 0xa8f   :  { %v1579_v51 = vsub.f32 %v1557_v52, %v1575_v1  ;;  %v1580_v5 = vsub.f32 %v1558_v50, %v1576_v2  ;;  %v1586_v6 = vsel %vm66_vm0, %v1582_v3, 0.0  ;;  %v3284_v52 = vld [vmem:[%s4706_s5 + $0x1] ss:$0 sm:$0xff] }
 0xa90   :  { %v1573_v8 = vpop.xlane.xlu1 %1572  ;;  %1587 = vadd.xlane.f32.xlu0 %v1586_v6 }
 0xa91   :  { %v1577_v4 = vmul.f32 0.03125, %v1573_v8  ;;  %v1583_v9 = vmul.f32 %v1579_v51, %v1579_v51  ;;  %v1584_v10 = vmul.f32 %v1580_v5, %v1580_v5 }
 0xa93   :  { %v1581_v11 = vsub.f32 %v1559_v55, %v1577_v4  ;;  %v1589_v12 = vsel %vm66_vm0, %v1583_v9, 0.0  ;;  %v1592_v14 = vsel %vm66_vm0, %v1584_v10, 0.0 }
 0xa94   :  { %1590 = vadd.xlane.f32.xlu1 %v1589_v12  ;;  %1593 = vadd.xlane.f32.xlu0 %v1592_v14 }
 0xa95   :  { %v1585_v16 = vmul.f32 %v1581_v11, %v1581_v11 }
 0xa97   :  { %v1595_v60 = vsel %vm66_vm0, %v1585_v16, 0.0 }
 0xa98   :  { %1596 = vadd.xlane.f32.xlu1 %v1595_v60 }
 0xb19   :  { %v1588_v21 = vpop.xlane.xlu0 %1587 }
 0xb1a   :  { %v1598_v22 = vmul.f32 0.03125, %v1588_v21 }
 0xb1c   :  { %v1602_v23 = vadd.f32 1e-12, %v1598_v22 }
 0xb1d   :  { %v1591_v63 = vpop.xlane.xlu1 %1590  ;;  %v1594_v13 = vpop.xlane.xlu0 %1593 }
 0xb1e   :  { %3818 = vrsqrt.f32 %v1602_v23  ;;  %v1599_v24 = vmul.f32 0.03125, %v1591_v63  ;;  %v1600_v61 = vmul.f32 0.03125, %v1594_v13 }
 0xb20   :  { %v1603_v25 = vadd.f32 1e-12, %v1599_v24  ;;  %v1604_v26 = vadd.f32 1e-12, %v1600_v61 }
 0xb21   :  { %v1597_v27 = vpop.xlane.xlu1 %1596 }
 0xb22   :  { %3820 = vrsqrt.f32 %v1603_v25  ;;  %v1601_v0 = vmul.f32 0.03125, %v1597_v27 }
 0xb23   :  { %3822 = vrsqrt.f32 %v1604_v26 }
 0xb24   :  { %v1605_v28 = vadd.f32 1e-12, %v1601_v0 }
 0xb26   :  { %3824 = vrsqrt.f32 %v1605_v28  ;;  %v3290_v28 = vld [vmem:[%s4707_s1] ss:$0 sm:$0xff] }
 0xb2b   :  { %v3819_v29 = vpop.eup %3818 }
 0xb2c   :  { %v1610_v17 = vmul.f32 %v3819_v29, %v1578_v58 }
 0xb2e   :  { %v1620_v31 = vmul.f32 %v3277_v15, %v1610_v17 }
 0xb2f   :  { %v3821_v32 = vpop.eup %3820 }
 0xb30   :  { %v3823_v33 = vpop.eup %3822  ;;  %v1630_v34 = vadd.f32 %v3278_v30, %v1620_v31  ;;  %v1611_v35 = vmul.f32 %v3821_v32, %v1579_v51 }
 0xb31   :  { %v1612_v36 = vmul.f32 %v3823_v33, %v1580_v5 }
 0xb32   :  { %1634 = vst.msk [vmem:[#allocation2] sm:$0xff] %vm66_vm0, %v1630_v34  ;;  %v1621_v37 = vmul.f32 %v3277_v15, %v1611_v35 }
 0xb33   :  { %v3825_v38 = vpop.eup %3824  ;;  %v1622_v19 = vmul.f32 %v3277_v15, %v1612_v36 }
 0xb34   :  { %v1631_v39 = vadd.f32 %v3278_v30, %v1621_v37  ;;  %v1613_v40 = vmul.f32 %v3825_v38, %v1581_v11 }
 0xb35   :  { %v1632_v41 = vadd.f32 %v3278_v30, %v1622_v19 }
 0xb36   :  { %1635 = vst.msk [vmem:[#allocation2 + $0x8] sm:$0xff] %vm66_vm0, %v1631_v39  ;;  %v1623_v42 = vmul.f32 %v3277_v15, %v1613_v40 }
 0xb37   :  { %1636 = vst.msk [vmem:[#allocation2 + $0x10] sm:$0xff] %vm66_vm0, %v1632_v41 }
 0xb38   :  { %v1633_v43 = vadd.f32 %v3278_v30, %v1623_v42 }
 0xb39   :  { %v4361_v45 = vld [vmem:[#allocation2] sm:$0xff] }
 0xb3a   :  { %1637 = vst.msk [vmem:[#allocation2 + $0x18] sm:$0xff] %vm66_vm0, %v1633_v43 }
 0xb3d   :  { %v4363_v46 = vld [vmem:[#allocation2 + $0x8] sm:$0xff] }
 0xb3e   :  { %v1647_v47 = vpack.c.bf16 %v4363_v46, %v4361_v45  ;;  %v4368_v48 = vld [vmem:[#allocation2 + $0x10] sm:$0xff] }
 0xb40   :  { %3596 = vmatprep.mubr.msk.bf16.mxu0 %vm66_vm0, %v1647_v47 }
 0xb41   :  { %v4370_v49 = vld [vmem:[#allocation2 + $0x18] sm:$0xff] }
 0xb42   :  { %v1648_v50 = vpack.c.bf16 %v4370_v49, %v4368_v48 }
 0xb44   :  { %3597 = vmatmul.mubr.msk.bf16.vlgmr.msra.gmra.mxu0 %vm66_vm0, %v1648_v50 }
 0xb45   :  { %3602 = vmatprep.mubr.msk.bf16.mxu0 %vm3885_vm2, %v3884_v7 }
 0xc04   :  { %v3598_v53 = vpop.f32.mrf.mxu0 }
 0xc05   :  { %v1718_v54 = vadd.f32 %v3598_v53, %v3284_v52 }
 0xc06   :  { %v1709_v55 = vpop.f32.mrf.mxu0 }
 0xc07   :  { %1726 = vst.msk [vmem:[#allocation3 + $0x10] sm:$0xff] %vm228_vm1, %v1718_v54  ;;  %v1710_v56 = vadd.f32 %v3284_v52, %v1709_v55 }
 0xc08   :  { %v3599_v44 = vpop.f32.mrf.mxu0 }
 0xc09   :  { %1724 = vst.msk [vmem:[#allocation3] sm:$0xff] %vm228_vm1, %v1710_v56  ;;  %v1721_v57 = vadd.f32 %v3599_v44, %v3284_v52 }
 0xc0a   :  { %v1712_v58 = vpop.f32.mrf.mxu0 }
 0xc0b   :  { %1727 = vst.msk [vmem:[#allocation3 + $0x18] sm:$0xff] %vm228_vm1, %v1721_v57  ;;  %v1713_v59 = vadd.f32 %v3284_v52, %v1712_v58 }
 0xc0d   :  { %1725 = vst.msk [vmem:[#allocation3 + $0x8] sm:$0xff] %vm228_vm1, %v1713_v59 }
 0xc0e   :  { %v2207_v51 = vld [vmem:[#allocation3 + $0x10] sm:$0xff] }
 0xc0f   :  { %v4396_v5 = vpack.c.bf16 %v2207_v51, %v2207_v51 }
 0xc10   :  { %v1847_v62 = vld [vmem:[#allocation3] sm:$0xff] }
 0xc11   :  { %v4384_v1 = vpack.c.bf16 %v1847_v62, %v1847_v62 }
 0xc12   :  { %v2564_v6 = vld [vmem:[#allocation3 + $0x18] sm:$0xff] }
 0xc13   :  { %1852 = vrot.lane.b32.xlu1 %v4384_v1, %s3886_s19  ;;  %1732 = vrot.lane.b32.xlu0 %v4384_v1, %s3887_s4  ;;  %v4406_v8 = vpack.c.bf16 %v2564_v6, %v2564_v6  ;;  %v3295_v6 = vld [vmem:[%s4707_s1 + $0x1] ss:$0 sm:$0xff] }
 0xc14   :  { %v2086_v2 = vld [vmem:[#allocation3 + $0x8] sm:$0xff] }
 0xc15   :  { %v4390_v3 = vpack.c.bf16 %v2086_v2, %v2086_v2 }
 0xc17   :  { %1850 = vrot.lane.b32.xlu1 %v4384_v1, %s3888_s20  ;;  %2091 = vrot.lane.b32.xlu0 %v4390_v3, %s3886_s19 }
 0xc1b   :  { %1971 = vrot.lane.b32.xlu1 %v4390_v3, %s3887_s4  ;;  %2210 = vrot.lane.b32.xlu0 %v4396_v5, %s3887_s4 }
 0xc1f   :  { %2089 = vrot.lane.b32.xlu1 %v4390_v3, %s3888_s20  ;;  %2328 = vrot.lane.b32.xlu0 %v4396_v5, %s3888_s20 }
 0xc23   :  { %2330 = vrot.lane.b32.xlu1 %v4396_v5, %s3886_s19  ;;  %2569 = vrot.lane.b32.xlu0 %v4406_v8, %s3886_s19 }
 0xc27   :  { %2449 = vrot.lane.b32.xlu1 %v4406_v8, %s3887_s4 }
 0xc2b   :  { %2567 = vrot.lane.b32.xlu1 %v4406_v8, %s3888_s20 }
 0xc85   :  { %v1733_v4 = vpop.permute.xlu0 %1732  ;;  %v1853_v10 = vpop.permute.xlu1 %1852 }
 0xc86   :  { %v1738_v9 = vsel %vm239_vm3, %v1733_v4, 0  ;;  %v1858_v12 = vsel %vm239_vm3, %v1853_v10, 0 }
 0xc87   :  { %3601 = vmatpush3.bf16.xpose.msra.mxu0 %v1738_v9 }
 0xc88   :  { %3612 = vmatprep.subr.bf16.mxu0 %v3884_v7 }
 0xc89   :  { %v1851_v11 = vpop.permute.xlu1 %1850  ;;  %v2092_v60 = vpop.permute.xlu0 %2091 }
 0xc8a   :  { %v2097_v18 = vsel %vm239_vm3, %v2092_v60, 0 }
 0xc8d   :  { %v1972_v14 = vpop.permute.xlu1 %1971  ;;  %v2211_v20 = vpop.permute.xlu0 %2210 }
 0xc8e   :  { %3603 = vmatmul.mubr.msk.bf16.vlgmr.msra.gmra.mxu0 %vm239_vm3, %v4384_v1  ;;  %v1977_v16 = vsel %vm239_vm3, %v1972_v14, 0  ;;  %v2216_v22 = vsel %vm239_vm3, %v2211_v20, 0  ;;  %v3300_v20 = vld [vmem:[%s4707_s1 + $0x2] ss:$0 sm:$0xff] }
 0xc8f   :  { %3613 = vmatpush3.bf16.xpose.msra.mxu0 %v1858_v12  ;;  %3614 = vmatprep.mubr.msk.bf16.mxu0 %vm3885_vm2, %v3884_v7 }
 0xc90   :  { %3624 = vmatprep.subr.bf16.mxu0 %v3884_v7 }
 0xc91   :  { %v2090_v21 = vpop.permute.xlu1 %2089  ;;  %v2329_v24 = vpop.permute.xlu0 %2328 }
 0xc95   :  { %v2331_v23 = vpop.permute.xlu1 %2330  ;;  %v2570_v25 = vpop.permute.xlu0 %2569 }
 0xc96   :  { %3615 = vmatmul.mubr.msk.bf16.vlgmr.msra.gmra.mxu0 %vm239_vm3, %v1851_v11  ;;  %v2336_v63 = vsel %vm239_vm3, %v2331_v23, 0  ;;  %v2575_v26 = vsel %vm239_vm3, %v2570_v25, 0  ;;  %v3305_v25 = vld [vmem:[%s4707_s1 + $0x3] ss:$0 sm:$0xff] }
 0xc97   :  { %3625 = vmatpush3.bf16.xpose.msra.mxu0 %v1977_v16  ;;  %3626 = vmatprep.mubr.msk.bf16.mxu0 %vm3885_vm2, %v3884_v7 }
 0xc98   :  { %3636 = vmatprep.subr.bf16.mxu0 %v3884_v7 }
 0xc99   :  { %v2450_v13 = vpop.permute.xlu1 %2449 }
 0xc9a   :  { %v2455_v61 = vsel %vm239_vm3, %v2450_v13, 0 }
 0xc9d   :  { %v2568_v27 = vpop.permute.xlu1 %2567 }
 0xc9e   :  { %3627 = vmatmul.mubr.msk.bf16.vlgmr.msra.gmra.mxu0 %vm239_vm3, %v4390_v3 }
 0xc9f   :  { %3637 = vmatpush3.bf16.xpose.msra.mxu0 %v2097_v18  ;;  %3638 = vmatprep.mubr.msk.bf16.mxu0 %vm3885_vm2, %v3884_v7 }
 0xca0   :  { %3648 = vmatprep.subr.bf16.mxu0 %v3884_v7 }
 0xca6   :  { %3639 = vmatmul.mubr.msk.bf16.vlgmr.msra.gmra.mxu0 %vm239_vm3, %v2090_v21 }
 0xca7   :  { %3649 = vmatpush3.bf16.xpose.msra.mxu0 %v2216_v22  ;;  %3650 = vmatprep.mubr.msk.bf16.mxu0 %vm3885_vm2, %v3884_v7 }
 0xca8   :  { %3660 = vmatprep.subr.bf16.mxu0 %v3884_v7 }
 0xcae   :  { %3651 = vmatmul.mubr.msk.bf16.vlgmr.msra.gmra.mxu0 %vm239_vm3, %v4396_v5 }
 0xcaf   :  { %3661 = vmatpush3.bf16.xpose.msra.mxu0 %v2336_v63  ;;  %3662 = vmatprep.mubr.msk.bf16.mxu0 %vm3885_vm2, %v3884_v7 }
 0xcb0   :  { %3672 = vmatprep.subr.bf16.mxu0 %v3884_v7 }
 0xcb6   :  { %3663 = vmatmul.mubr.msk.bf16.vlgmr.msra.gmra.mxu0 %vm239_vm3, %v2329_v24 }
 0xcb7   :  { %3673 = vmatpush3.bf16.xpose.msra.mxu0 %v2455_v61  ;;  %3674 = vmatprep.mubr.msk.bf16.mxu0 %vm3885_vm2, %v3884_v7 }
 0xcb8   :  { %3684 = vmatprep.subr.bf16.mxu0 %v3884_v7 }
 0xcbe   :  { %3675 = vmatmul.mubr.msk.bf16.vlgmr.msra.gmra.mxu0 %vm239_vm3, %v4406_v8 }
 0xcbf   :  { %3685 = vmatpush3.bf16.xpose.msra.mxu0 %v2575_v26  ;;  %3686 = vmatprep.mubr.msk.bf16.mxu0 %vm3885_vm2, %v3884_v7 }
 0xcc6   :  { %3687 = vmatmul.mubr.msk.bf16.vlgmr.msra.gmra.mxu0 %vm239_vm3, %v2568_v27 }
 0xd4e   :  { %v1774_v0 = vpop.f32.mrf.mxu0 }
 0xd4f   :  { %v1780_v29 = vmul.f32 0.25, %v1774_v0 }
 0xd50   :  { %v3604_v15 = vpop.f32.mrf.mxu0 }
 0xd51   :  { %v4460_v17 = vadd.f32 %v3290_v28, %v1780_v29 }
 0xd52   :  { %v1777_v30 = vpop.f32.mrf.mxu0 }
 0xd53   :  { %v1786_v31 = vsel %vm292_vm4, %v4460_v17, -inf }
 0xd54   :  { %1787 = vmax.xlane.f32.xlu0 %v1786_v31  ;;  %v3605_v32 = vpop.f32.mrf.mxu0 }
 0xd56   :  { %v1894_v33 = vpop.f32.mrf.mxu0 }
 0xd57   :  { %v1900_v34 = vmul.f32 0.25, %v1894_v33 }
 0xd58   :  { %v3616_v35 = vpop.f32.mrf.mxu0 }
 0xd59   :  { %v4464_v36 = vadd.f32 %v3290_v28, %v1900_v34 }
 0xd5a   :  { %v1897_v37 = vpop.f32.mrf.mxu0 }
 0xd5b   :  { %v1902_v38 = vsel %vm292_vm4, %v4464_v36, -inf }
 0xd5c   :  { %1903 = vmax.xlane.f32.xlu1 %v1902_v38  ;;  %v3617_v19 = vpop.f32.mrf.mxu0 }
 0xd5e   :  { %v2013_v39 = vpop.f32.mrf.mxu0 }
 0xd5f   :  { %v2019_v2 = vmul.f32 0.25, %v2013_v39 }
 0xd60   :  { %v3628_v40 = vpop.f32.mrf.mxu0 }
 0xd61   :  { %v2024_v11 = vadd.f32 %v3295_v6, %v2019_v2 }
 0xd62   :  { %v2016_v41 = vpop.f32.mrf.mxu0 }
 0xd63   :  { %v2025_v18 = vsel %vm292_vm4, %v2024_v11, -inf }
 0xd64   :  { %v3629_v42 = vpop.f32.mrf.mxu0 }
 0xd66   :  { %v2133_v43 = vpop.f32.mrf.mxu0 }
 0xd67   :  { %v2139_v9 = vmul.f32 0.25, %v2133_v43 }
 0xd68   :  { %v3640_v47 = vpop.f32.mrf.mxu0 }
 0xd69   :  { %v2140_v12 = vadd.f32 %v3295_v6, %v2139_v9 }
 0xd6a   :  { %1798 = vrot.lane.b32.xlu0 %v4384_v1, %s3889_s2  ;;  %v2136_v50 = vpop.f32.mrf.mxu0 }
 0xd6b   :  { %v2141_v22 = vsel %vm292_vm4, %v2140_v12, -inf }
 0xd6c   :  { %v3641_v52 = vpop.f32.mrf.mxu0 }
 0xd6d   :  { %1914 = vrot.lane.b32.xlu1 %v4384_v1, %s3890_s24 }
 0xd6e   :  { %v2252_v53 = vpop.f32.mrf.mxu0 }
 0xd6f   :  { %v2258_v14 = vmul.f32 0.25, %v2252_v53 }
 0xd70   :  { %v3652_v54 = vpop.f32.mrf.mxu0 }
 0xd71   :  { %v2263_v24 = vadd.f32 %v3300_v20, %v2258_v14 }
 0xd72   :  { %v2255_v55 = vpop.f32.mrf.mxu0 }
 0xd73   :  { %v2264_v26 = vsel %vm292_vm4, %v2263_v24, -inf }
 0xd74   :  { %v3653_v56 = vpop.f32.mrf.mxu0 }
 0xd76   :  { %v2372_v44 = vpop.f32.mrf.mxu0 }
 0xd77   :  { %v2378_v16 = vmul.f32 0.25, %v2372_v44 }
 0xd78   :  { %v3664_v57 = vpop.f32.mrf.mxu0 }
 0xd79   :  { %v2379_v61 = vadd.f32 %v3300_v20, %v2378_v16 }
 0xd7a   :  { %v2375_v58 = vpop.f32.mrf.mxu0 }
 0xd7b   :  { %v2380_v27 = vsel %vm292_vm4, %v2379_v61, -inf }
 0xd7c   :  { %v3665_v59 = vpop.f32.mrf.mxu0 }
 0xd7e   :  { %v2491_v62 = vpop.f32.mrf.mxu0 }
 0xd7f   :  { %v2497_v23 = vmul.f32 0.25, %v2491_v62 }
 0xd80   :  { %v3676_v51 = vpop.f32.mrf.mxu0 }
 0xd81   :  { %v2502_v0 = vadd.f32 %v3305_v25, %v2497_v23 }
 0xd82   :  { %v2494_v4 = vpop.f32.mrf.mxu0 }
 0xd83   :  { %v2503_v29 = vsel %vm292_vm4, %v2502_v0, -inf }
 0xd84   :  { %v3677_v10 = vpop.f32.mrf.mxu0 }
 0xd86   :  { %v2611_v1 = vpop.f32.mrf.mxu0 }
 0xd87   :  { %v2617_v63 = vmul.f32 0.25, %v2611_v1 }
 0xd88   :  { %v3688_v60 = vpop.f32.mrf.mxu0 }
 0xd89   :  { %2026 = vmax.xlane.f32.xlu0 %v2025_v18  ;;  %v4485_v28 = vadd.f32 %v3305_v25, %v2617_v63 }
 0xd8a   :  { %v2614_v21 = vpop.f32.mrf.mxu0 }
 0xd8b   :  { %v2619_v15 = vsel %vm292_vm4, %v4485_v28, -inf }
 0xd8c   :  { %v3689_v13 = vpop.f32.mrf.mxu0 }
 0xd8d   :  { %2142 = vmax.xlane.f32.xlu0 %v2141_v22 }
 0xd91   :  { %2265 = vmax.xlane.f32.xlu0 %v2264_v26  ;;  %2381 = vmax.xlane.f32.xlu1 %v2380_v27 }
 0xd95   :  { %2504 = vmax.xlane.f32.xlu0 %v2503_v29  ;;  %2620 = vmax.xlane.f32.xlu1 %v2619_v15 }
 0xdab   :  { %2037 = vrot.lane.b32.xlu0 %v4390_v3, %s3889_s2 }
 0xddd   :  { %v1788_v30 = vpop.xlane.xlu0 %1787 }
 0xdde   :  { %v1789_v31 = vsub.f32 %v4460_v17, %v1788_v30 }
 0xde0   :  { %v1790_v32 = vmul.f32 1.442695, %v1789_v31 }
 0xde1   :  { %v1799_v33 = vpop.permute.xlu0 %1798 }
 0xde2   :  { %3826 = vpow2.f32 %v1790_v32  ;;  %v1804_v34 = vsel %vm310_vm5, %v1799_v33, 0 }
 0xde3   :  { %3607 = vmatpush3.bf16.msra.mxu1 %v1804_v34 }
 0xde4   :  { %3618 = vmatprep.subr.bf16.mxu1 %v3884_v7 }
 0xde5   :  { %v1904_v35 = vpop.xlane.xlu1 %1903 }
 0xde6   :  { %v1905_v37 = vsub.f32 %v4464_v36, %v1904_v35 }
 0xde8   :  { %v1906_v38 = vmul.f32 1.442695, %v1905_v37 }
 0xde9   :  { %v1915_v47 = vpop.permute.xlu1 %1914 }
 0xdea   :  { %3828 = vpow2.f32 %v1906_v38 }
 0xdef   :  { %v3827_v19 = vpop.eup %3826 }
 0xdf0   :  { %v1792_v39 = vsel %vm292_vm4, %v3827_v19, 0.0 }
 0xdf1   :  { %1793 = vadd.xlane.f32.xlu0 %v1792_v39 }
 0xdf7   :  { %v4497_v40 = vpop.eup %3828 }
 0xdf8   :  { %v1908_v17 = vsel %vm292_vm4, %v4497_v40, 0.0 }
 0xdf9   :  { %1909 = vadd.xlane.f32.xlu1 %v1908_v17 }
 0xe0a   :  { %2276 = vrot.lane.b32.xlu1 %v4396_v5, %s3889_s2 }
 0xe12   :  { %v2027_v41 = vpop.xlane.xlu0 %2026 }
 0xe13   :  { %v2028_v42 = vsub.f32 %v2024_v11, %v2027_v41 }
 0xe15   :  { %v2029_v43 = vmul.f32 1.442695, %v2028_v42 }
 0xe16   :  { %v2143_v36 = vpop.xlane.xlu0 %2142 }
 0xe17   :  { %3830 = vpow2.f32 %v2029_v43  ;;  %v2144_v50 = vsub.f32 %v2140_v12, %v2143_v36 }
 0xe19   :  { %v2145_v52 = vmul.f32 1.442695, %v2144_v50 }
 0xe1a   :  { %v2382_v53 = vpop.xlane.xlu1 %2381  ;;  %v2266_v54 = vpop.xlane.xlu0 %2265 }
 0xe1b   :  { %v2267_v55 = vsub.f32 %v2263_v24, %v2266_v54  ;;  %3832 = vpow2.f32 %v2145_v52  ;;  %v2383_v56 = vsub.f32 %v2379_v61, %v2382_v53  ;;  %v1920_v24 = vsel %vm310_vm5, %v1915_v47, 0 }
 0xe1d   :  { %v2268_v44 = vmul.f32 1.442695, %v2267_v55  ;;  %v2384_v57 = vmul.f32 1.442695, %v2383_v56 }
 0xe1e   :  { %v2505_v10 = vpop.xlane.xlu0 %2504  ;;  %v2621_v12 = vpop.xlane.xlu1 %2620 }
 0xe1f   :  { %3834 = vpow2.f32 %v2268_v44  ;;  %v2506_v11 = vsub.f32 %v2502_v0, %v2505_v10  ;;  %v2622_v14 = vsub.f32 %v4485_v28, %v2621_v12 }
 0xe20   :  { %3836 = vpow2.f32 %v2384_v57 }
 0xe21   :  { %v2507_v1 = vmul.f32 1.442695, %v2506_v11  ;;  %v2623_v16 = vmul.f32 1.442695, %v2622_v14 }
 0xe23   :  { %3838 = vpow2.f32 %v2507_v1 }
 0xe24   :  { %v3831_v58 = vpop.eup %3830  ;;  %3840 = vpow2.f32 %v2623_v16 }
 0xe25   :  { %v2031_v59 = vsel %vm292_vm4, %v3831_v58, 0.0 }
 0xe26   :  { %2032 = vadd.xlane.f32.xlu0 %v2031_v59 }
 0xe28   :  { %v4504_v62 = vpop.eup %3832 }
 0xe29   :  { %v2147_v2 = vsel %vm292_vm4, %v4504_v62, 0.0 }
 0xe2c   :  { %v4508_v51 = vpop.eup %3834 }
 0xe2d   :  { %v2270_v6 = vsel %vm292_vm4, %v4508_v51, 0.0  ;;  %v4512_v4 = vpop.eup %3836 }
 0xe2e   :  { %2148 = vadd.xlane.f32.xlu1 %v2147_v2  ;;  %v2386_v9 = vsel %vm292_vm4, %v4512_v4, 0.0 }
 0xe30   :  { %v4521_v60 = vpop.eup %3838 }
 0xe31   :  { %v2509_v18 = vsel %vm292_vm4, %v4521_v60, 0.0  ;;  %v4525_v20 = vpop.eup %3840 }
 0xe32   :  { %2271 = vadd.xlane.f32.xlu1 %v2270_v6 }
 0xe36   :  { %2387 = vadd.xlane.f32.xlu1 %v2386_v9 }
 0xe3c   :  { %2153 = vrot.lane.b32.xlu0 %v4390_v3, %s3890_s24  ;;  %v2625_v3 = vsel %vm292_vm4, %v4525_v20, 0.0 }
 0xe47   :  { %2392 = vrot.lane.b32.xlu1 %v4396_v5, %s3890_s24  ;;  %v2038_v5 = vpop.permute.xlu0 %2037 }
 0xe5b   :  { %2510 = vadd.xlane.f32.xlu0 %v2509_v18 }
 0xe6b   :  { %2626 = vadd.xlane.f32.xlu1 %v2625_v3 }
 0xe71   :  { %2515 = vrot.lane.b32.xlu0 %v4406_v8, %s3889_s2 }
 0xe7a   :  { %v1794_v21 = vpop.xlane.xlu0 %1793 }
 0xe7b   :  { %3842 = vrcp.f32 %v1794_v21 }
 0xe7c   :  { %2631 = vrot.lane.b32.xlu1 %v4406_v8, %s3890_s24  ;;  %v2043_v8 = vsel %vm310_vm5, %v2038_v5, 0 }
 0xe82   :  { %v1910_v22 = vpop.xlane.xlu1 %1909 }
 0xe83   :  { %3844 = vrcp.f32 %v1910_v22 }
 0xe86   :  { %v2277_v0 = vpop.permute.xlu1 %2276 }
 0xe87   :  { %v2282_v39 = vsel %vm310_vm5, %v2277_v0, 0 }
 0xe88   :  { %v3843_v23 = vpop.eup %3842 }
 0xe89   :  { %v1796_v63 = vmul.f32 %v3843_v23, %v3827_v19 }
 0xe8b   :  { %v1797_v13 = vpack.c.bf16 %v1796_v63, %v1796_v63 }
 0xe8d   :  { %3609 = vmatmul.mubr.msk.bf16.vlgmr.msra.gmra.mxu1 %vm292_vm4, %v1797_v13 }
 0xe8e   :  { %3619 = vmatpush3.bf16.msra.mxu1 %v1920_v24  ;;  %3620 = vmatprep.mubr.msk.bf16.mxu1 %vm3885_vm2, %v3884_v7 }
 0xe8f   :  { %3630 = vmatprep.subr.bf16.mxu1 %v3884_v7 }
 0xe90   :  { %v3845_v61 = vpop.eup %3844 }
 0xe91   :  { %v1912_v25 = vmul.f32 %v3845_v61, %v4497_v40 }
 0xe93   :  { %v1913_v26 = vpack.c.bf16 %v1912_v25, %v1912_v25 }
 0xe95   :  { %3621 = vmatmul.mubr.msk.bf16.vlgmr.msra.gmra.mxu1 %vm292_vm4, %v1913_v26 }
 0xe96   :  { %3631 = vmatpush3.bf16.msra.mxu1 %v2043_v8  ;;  %3632 = vmatprep.mubr.msk.bf16.mxu1 %vm3885_vm2, %v3884_v7 }
 0xe97   :  { %3642 = vmatprep.subr.bf16.mxu1 %v3884_v7 }
 0xeaf   :  { %v2033_v27 = vpop.xlane.xlu0 %2032 }
 0xeb0   :  { %3846 = vrcp.f32 %v2033_v27 }
 0xeb3   :  { %v2154_v31 = vpop.permute.xlu0 %2153 }
 0xeb4   :  { %v2159_v34 = vsel %vm310_vm5, %v2154_v31, 0 }
 0xeb7   :  { %v2149_v28 = vpop.xlane.xlu1 %2148 }
 0xeb8   :  { %3848 = vrcp.f32 %v2149_v28  ;;  %v3752_v28 = vld [vmem:[%s4708_s6 + $0x18] sm:$0xff]  }
 0xeb9   :  { %3696 = vmatprep.subr.bf16.mxu0 %v3752_v28 }
 0xeba   :  { %3697 = vmatpush3.bf16.msra.mxu0 %v3752_v28 }
 0xebb   :  { %v2272_v29 = vpop.xlane.xlu1 %2271 }
 0xebc   :  { %3850 = vrcp.f32 %v2272_v29  ;;  %v3753_v29 = vld [vmem:[%s4708_s6 + $0x10] sm:$0xff]  }
 0xebd   :  { %v3847_v15 = vpop.eup %3846  ;;  %3698 = vmatprep.subr.bf16.mxu0 %v3753_v29 }
 0xebe   :  { %v2035_v30 = vmul.f32 %v3847_v15, %v3831_v58  ;;  %3699 = vmatpush3.bf16.msra.mxu0 %v3753_v29 }
 0xebf   :  { %v2388_v33 = vpop.xlane.xlu1 %2387 }
 0xec0   :  { %v2036_v32 = vpack.c.bf16 %v2035_v30, %v2035_v30  ;;  %3852 = vrcp.f32 %v2388_v33 }
 0xec2   :  { %3633 = vmatmul.mubr.msk.bf16.vlgmr.msra.gmra.mxu1 %vm292_vm4, %v2036_v32 }
 0xec3   :  { %3643 = vmatpush3.bf16.msra.mxu1 %v2159_v34  ;;  %3644 = vmatprep.mubr.msk.bf16.mxu1 %vm3885_vm2, %v3884_v7  ;;  %v2393_v17 = vpop.permute.xlu1 %2392 }
 0xec4   :  { %3654 = vmatprep.subr.bf16.mxu1 %v3884_v7  ;;  %v2398_v43 = vsel %vm310_vm5, %v2393_v17, 0 }
 0xec5   :  { %v3849_v35 = vpop.eup %3848 }
 0xec6   :  { %v2151_v37 = vmul.f32 %v3849_v35, %v4504_v62 }
 0xec8   :  { %v2152_v38 = vpack.c.bf16 %v2151_v37, %v2151_v37 }
 0xec9   :  { %v3851_v19 = vpop.eup %3850 }
 0xeca   :  { %3645 = vmatmul.mubr.msk.bf16.vlgmr.msra.gmra.mxu1 %vm292_vm4, %v2152_v38  ;;  %v2274_v40 = vmul.f32 %v3851_v19, %v4508_v51 }
 0xecb   :  { %3655 = vmatpush3.bf16.msra.mxu1 %v2282_v39  ;;  %3656 = vmatprep.mubr.msk.bf16.mxu1 %vm3885_vm2, %v3884_v7 }
 0xecc   :  { %3666 = vmatprep.subr.bf16.mxu1 %v3884_v7  ;;  %v2275_v41 = vpack.c.bf16 %v2274_v40, %v2274_v40 }
 0xecd   :  { %v3853_v42 = vpop.eup %3852 }
 0xece   :  { %v2390_v47 = vmul.f32 %v3853_v42, %v4512_v4 }
 0xed0   :  { %v2391_v36 = vpack.c.bf16 %v2390_v47, %v2390_v47  ;;  %v3314_v47 = vld [vmem:[%s4709_s7 + $0x1] ss:$0 sm:$0xff] }
 0xed2   :  { %3657 = vmatmul.mubr.msk.bf16.vlgmr.msra.gmra.mxu1 %vm292_vm4, %v2275_v41 }
 0xed3   :  { %3667 = vmatpush3.bf16.msra.mxu1 %v2398_v43  ;;  %3668 = vmatprep.mubr.msk.bf16.mxu1 %vm3885_vm2, %v3884_v7 }
 0xed4   :  { %3678 = vmatprep.subr.bf16.mxu1 %v3884_v7 }
 0xeda   :  { %3669 = vmatmul.mubr.msk.bf16.vlgmr.msra.gmra.mxu1 %vm292_vm4, %v2391_v36 }
 0xedb   :  { %3680 = vmatprep.mubr.msk.bf16.mxu1 %vm3885_vm2, %v3884_v7 }
 0xee4   :  { %v2511_v50 = vpop.xlane.xlu0 %2510 }
 0xee5   :  { %3854 = vrcp.f32 %v2511_v50 }
 0xee8   :  { %v2516_v52 = vpop.permute.xlu0 %2515 }
 0xee9   :  { %v2521_v53 = vsel %vm310_vm5, %v2516_v52, 0 }
 0xeea   :  { %3679 = vmatpush3.bf16.msra.mxu1 %v2521_v53 }
 0xeeb   :  { %3690 = vmatprep.subr.bf16.mxu1 %v3884_v7 }
 0xef2   :  { %v3855_v54 = vpop.eup %3854 }
 0xef3   :  { %v2513_v55 = vmul.f32 %v3855_v54, %v4521_v60 }
 0xef4   :  { %v2627_v56 = vpop.xlane.xlu1 %2626 }
 0xef5   :  { %3856 = vrcp.f32 %v2627_v56  ;;  %v2514_v44 = vpack.c.bf16 %v2513_v55, %v2513_v55 }
 0xef7   :  { %3681 = vmatmul.mubr.msk.bf16.vlgmr.msra.gmra.mxu1 %vm292_vm4, %v2514_v44 }
 0xef8   :  { %v2632_v57 = vpop.permute.xlu1 %2631  ;;  %3692 = vmatprep.mubr.msk.bf16.mxu1 %vm3885_vm2, %v3884_v7 }
 0xef9   :  { %v2637_v58 = vsel %vm310_vm5, %v2632_v57, 0 }
 0xefa   :  { %3691 = vmatpush3.bf16.msra.mxu1 %v2637_v58 }
 0xf02   :  { %v3857_v59 = vpop.eup %3856 }
 0xf03   :  { %v2629_v62 = vmul.f32 %v3857_v59, %v4525_v20 }
 0xf05   :  { %v2630_v2 = vpack.c.bf16 %v2629_v62, %v2629_v62 }
 0xf07   :  { %3693 = vmatmul.mubr.msk.bf16.vlgmr.msra.gmra.mxu1 %vm292_vm4, %v2630_v2 }
 0xf4d   :  { %v1840_v51 = vpop.f32.mrf.mxu1 }
 0xf4e   :  { %1846 = vst.msk [vmem:[#allocation4] sm:$0xff] %vm239_vm3, %v1840_v51 }
 0xf4f   :  { %v3610_v6 = vpop.f32.mrf.mxu1 }
 0xf51   :  { %v1843_v4 = vpop.f32.mrf.mxu1 }
 0xf53   :  { %v3611_v9 = vpop.f32.mrf.mxu1 }
 0xf55   :  { %v1956_v10 = vpop.f32.mrf.mxu1 }
 0xf56   :  { %1963 = vrot.lane.b32.xlu0 %v1956_v10, %s3891_s3 }
 0xf57   :  { %v3622_v11 = vpop.f32.mrf.mxu1 }
 0xf59   :  { %v1959_v1 = vpop.f32.mrf.mxu1 }
 0xf5b   :  { %v3623_v12 = vpop.f32.mrf.mxu1 }
 0xf82   :  { %v2079_v14 = vpop.f32.mrf.mxu1 }
 0xf83   :  { %2085 = vst.msk [vmem:[#allocation4 + $0x8] sm:$0xff] %vm239_vm3, %v2079_v14 }
 0xf84   :  { %v3634_v16 = vpop.f32.mrf.mxu1 }
 0xf86   :  { %v2082_v60 = vpop.f32.mrf.mxu1 }
 0xf88   :  { %v3635_v18 = vpop.f32.mrf.mxu1 }
 0xf8a   :  { %v2195_v20 = vpop.f32.mrf.mxu1 }
 0xf8b   :  { %2202 = vrot.lane.b32.xlu1 %v2195_v20, %s3891_s3 }
 0xf8c   :  { %v3646_v3 = vpop.f32.mrf.mxu1 }
 0xf8e   :  { %v2198_v5 = vpop.f32.mrf.mxu1 }
 0xf90   :  { %v3647_v21 = vpop.f32.mrf.mxu1 }
 0xf92   :  { %v2318_v22 = vpop.f32.mrf.mxu1 }
 0xf93   :  { %2324 = vst.msk [vmem:[#allocation4 + $0x10] sm:$0xff] %vm239_vm3, %v2318_v22 }
 0xf94   :  { %v3658_v23 = vpop.f32.mrf.mxu1 }
 0xf96   :  { %v2321_v63 = vpop.f32.mrf.mxu1 }
 0xf97   :  { %v3754_v63 = vld [vmem:[%s4710_s10 + $0x18] sm:$0xff]  }
 0xf98   :  { %v3659_v13 = vpop.f32.mrf.mxu1  ;;  %3704 = vmatprep.subr.bf16.mxu1 %v3754_v63 }
 0xf99   :  { %3705 = vmatpush3.bf16.msra.mxu1 %v3754_v63  ;;  %v3755_v13 = vld [vmem:[%s4710_s10 + $0x10] sm:$0xff]  }
 0xf9a   :  { %v2434_v24 = vpop.f32.mrf.mxu1  ;;  %3706 = vmatprep.subr.bf16.mxu1 %v3755_v13 }
 0xf9b   :  { %2441 = vrot.lane.b32.xlu0 %v2434_v24, %s3891_s3 }
 0xf9c   :  { %v3670_v61 = vpop.f32.mrf.mxu1 }
 0xf9d   :  { %3707 = vmatpush3.bf16.msra.mxu1 %v3755_v13 }
 0xf9e   :  { %v2437_v25 = vpop.f32.mrf.mxu1  ;;  %3724 = vmatprep.subr.bf16.mxu1 %v3884_v7 }
 0xfa0   :  { %v3671_v26 = vpop.f32.mrf.mxu1 }
 0xfb7   :  { %v2557_v8 = vpop.f32.mrf.mxu1 }
 0xfb8   :  { %2563 = vst.msk [vmem:[#allocation4 + $0x18] sm:$0xff] %vm239_vm3, %v2557_v8 }
 0xfb9   :  { %v3682_v27 = vpop.f32.mrf.mxu1 }
 0xfbb   :  { %v2560_v0 = vpop.f32.mrf.mxu1 }
 0xfbd   :  { %v3683_v15 = vpop.f32.mrf.mxu1 }
 0xfc7   :  { %v2673_v30 = vpop.f32.mrf.mxu1 }
 0xfc8   :  { %2680 = vrot.lane.b32.xlu1 %v2673_v30, %s3891_s3  ;;  %v1964_v31 = vpop.permute.xlu0 %1963 }
 0xfc9   :  { %1966 = vst.msk [vmem:[#allocation4] sm:$0xff] %vm474_vm6, %v1964_v31  ;;  %v3694_v32 = vpop.f32.mrf.mxu1 }
 0xfcb   :  { %v2676_v33 = vpop.f32.mrf.mxu1 }
 0xfcc   :  { %v3321_v33 = vld [vmem:[%s4711_s8 + $0x1] ss:$0 sm:$0xff] }
 0xfcd   :  { %v3695_v34 = vpop.f32.mrf.mxu1 }
 0xfd0   :  { %v2684_v37 = vld [vmem:[#allocation4] sm:$0xff] }
 0xffd   :  { %v2203_v35 = vpop.permute.xlu1 %2202 }
 0xffe   :  { %2205 = vst.msk [vmem:[#allocation4 + $0x8] sm:$0xff] %vm474_vm6, %v2203_v35  ;;  %v3322_v35 = vld [vmem:[%s4712_s9 + $0x1] ss:$0 sm:$0xff] }
0x1005   :  { %v2685_v38 = vld [vmem:[#allocation4 + $0x8] sm:$0xff] }
0x1006   :  { %v2693_v19 = vpack.c.bf16 %v2685_v38, %v2684_v37 }
0x1008   :  { %3700 = vmatprep.mubr.msk.bf16.mxu0 %vm66_vm0, %v2693_v19 }
0x100d   :  { %v2442_v39 = vpop.permute.xlu0 %2441 }
0x100e   :  { %2444 = vst.msk [vmem:[#allocation4 + $0x10] sm:$0xff] %vm474_vm6, %v2442_v39 }
0x1015   :  { %v2686_v17 = vld [vmem:[#allocation4 + $0x10] sm:$0xff] }
0x103a   :  { %v2681_v40 = vpop.permute.xlu1 %2680 }
0x103b   :  { %2683 = vst.msk [vmem:[#allocation4 + $0x18] sm:$0xff] %vm474_vm6, %v2681_v40 }
0x1042   :  { %v2687_v41 = vld [vmem:[#allocation4 + $0x18] sm:$0xff] }
0x1043   :  { %v2694_v42 = vpack.c.bf16 %v2687_v41, %v2686_v17 }
0x1045   :  { %3701 = vmatmul.mubr.msk.bf16.vlgmr.msra.gmra.mxu0 %vm66_vm0, %v2694_v42 }
0x1105   :  { %v3702_v43 = vpop.f32.mrf.mxu0 }
0x1106   :  { %v2764_v50 = vadd.f32 %v3702_v43, %v3314_v47 }
0x1107   :  { %v2755_v36 = vpop.f32.mrf.mxu0 }
0x1108   :  { %v2756_v52 = vadd.f32 %v3314_v47, %v2755_v36  ;;  %v2772_v56 = vadd.f32 %v2764_v50, %v4368_v48 }
0x1109   :  { %v3703_v53 = vpop.f32.mrf.mxu0 }
0x110a   :  { %v2770_v54 = vadd.f32 %v2756_v52, %v4361_v45  ;;  %v2767_v44 = vadd.f32 %v3703_v53, %v3314_v47  ;;  %v2784_v51 = vsel %vm66_vm0, %v2772_v56, 0.0 }
0x110b   :  { %v2758_v55 = vpop.f32.mrf.mxu0 }
0x110c   :  { %v2759_v57 = vadd.f32 %v3314_v47, %v2758_v55  ;;  %v2778_v58 = vsel %vm66_vm0, %v2770_v54, 0.0  ;;  %v2773_v62 = vadd.f32 %v2767_v44, %v4370_v49  ;;  %v3757_v44 = vld [vmem:[%s4713_s12 + $0x30] sm:$0xff]  }
0x110d   :  { %2779 = vadd.xlane.f32.xlu0 %v2778_v58  ;;  %v3759_v58 = vld [vmem:[%s4713_s12 + $0x20] sm:$0xff]  }
0x110e   :  { %v2771_v59 = vadd.f32 %v2759_v57, %v4363_v46  ;;  %v2787_v45 = vsel %vm66_vm0, %v2773_v62, 0.0  ;;  %v3758_v57 = vld [vmem:[%s4713_s12 + $0x28] sm:$0xff]  }
0x1110   :  { %v2781_v2 = vsel %vm66_vm0, %v2771_v59, 0.0 }
0x1111   :  { %2782 = vadd.xlane.f32.xlu1 %v2781_v2  ;;  %2785 = vadd.xlane.f32.xlu0 %v2784_v51 }
0x1115   :  { %2788 = vadd.xlane.f32.xlu0 %v2787_v45 }
0x1196   :  { %v2780_v6 = vpop.xlane.xlu0 %2779 }
0x1197   :  { %v2790_v48 = vmul.f32 0.03125, %v2780_v6 }
0x1199   :  { %v2794_v4 = vsub.f32 %v2770_v54, %v2790_v48 }
0x119a   :  { %v2783_v9 = vpop.xlane.xlu1 %2782  ;;  %v2786_v10 = vpop.xlane.xlu0 %2785 }
0x119b   :  { %v2791_v11 = vmul.f32 0.03125, %v2783_v9  ;;  %v2792_v1 = vmul.f32 0.03125, %v2786_v10  ;;  %v2798_v12 = vmul.f32 %v2794_v4, %v2794_v4 }
0x119d   :  { %v2795_v46 = vsub.f32 %v2771_v59, %v2791_v11  ;;  %v2796_v14 = vsub.f32 %v2772_v56, %v2792_v1  ;;  %v2802_v49 = vsel %vm66_vm0, %v2798_v12, 0.0  ;;  %v3756_v56 = vld [vmem:[%s4713_s12 + $0x38] sm:$0xff]   ;;  %v3328_v59 = vld [vmem:[%s4714_s11 + $0x1] ss:$0 sm:$0xff] }
0x119e   :  { %2803 = vadd.xlane.f32.xlu0 %v2802_v49  ;;  %v2789_v16 = vpop.xlane.xlu0 %2788  ;;  %3712 = vmatprep.subr.bf16.mxu0 %v3756_v56 }
0x119f   :  { %v2793_v60 = vmul.f32 0.03125, %v2789_v16  ;;  %v2799_v18 = vmul.f32 %v2795_v46, %v2795_v46  ;;  %v2800_v20 = vmul.f32 %v2796_v14, %v2796_v14  ;;  %3713 = vmatpush3.bf16.msra.mxu0 %v3756_v56 }
0x11a0   :  { %3714 = vmatprep.subr.bf16.mxu0 %v3757_v44 }
0x11a1   :  { %v2797_v3 = vsub.f32 %v2773_v62, %v2793_v60  ;;  %v2805_v5 = vsel %vm66_vm0, %v2799_v18, 0.0  ;;  %v2808_v21 = vsel %vm66_vm0, %v2800_v20, 0.0 }
0x11a2   :  { %2806 = vadd.xlane.f32.xlu1 %v2805_v5  ;;  %2809 = vadd.xlane.f32.xlu0 %v2808_v21 }
0x11a3   :  { %v2801_v22 = vmul.f32 %v2797_v3, %v2797_v3  ;;  %3715 = vmatpush3.bf16.msra.mxu0 %v3757_v44 }
0x11a4   :  { %3716 = vmatprep.subr.bf16.mxu0 %v3758_v57 }
0x11a5   :  { %v2811_v23 = vsel %vm66_vm0, %v2801_v22, 0.0 }
0x11a6   :  { %2812 = vadd.xlane.f32.xlu1 %v2811_v23 }
0x11a7   :  { %3717 = vmatpush3.bf16.msra.mxu0 %v3758_v57 }
0x11a8   :  { %3718 = vmatprep.subr.bf16.mxu0 %v3759_v58 }
0x11ab   :  { %3719 = vmatpush3.bf16.msra.mxu0 %v3759_v58 }
0x1227   :  { %v2804_v24 = vpop.xlane.xlu0 %2803 }
0x1228   :  { %v2814_v61 = vmul.f32 0.03125, %v2804_v24 }
0x122a   :  { %v2818_v25 = vadd.f32 1e-12, %v2814_v61 }
0x122b   :  { %v2807_v26 = vpop.xlane.xlu1 %2806  ;;  %v2810_v8 = vpop.xlane.xlu0 %2809 }
0x122c   :  { %3858 = vrsqrt.f32 %v2818_v25  ;;  %v2815_v27 = vmul.f32 0.03125, %v2807_v26  ;;  %v2816_v0 = vmul.f32 0.03125, %v2810_v8  ;;  %v3342_v8 = vld [vmem:[%s4715_s13 + $0x1] ss:$0 sm:$0xff] }
0x122e   :  { %v2819_v28 = vadd.f32 1e-12, %v2815_v27  ;;  %v2820_v29 = vadd.f32 1e-12, %v2816_v0 }
0x122f   :  { %v2813_v15 = vpop.xlane.xlu1 %2812 }
0x1230   :  { %3860 = vrsqrt.f32 %v2819_v28  ;;  %v2817_v30 = vmul.f32 0.03125, %v2813_v15 }
0x1231   :  { %3862 = vrsqrt.f32 %v2820_v29 }
0x1232   :  { %v2821_v31 = vadd.f32 1e-12, %v2817_v30 }
0x1234   :  { %3864 = vrsqrt.f32 %v2821_v31 }
0x1239   :  { %v3859_v32 = vpop.eup %3858 }
0x123a   :  { %v2826_v34 = vmul.f32 %v3859_v32, %v2794_v4 }
0x123c   :  { %v2836_v37 = vmul.f32 %v3321_v33, %v2826_v34 }
0x123d   :  { %v3861_v38 = vpop.eup %3860 }
0x123e   :  { %v3863_v19 = vpop.eup %3862  ;;  %v2827_v39 = vmul.f32 %v3861_v38, %v2795_v46  ;;  %v4622_v40 = vadd.f32 %v3322_v35, %v2836_v37 }
0x123f   :  { %v2828_v17 = vmul.f32 %v3863_v19, %v2796_v14 }
0x1240   :  { %v2837_v41 = vmul.f32 %v3321_v33, %v2827_v39  ;;  %2850 = vst.msk [vmem:[#allocation2] sm:$0xff] %vm66_vm0, %v4622_v40 }
0x1241   :  { %v3865_v42 = vpop.eup %3864  ;;  %v2838_v43 = vmul.f32 %v3321_v33, %v2828_v17 }
0x1242   :  { %v2829_v47 = vmul.f32 %v3865_v42, %v2797_v3  ;;  %v4626_v36 = vadd.f32 %v3322_v35, %v2837_v41 }
0x1243   :  { %v4628_v50 = vadd.f32 %v3322_v35, %v2838_v43 }
0x1244   :  { %v2839_v52 = vmul.f32 %v3321_v33, %v2829_v47  ;;  %2851 = vst.msk [vmem:[#allocation2 + $0x8] sm:$0xff] %vm66_vm0, %v4626_v36  ;;  %v2859_v53 = vpack.c.bf16 %v4626_v36, %v4622_v40 }
0x1245   :  { %2852 = vst.msk [vmem:[#allocation2 + $0x10] sm:$0xff] %vm66_vm0, %v4628_v50 }
0x1246   :  { %3708 = vmatprep.mubr.msk.bf16.mxu1 %vm66_vm0, %v2859_v53  ;;  %v4637_v54 = vadd.f32 %v3322_v35, %v2839_v52 }
0x1248   :  { %2853 = vst.msk [vmem:[#allocation2 + $0x18] sm:$0xff] %vm66_vm0, %v4637_v54  ;;  %v2860_v55 = vpack.c.bf16 %v4637_v54, %v4628_v50 }
0x124a   :  { %3709 = vmatmul.mubr.msk.bf16.vlgmr.msra.gmra.mxu1 %vm66_vm0, %v2860_v55 }
0x124b   :  { %3728 = vmatprep.mubr.msk.bf16.mxu1 %vm3885_vm2, %v3884_v7 }
0x130a   :  { %v3710_v62 = vpop.f32.mrf.mxu1 }
0x130b   :  { %v2930_v2 = vadd.f32 %v3710_v62, %v3328_v59 }
0x130c   :  { %v2921_v51 = vpop.f32.mrf.mxu1 }
0x130d   :  { %v2922_v45 = vadd.f32 %v3328_v59, %v2921_v51  ;;  %v2942_v6 = vmul.f32 0.70710677, %v2930_v2  ;;  %v2938_v23 = vmul.f32 0.5, %v2930_v2 }
0x130e   :  { %v3711_v48 = vpop.f32.mrf.mxu1 }
0x130f   :  { %v2940_v4 = vmul.f32 0.70710677, %v2922_v45  ;;  %v2933_v9 = vadd.f32 %v3711_v48, %v3328_v59  ;;  %v2936_v5 = vmul.f32 0.5, %v2922_v45  ;;  %v3761_v48 = vld [vmem:[%s4718_s16] sm:$0xff]  }
0x1310   :  { %v2924_v10 = vpop.f32.mrf.mxu1 }
0x1311   :  { %3866 = verf.f32 %v2940_v4  ;;  %v2943_v11 = vmul.f32 0.70710677, %v2933_v9  ;;  %v2925_v1 = vadd.f32 %v3328_v59, %v2924_v10  ;;  %v2939_v3 = vmul.f32 0.5, %v2933_v9 }
0x1312   :  { %3868 = verf.f32 %v2942_v6  ;;  %v3760_v6 = vld [vmem:[%s4718_s16 + $0x8] sm:$0xff]  }
0x1313   :  { %3870 = verf.f32 %v2943_v11  ;;  %v2941_v12 = vmul.f32 0.70710677, %v2925_v1  ;;  %v2937_v21 = vmul.f32 0.5, %v2925_v1  ;;  %3725 = vmatpush3.bf16.msra.mxu1 %v3760_v6 }
0x1314   :  { %3726 = vmatprep.subr.bf16.mxu1 %v3884_v7  ;;  %v3351_v7 = vld [vmem:[%s4716_s14 + $0x1] ss:$0 sm:$0xff] }
0x1315   :  { %3872 = verf.f32 %v2941_v12 }
0x1317   :  { %3727 = vmatpush3.bf16.msra.mxu1 %v3761_v48 }
0x131e   :  { %v3867_v46 = vpop.eup %3866 }
0x131f   :  { %v3869_v14 = vpop.eup %3868  ;;  %v2948_v16 = vadd.f32 1.0, %v3867_v46 }
0x1320   :  { %v3871_v49 = vpop.eup %3870  ;;  %v2950_v20 = vadd.f32 1.0, %v3869_v14 }
0x1321   :  { %v2951_v60 = vadd.f32 1.0, %v3871_v49  ;;  %v2952_v13 = vmul.f32 %v2948_v16, %v2936_v5  ;;  %v3352_v5 = vld [vmem:[%s4717_s15 + $0x1] ss:$0 sm:$0xff] }
0x1322   :  { %v3873_v18 = vpop.eup %3872  ;;  %v2954_v61 = vmul.f32 %v2950_v20, %v2938_v23 }
0x1323   :  { %v2949_v22 = vadd.f32 1.0, %v3873_v18  ;;  %v2955_v63 = vmul.f32 %v2951_v60, %v2939_v3 }
0x1325   :  { %v2953_v24 = vmul.f32 %v2949_v22, %v2937_v21  ;;  %v2966_v26 = vpack.c.bf16 %v2955_v63, %v2954_v61 }
0x1327   :  { %v2965_v25 = vpack.c.bf16 %v2953_v24, %v2952_v13 }
0x1329   :  { %3720 = vmatprep.mubr.msk.bf16.mxu0 %vm1500_vm7, %v2965_v25 }
0x132a   :  { %3721 = vmatmul.mubr.msk.bf16.vlgmr.msra.gmra.mxu0 %vm1500_vm7, %v2966_v26 }
0x13ea   :  { %v3722_v27 = vpop.f32.mrf.mxu0 }
0x13eb   :  { %v3048_v0 = vadd.f32 %v3722_v27, %v3342_v8 }
0x13ec   :  { %v3039_v28 = vpop.f32.mrf.mxu0 }
0x13ed   :  { %v3056_v29 = vadd.f32 %v3048_v0, %v4628_v50  ;;  %v3040_v33 = vadd.f32 %v3342_v8, %v3039_v28 }
0x13ee   :  { %v3723_v15 = vpop.f32.mrf.mxu0 }
0x13ef   :  { %v3051_v30 = vadd.f32 %v3723_v15, %v3342_v8  ;;  %v3068_v31 = vsel %vm66_vm0, %v3056_v29, 0.0  ;;  %v3054_v19 = vadd.f32 %v3040_v33, %v4622_v40 }
0x13f0   :  { %3069 = vadd.xlane.f32.xlu1 %v3068_v31  ;;  %v3042_v32 = vpop.f32.mrf.mxu0 }
0x13f1   :  { %v3057_v34 = vadd.f32 %v3051_v30, %v4637_v54  ;;  %v3043_v35 = vadd.f32 %v3342_v8, %v3042_v32  ;;  %v3062_v17 = vsel %vm66_vm0, %v3054_v19, 0.0 }
0x13f3   :  { %v3055_v37 = vadd.f32 %v3043_v35, %v4626_v36  ;;  %v3071_v38 = vsel %vm66_vm0, %v3057_v34, 0.0 }
0x13f4   :  { %3072 = vadd.xlane.f32.xlu1 %v3071_v38 }
0x13f5   :  { %v3065_v39 = vsel %vm66_vm0, %v3055_v37, 0.0 }
0x13f6   :  { %3066 = vadd.xlane.f32.xlu0 %v3065_v39 }
0x13fa   :  { %3063 = vadd.xlane.f32.xlu0 %v3062_v17  ;;  %v3353_v17 = vld [vmem:[%s4719_s17] ss:$0 sm:$0xff] }
0x1479   :  { %v3070_v41 = vpop.xlane.xlu1 %3069 }
0x147a   :  { %v3076_v42 = vmul.f32 0.03125, %v3070_v41 }
0x147c   :  { %v3080_v43 = vsub.f32 %v3056_v29, %v3076_v42 }
0x147d   :  { %v3073_v47 = vpop.xlane.xlu1 %3072 }
0x147e   :  { %v3077_v50 = vmul.f32 0.03125, %v3073_v47  ;;  %v3084_v52 = vmul.f32 %v3080_v43, %v3080_v43 }
0x147f   :  { %v3067_v53 = vpop.xlane.xlu0 %3066 }
0x1480   :  { %v3081_v54 = vsub.f32 %v3057_v34, %v3077_v50  ;;  %v3075_v36 = vmul.f32 0.03125, %v3067_v53  ;;  %v3092_v55 = vsel %vm66_vm0, %v3084_v52, 0.0 }
0x1481   :  { %3093 = vadd.xlane.f32.xlu1 %v3092_v55 }
0x1482   :  { %v3079_v56 = vsub.f32 %v3055_v37, %v3075_v36  ;;  %v3085_v40 = vmul.f32 %v3081_v54, %v3081_v54 }
0x1483   :  { %v3064_v44 = vpop.xlane.xlu0 %3063 }
0x1484   :  { %v3074_v57 = vmul.f32 0.03125, %v3064_v44  ;;  %v3095_v58 = vsel %vm66_vm0, %v3085_v40, 0.0  ;;  %v3083_v59 = vmul.f32 %v3079_v56, %v3079_v56 }
0x1485   :  { %3096 = vadd.xlane.f32.xlu1 %v3095_v58 }
0x1486   :  { %v3078_v62 = vsub.f32 %v3054_v19, %v3074_v57  ;;  %v3089_v2 = vsel %vm66_vm0, %v3083_v59, 0.0 }
0x1487   :  { %3090 = vadd.xlane.f32.xlu0 %v3089_v2 }
0x1488   :  { %v3082_v51 = vmul.f32 %v3078_v62, %v3078_v62 }
0x148a   :  { %v3086_v45 = vsel %vm66_vm0, %v3082_v51, 0.0 }
0x148b   :  { %3087 = vadd.xlane.f32.xlu0 %v3086_v45 }
0x150a   :  { %v3094_v4 = vpop.xlane.xlu1 %3093 }
0x150b   :  { %v3100_v9 = vmul.f32 0.03125, %v3094_v4 }
0x150d   :  { %v3104_v10 = vadd.f32 1e-12, %v3100_v9 }
0x150e   :  { %v3097_v11 = vpop.xlane.xlu1 %3096 }
0x150f   :  { %3874 = vrsqrt.f32 %v3104_v10  ;;  %v3101_v1 = vmul.f32 0.03125, %v3097_v11 }
0x1510   :  { %v3091_v12 = vpop.xlane.xlu0 %3090 }
0x1511   :  { %v3105_v46 = vadd.f32 1e-12, %v3101_v1  ;;  %v3099_v14 = vmul.f32 0.03125, %v3091_v12 }
0x1513   :  { %3876 = vrsqrt.f32 %v3105_v46  ;;  %v3103_v49 = vadd.f32 1e-12, %v3099_v14 }
0x1514   :  { %v3088_v16 = vpop.xlane.xlu0 %3087 }
0x1515   :  { %3878 = vrsqrt.f32 %v3103_v49  ;;  %v3098_v60 = vmul.f32 0.03125, %v3088_v16 }
0x1517   :  { %v3102_v18 = vadd.f32 1e-12, %v3098_v60 }
0x1519   :  { %3880 = vrsqrt.f32 %v3102_v18 }
0x151c   :  { %v3875_v20 = vpop.eup %3874 }
0x151d   :  { %v3112_v3 = vmul.f32 %v3875_v20, %v3080_v43 }
0x151f   :  { %v3122_v21 = vmul.f32 %v3351_v7, %v3112_v3 }
0x1520   :  { %v3877_v22 = vpop.eup %3876 }
0x1521   :  { %v3132_v23 = vadd.f32 %v3352_v5, %v3122_v21  ;;  %v3113_v63 = vmul.f32 %v3877_v22, %v3081_v54 }
0x1522   :  { %v3879_v13 = vpop.eup %3878 }
0x1523   :  { %3136 = vst.msk [vmem:[#allocation2 + $0x10] sm:$0xff] %vm66_vm0, %v3132_v23  ;;  %v3123_v24 = vmul.f32 %v3351_v7, %v3113_v63  ;;  %v3111_v61 = vmul.f32 %v3879_v13, %v3079_v56 }
0x1525   :  { %v3133_v25 = vadd.f32 %v3352_v5, %v3123_v24  ;;  %v3121_v26 = vmul.f32 %v3351_v7, %v3111_v61 }
0x1526   :  { %v3881_v8 = vpop.eup %3880 }
0x1527   :  { %3137 = vst.msk [vmem:[#allocation2 + $0x18] sm:$0xff] %vm66_vm0, %v3133_v25  ;;  %v3131_v27 = vadd.f32 %v3352_v5, %v3121_v26  ;;  %v3110_v0 = vmul.f32 %v3881_v8, %v3078_v62 }
0x1529   :  { %3135 = vst.msk [vmem:[#allocation2 + $0x8] sm:$0xff] %vm66_vm0, %v3131_v27  ;;  %v3120_v28 = vmul.f32 %v3351_v7, %v3110_v0 }
0x152a   :  { %v3140_v30 = vld [vmem:[#allocation2 + $0x10] sm:$0x1] }
0x152b   :  { %v3130_v29 = vadd.f32 %v3352_v5, %v3120_v28  ;;  %v3146_v34 = vrot.slane %v3140_v30, 6 }
0x152d   :  { %3134 = vst.msk [vmem:[#allocation2] sm:$0xff] %vm66_vm0, %v3130_v29 }
0x152e   :  { %v3141_v31 = vld [vmem:[#allocation2 + $0x18] sm:$0x1] }
0x152f   :  { %v3149_v35 = vrot.slane %v3141_v31, 5 }
0x1530   :  { %v3139_v15 = vld [vmem:[#allocation2 + $0x8] sm:$0x1] }
0x1531   :  { %v3143_v32 = vrot.slane %v3139_v15, 7 }
0x1534   :  { %v3138_v33 = vld [vmem:[#allocation2] sm:$0x1] }
0x1535   :  { %v3152_v37 = vsel %vm3151_vm8, %v3138_v33, %v3143_v32 }
0x1536   :  { %v3154_v38 = vsel %vm3153_vm9, %v3152_v37, %v3146_v34 }
0x1537   :  { %v3156_v19 = vsel %vm3155_vm10, %v3154_v38, %v3149_v35 }
0x1538   :  { %v3161_v39 = vpack.c.bf16 %v3156_v19, %v3156_v19 }
0x153a   :  { %3729 = vmatmul.mubr.msk.bf16.vlgmr.msra.gmra.mxu1 %vm66_vm0, %v3161_v39 }
0x15fa   :  { %v3218_v41 = vpop.f32.mrf.mxu1 }
0x15fb   :  { %v3219_v42 = vadd.f32 %v3353_v17, %v3218_v41 }
0x15fc   :  { %v3730_v43 = vpop.f32.mrf.mxu1 }
0x15fd   :  { %3882 = vtanh.f32 %v3219_v42 }
0x15fe   :  { %v3221_v47 = vpop.f32.mrf.mxu1 }
0x1600   :  { %v3731_v50 = vpop.f32.mrf.mxu1 }
0x160a   :  { %v3883_v52 = vpop.eup %3882 }
0x160b   :  { %3226 = vst.msk [vmem:[%s4720_s18] sm:$0xf] %vm3225_vm11, %v3883_v52 }

</bundles_post_ra>
